<compile_context>
chip_gen: v5e
topology: v5e:2x2
jax: 0.10.0
libtpu: 0.0.40
codegen_flags: <defaults>
</compile_context>

<pallas_src>
import jax
import jax.numpy as jnp
from jax.experimental import pallas as pl
from jax.experimental.pallas import tpu as pltpu


# ----------------------------------------------------------------------------
# small helpers
# ----------------------------------------------------------------------------
def _ceil_to(x, m):
    return (x + m - 1) // m * m


# Measured fraction-of-roofline vs. tile edge; used to trade padding waste against
# per-step overhead / DMA efficiency when picking tile sizes.
_TILE_EFF = {128: 0.29, 256: 0.63, 384: 0.75, 512: 0.85}


def _tile_and_pad(dim, max_tile, quantum=128):
    """Choose a tile (multiple of `quantum`, <= max_tile) and the padded extent.
    Unlike a divisibility-based pick, this never silently degenerates to 128."""
    dim_q = _ceil_to(dim, quantum)
    if dim_q <= max_tile:
        return dim_q, dim_q
    best_t, best_score = quantum, None
    t = quantum
    while t <= max_tile:
        padded = _ceil_to(dim_q, t)
        score = padded / _TILE_EFF.get(t, 0.87)
        if best_score is None or score <= best_score:   # ties -> larger tile
            best_t, best_score = t, score
        t += quantum
    return best_t, _ceil_to(dim_q, best_t)


def _pick_div_tile(dim, max_tile, quantum=128):
    """Largest multiple of `quantum` that divides `dim` (dim is already padded)."""
    t = max(quantum, min(dim, max_tile))
    t = (t // quantum) * quantum
    while dim % t:
        t -= quantum
    return t


# ----------------------------------------------------------------------------
# Pallas kernels
# ----------------------------------------------------------------------------
def _make_matmul_kernel(add_bias, add_identity, slope, compute_stats, n_k, tk, w_resident):
    """Tiled (patches @ W) with f32 accumulator; fused bias, residual-add, LeakyReLU
    and (optionally) per-channel BN sum / sum-of-squares accumulated in the epilogue.
    Grid order is (j=OC tile, i=M tile, kk=K tile)."""

    def kernel(*args):
        idx = 0
        p_ref = args[idx]; idx += 1
        w_ref = args[idx]; idx += 1
        b_ref = id_ref = None
        if add_bias:
            b_ref = args[idx]; idx += 1
        if add_identity:
            id_ref = args[idx]; idx += 1
        o_ref = args[idx]; idx += 1
        if compute_stats:
            sum_ref = args[idx]; sq_ref = args[idx + 1]; idx += 2
        acc_ref = args[idx]

        i = pl.program_id(1)
        kk = pl.program_id(2)

        @pl.when(kk == 0)
        def _():
            acc_ref[...] = jnp.zeros_like(acc_ref)

        if compute_stats:
            # stats outputs are resident across the whole (i, kk) sweep of a j column
            @pl.when((i == 0) & (kk == 0))
            def _():
                sum_ref[...] = jnp.zeros_like(sum_ref)
                sq_ref[...] = jnp.zeros_like(sq_ref)

        if w_resident and n_k > 1:
            start = pl.multiple_of(kk * tk, tk)
            w_tile = w_ref[pl.ds(start, tk), :]
        else:
            w_tile = w_ref[...]
        acc_ref[...] += jnp.dot(p_ref[...], w_tile, preferred_element_type=jnp.float32)

        @pl.when(kk == n_k - 1)
        def _():
            y = acc_ref[...]
            if add_bias:
                y = y + b_ref[...]
            if add_identity:
                y = y + id_ref[...].astype(jnp.float32)
            if compute_stats:
                # BN stats sourced from the f32 accumulator (pre-activation)
                sum_ref[...] += jnp.sum(y, axis=0, keepdims=True)
                sq_ref[...] += jnp.sum(y * y, axis=0, keepdims=True)
            if slope != 1.0:                 # LeakyReLU(slope); 1.0 == no activation
                y = jnp.where(y >= 0.0, y, slope * y)
            o_ref[...] = y.astype(o_ref.dtype)

    return kernel


def _make_bn_apply_kernel(n_y, slope, inv_m, eps=1e-5):
    """Apply train-mode BN (from fused sums) + LeakyReLU to n_y activation maps."""

    def kernel(*refs):
        y_refs = refs[:n_y]
        s_ref, q_ref, g_ref, b_ref = refs[n_y:n_y + 4]
        o_refs = refs[n_y + 4:]
        mean = s_ref[...] * inv_m
        var = q_ref[...] * inv_m - mean * mean
        scale = g_ref[...] * jax.lax.rsqrt(var + eps)
        shift = b_ref[...] - mean * scale
        for y_ref, o_ref in zip(y_refs, o_refs):
            y = y_ref[...].astype(jnp.float32) * scale + shift
            if slope != 1.0:
                y = jnp.where(y >= 0.0, y, slope * y)
            o_ref[...] = y.astype(o_ref.dtype)

    return kernel


def _tanh_kernel(x_ref, o_ref):
    o_ref[...] = jnp.tanh(x_ref[...].astype(jnp.float32))


# ----------------------------------------------------------------------------
# tiled pallas_call wrappers
# ----------------------------------------------------------------------------
def _conv_matmul(patches, w2, *, bias=None, identity=None, slope=1.0, compute_stats=False):
    """patches (M, K), w2 (K, OC) -> padded (M_p, OC_p) bf16 output, plus per-channel
    (sum, sum_sq) f32 outputs when compute_stats."""
    m, k = patches.shape
    _, oc = w2.shape
    tm, m_p = _tile_and_pad(m, 1024)
    tk, k_p = _tile_and_pad(k, 512)
    tn, oc_p = _tile_and_pad(oc, 256)

    p_pad = jnp.pad(patches.astype(jnp.bfloat16), ((0, m_p - m), (0, k_p - k)))
    w_pad = jnp.pad(w2.astype(jnp.bfloat16), ((0, k_p - k), (0, oc_p - oc)))

    n_k = k_p // tk
    w_resident = (k_p * tn * 2) <= (8 << 20)     # full-K weight column fits in VMEM

    inputs = [p_pad, w_pad]
    in_specs = [pl.BlockSpec((tm, tk), lambda j, i, kk: (i, kk))]
    if w_resident:
        # fetched once per OC tile (= full weight read exactly once over the grid)
        in_specs.append(pl.BlockSpec((k_p, tn), lambda j, i, kk: (0, j)))
    else:
        in_specs.append(pl.BlockSpec((tk, tn), lambda j, i, kk: (kk, j)))

    add_bias = bias is not None
    add_identity = identity is not None
    if add_bias:
        b_pad = jnp.pad(bias.reshape(1, -1).astype(jnp.float32), ((0, 0), (0, oc_p - oc)))
        inputs.append(b_pad)
        in_specs.append(pl.BlockSpec((1, tn), lambda j, i, kk: (0, j)))
    if add_identity:
        id_pad = jnp.pad(identity.astype(jnp.bfloat16), ((0, m_p - m), (0, oc_p - oc)))
        inputs.append(id_pad)
        in_specs.append(pl.BlockSpec((tm, tn), lambda j, i, kk: (i, j)))

    out_shape = [jax.ShapeDtypeStruct((m_p, oc_p), jnp.bfloat16)]
    out_specs = [pl.BlockSpec((tm, tn), lambda j, i, kk: (i, j))]
    if compute_stats:
        out_shape += [jax.ShapeDtypeStruct((1, oc_p), jnp.float32)] * 2
        out_specs += [pl.BlockSpec((1, tn), lambda j, i, kk: (0, j))] * 2

    # stats outputs are resident across the M axis -> keep it "arbitrary" so megacore
    # never splits it; the OC axis stays parallel.
    dims = ("parallel", "arbitrary" if compute_stats else "parallel", "arbitrary")

    res = pl.pallas_call(
        _make_matmul_kernel(add_bias, add_identity, slope, compute_stats,
                            n_k, tk, w_resident),
        out_shape=tuple(out_shape) if len(out_shape) > 1 else out_shape[0],
        grid=(oc_p // tn, m_p // tm, n_k),
        in_specs=in_specs,
        out_specs=tuple(out_specs) if len(out_specs) > 1 else out_specs[0],
        scratch_shapes=[pltpu.VMEM((tm, tn), jnp.float32)],
        compiler_params=pltpu.CompilerParams(
            dimension_semantics=dims,
            vmem_limit_bytes=48 * 1024 * 1024),
    )(*inputs)

    if compute_stats:
        y_pad, ssum, ssq = res
        return y_pad, ssum, ssq
    return res


def _bn_apply(y_pads, ssum, ssq, gamma, beta, count, slope):
    """Apply train-mode BN (+ LeakyReLU) to one or more padded (M_p, OC_p) activation
    maps sharing the same statistics (one pallas_call for all of them)."""
    y_pads = tuple(y_pads)
    n_y = len(y_pads)
    m_p, oc_p = y_pads[0].shape
    oc = gamma.shape[0]
    g_pad = jnp.pad(gamma.reshape(1, -1).astype(jnp.float32), ((0, 0), (0, oc_p - oc)))
    b_pad = jnp.pad(beta.reshape(1, -1).astype(jnp.float32), ((0, 0), (0, oc_p - oc)))
    tm = _pick_div_tile(m_p, 512)
    tn = _pick_div_tile(oc_p, 256)

    y_spec = pl.BlockSpec((tm, tn), lambda i, j: (i, j))
    c_spec = pl.BlockSpec((1, tn), lambda i, j: (0, j))
    outs = pl.pallas_call(
        _make_bn_apply_kernel(n_y, slope, 1.0 / float(count)),
        out_shape=tuple(jax.ShapeDtypeStruct((m_p, oc_p), jnp.bfloat16) for _ in range(n_y)),
        grid=(m_p // tm, oc_p // tn),
        in_specs=[y_spec] * n_y + [c_spec] * 4,
        out_specs=tuple(y_spec for _ in range(n_y)),
        compiler_params=pltpu.CompilerParams(
            dimension_semantics=("parallel", "parallel")),
    )(*y_pads, ssum, ssq, g_pad, b_pad)
    if not isinstance(outs, (list, tuple)):
        outs = (outs,)
    return tuple(outs)


def _tanh_pallas(x):
    """Lane-dense (128-wide) tiled elementwise tanh; bf16 in, f32 out."""
    shape = x.shape
    n = x.size
    n_p = _ceil_to(n, 1024)
    flat = jnp.pad(x.reshape(-1), (0, n_p - n)).reshape(n_p // 128, 128)
    rows = flat.shape[0]
    tr = _pick_div_tile(rows, 1024, quantum=8)
    out = pl.pallas_call(
        _tanh_kernel,
        out_shape=jax.ShapeDtypeStruct(flat.shape, jnp.float32),
        grid=(rows // tr,),
        in_specs=[pl.BlockSpec((tr, 128), lambda i: (i, 0))],
        out_specs=pl.BlockSpec((tr, 128), lambda i: (i, 0)),
        compiler_params=pltpu.CompilerParams(dimension_semantics=("parallel",)),
    )(flat)
    return out.reshape(-1)[:n].reshape(shape)


# ----------------------------------------------------------------------------
# conv / conv-transpose layers (NHWC, bf16 activations)
# ----------------------------------------------------------------------------
def _im2col_nhwc(x, kh, kw, stride, pads):
    """x (N, H, W, C) -> patches (N*OH*OW, KH*KW*C); pads = (top, bot, left, right)."""
    n, h, w, c = x.shape
    pt, pb, pl_, pr = pads
    xp = jnp.pad(x, ((0, 0), (pt, pb), (pl_, pr), (0, 0)))
    oh = (h + pt + pb - kh) // stride + 1
    ow = (w + pl_ + pr - kw) // stride + 1
    cols = []
    for i in range(kh):
        for j in range(kw):
            cols.append(xp[:, i:i + stride * oh:stride, j:j + stride * ow:stride, :])
    patches = jnp.stack(cols, axis=3).reshape(n * oh * ow, kh * kw * c)
    return patches, oh, ow


def conv2d_block(x, w, b, *, stride, pad, gamma=None, beta=None, slope=1.0, identity=None):
    """Conv2d (NHWC input, PyTorch (OC,IC,kh,kw) weight) + optional train-mode BN
    + LeakyReLU(slope), with an optional fused residual add (no-BN path only)."""
    n, h, wd, c = x.shape
    oc, ic, kh, kw = w.shape
    patches, oh, ow = _im2col_nhwc(x, kh, kw, stride, (pad, pad, pad, pad))
    w2 = w.transpose(2, 3, 1, 0).reshape(kh * kw * ic, oc)   # K order = (kh, kw, ic)
    m = n * oh * ow
    use_bn = gamma is not None
    if use_bn:
        # conv bias is exactly cancelled by train-mode BN -> skipped, which also keeps
        # padded rows zero so the fused batch statistics are exact.
        y_pad, ssum, ssq = _conv_matmul(patches, w2, compute_stats=True)
        (y_pad,) = _bn_apply((y_pad,), ssum, ssq, gamma, beta, m, slope)
    else:
        id_flat = None if identity is None else identity.reshape(m, oc)
        y_pad = _conv_matmul(patches, w2, bias=b, identity=id_flat, slope=slope)
    return y_pad[:m, :oc].reshape(n, oh, ow, oc)


# polyphase decomposition of ConvTranspose2d(k=7, stride=2, pad=3, output_padding=1)
_PHASE_TAP_SLICE = {0: slice(5, None, -2),   # even outputs use kernel taps (5, 3, 1)
                    1: slice(6, None, -2)}   # odd outputs use kernel taps (6, 4, 2, 0)
_PHASE_PAD = {0: (1, 1), 1: (1, 2)}


def conv_transpose2d_block(x, wt, b, gamma, beta):
    """ReLU -> ConvTranspose2d(k=7,s=2,p=3,op=1) -> train-mode BatchNorm.
    x NHWC (N,H,W,IC); wt (IC,OC,7,7) PyTorch layout. Returns NHWC (N,2H,2W,OC).
    (bias `b` is unused: it is exactly cancelled by the following train-mode BN.)"""
    n, h, wd, ic = x.shape
    _, oc, kh, kw = wt.shape
    assert (kh, kw) == (7, 7), "polyphase lowering is specialized for k=7,s=2,p=3,op=1"

    # ReLU applied once, pre-duplication; XLA fuses it into the im2col gather.
    x = jnp.maximum(x, 0)

    ys, ssum, ssq = [], 0.0, 0.0
    for r in (0, 1):          # output-row parity
        for c_ in (0, 1):     # output-col parity
            sy, sx = _PHASE_TAP_SLICE[r], _PHASE_TAP_SLICE[c_]
            ph, pw = _PHASE_PAD[r], _PHASE_PAD[c_]
            ksub = wt[:, :, sy, sx]                              # (IC, OC, |ky|, |kx|)
            ksh, ksw = ksub.shape[2], ksub.shape[3]
            patches, _, _ = _im2col_nhwc(x, ksh, ksw, 1, (ph[0], ph[1], pw[0], pw[1]))
            w2 = ksub.transpose(2, 3, 0, 1).reshape(ksh * ksw * ic, oc)
            y, s1, s2 = _conv_matmul(patches, w2, compute_stats=True)
            ys.append(y)
            ssum = ssum + s1
            ssq = ssq + s2

    # train-mode BN over the union of the four phases == the full 2x-upsampled map;
    # one bn-apply call normalizes all four phase maps.
    count = n * (2 * h) * (2 * wd)
    zs = _bn_apply(tuple(ys), ssum, ssq, gamma, beta, count, 1.0)

    m = n * h * wd
    phases = [z[:m, :oc].reshape(n, h, wd, oc) for z in zs]
    # TODO(synk): the phase interleave below still costs one extra full-map pass;
    #             writing phases directly into the interleaved map via out_specs is
    #             not expressible with blocked index_maps.
    ph_arr = jnp.stack([jnp.stack(phases[0:2], axis=0),
                        jnp.stack(phases[2:4], axis=0)], axis=0)    # (r, c, N, H, W, OC)
    out = ph_arr.transpose(2, 3, 0, 4, 1, 5).reshape(n, 2 * h, 2 * wd, oc)
    return out


# ----------------------------------------------------------------------------
# deterministic parameter construction (mirrors SORTN.__init__)
# ----------------------------------------------------------------------------
def _uniform(key, shape, bound):
    return jax.random.uniform(key, shape, jnp.float32, -bound, bound)


def _init_conv(key, oc, ic, k):
    kw_, kb = jax.random.split(key)
    bound = 1.0 / (ic * k * k) ** 0.5
    return _uniform(kw_, (oc, ic, k, k), bound), _uniform(kb, (oc,), bound)


def _init_convT(key, ic, oc, k):
    kw_, kb = jax.random.split(key)
    bound = 1.0 / (oc * k * k) ** 0.5
    return _uniform(kw_, (ic, oc, k, k), bound), _uniform(kb, (oc,), bound)


def build_sortn_params(key, num_scaling_blocks=4, num_residual_blocks=6,
                       initial_filter_size=64):
    keys = iter(jax.random.split(key, 4 * (num_scaling_blocks + num_residual_blocks) + 8))
    blocks = []
    f = initial_filter_size

    w, b = _init_conv(next(keys), f, 1, 7)
    blocks.append(dict(kind="down", w=w, b=b,
                       gamma=jnp.ones((f,), jnp.float32), beta=jnp.zeros((f,), jnp.float32)))
    for _ in range(1, num_scaling_blocks):
        w, b = _init_conv(next(keys), f * 2, f, 7)
        blocks.append(dict(kind="down", w=w, b=b,
                           gamma=jnp.ones((f * 2,), jnp.float32),
                           beta=jnp.zeros((f * 2,), jnp.float32)))
        f *= 2
    for _ in range(num_residual_blocks):
        w1, b1 = _init_conv(next(keys), f, f, 3)
        w2, b2 = _init_conv(next(keys), f, f, 3)
        blocks.append(dict(kind="res", w1=w1, b1=b1, w2=w2, b2=b2,
                           gamma=jnp.ones((f,), jnp.float32), beta=jnp.zeros((f,), jnp.float32)))
    for i in range(1, num_scaling_blocks):
        dropout = (i != 1)
        w, b = _init_convT(next(keys), f, f // 2, 7)
        blocks.append(dict(kind="up", w=w, b=b, dropout=dropout,
                           gamma=jnp.ones((f // 2,), jnp.float32),
                           beta=jnp.zeros((f // 2,), jnp.float32)))
        f //= 2
    w, b = _init_convT(next(keys), f, 1, 7)
    blocks.append(dict(kind="up", w=w, b=b, dropout=False,
                       gamma=jnp.ones((1,), jnp.float32), beta=jnp.zeros((1,), jnp.float32)))
    blocks.append(dict(kind="tanh"))
    return blocks


# ----------------------------------------------------------------------------
# forward pass (returns (x, f_maps) like the PyTorch module, in NCHW f32)
# ----------------------------------------------------------------------------
def sortn_forward(blocks, x_nchw):
    x_f32 = jnp.transpose(x_nchw, (0, 2, 3, 1))     # NCHW -> NHWC once
    f_maps = [x_f32]
    x = x_f32.astype(jnp.bfloat16)                  # bf16 activations between layers
    for blk in blocks:
        kind = blk["kind"]
        if kind == "down":
            x = conv2d_block(x, blk["w"], blk["b"], stride=2, pad=3,
                             gamma=blk["gamma"], beta=blk["beta"], slope=0.2)
        elif kind == "res":
            identity = x
            y = conv2d_block(x, blk["w1"], blk["b1"], stride=1, pad=1,
                             gamma=blk["gamma"], beta=blk["beta"], slope=0.2)
            # conv2: bias + residual add fused into the matmul epilogue
            x = conv2d_block(y, blk["w2"], blk["b2"], stride=1, pad=1, identity=identity)
        elif kind == "up":
            x = conv_transpose2d_block(x, blk["w"], blk["b"], blk["gamma"], blk["beta"])
            if blk["dropout"]:
                # TODO(synk): training-mode Dropout(0.2) is stochastic; treated as identity.
                pass
        elif kind == "tanh":
            x = _tanh_pallas(x)
        f_maps.append(x)
    f_maps = [jnp.transpose(f, (0, 3, 1, 2)).astype(jnp.float32) for f in f_maps]
    return f_maps[-1], f_maps


# ----------------------------------------------------------------------------
if __name__ == "__main__":
    key = jax.random.PRNGKey(0)
    pkey, xkey = jax.random.split(key)

    # Small but structurally faithful config: 2 down blocks, 2 residual blocks,
    # 2 up blocks, tanh.  Input is 1-channel NCHW, spatial 16x16, batch 2.
    params = build_sortn_params(pkey, num_scaling_blocks=2,
                                num_residual_blocks=2, initial_filter_size=8)
    x = jax.random.normal(xkey, (2, 1, 16, 16), jnp.float32)

    fwd = jax.jit(lambda inp: sortn_forward(params, inp))
    out, f_maps = fwd(x)
    jax.block_until_ready(out)

    assert out.shape == (2, 1, 16, 16)
    assert len(f_maps) == len(params) + 1
    print("KERNEL_OK")
</pallas_src>

<mosaic_0001>
module attributes {stable_mosaic.version = 11 : i64} {
  func.func @kernel(%arg0: i32, %arg1: i32, %arg2: i32, %arg3: memref<128x128xbf16, #tpu.memory_space<vmem>>, %arg4: memref<128x128xbf16, #tpu.memory_space<vmem>>, %arg5: memref<128x128xbf16, #tpu.memory_space<vmem>>, %arg6: memref<1x128xf32, #tpu.memory_space<vmem>>, %arg7: memref<1x128xf32, #tpu.memory_space<vmem>>, %arg8: memref<128x128xf32, #tpu.memory_space<vmem>>) attributes {dimension_semantics = [#tpu.dimension_semantics<parallel>, #tpu.dimension_semantics<arbitrary>, #tpu.dimension_semantics<arbitrary>], iteration_bounds = array<i64: 1, 1, 1>, scalar_prefetch = 0 : i64, scratch_operands = 1 : i64, tpu.core_type = #tpu.core_type<tc>, window_params = [{transform_indices = @transform_0, window_bounds = array<i64: 128, 128>}, {transform_indices = @transform_1, window_bounds = array<i64: 128, 128>}, {transform_indices = @transform_2, window_bounds = array<i64: 128, 128>}, {transform_indices = @transform_3, window_bounds = array<i64: 1, 128>}, {transform_indices = @transform_4, window_bounds = array<i64: 1, 128>}]} {
    %c0_i32 = arith.constant 0 : i32
    %0 = arith.cmpi eq, %arg2, %c0_i32 : i32
    %1 = arith.extui %0 : i1 to i32
    %c0_i32_0 = arith.constant 0 : i32
    %2 = arith.cmpi ne, %1, %c0_i32_0 : i32
    scf.if %2 {
      %cst_13 = arith.constant 0.000000e+00 : f32
      %17 = vector.broadcast %cst_13 : f32 to vector<128x128xf32>
      %c0_14 = arith.constant 0 : index
      %c0_15 = arith.constant 0 : index
      %18 = vector.load %arg8[%c0_14, %c0_15] : memref<128x128xf32, #tpu.memory_space<vmem>>, vector<128x128xf32>
      tpu.vector_store %arg8[%c0_14, %c0_15], %17 {strides = array<i32>} : memref<128x128xf32, #tpu.memory_space<vmem>>, vector<128x128xf32>,
    } else {
    }
    %c0_i32_1 = arith.constant 0 : i32
    %3 = arith.cmpi eq, %arg1, %c0_i32_1 : i32
    %c0_i32_2 = arith.constant 0 : i32
    %4 = arith.cmpi eq, %arg2, %c0_i32_2 : i32
    %5 = arith.andi %3, %4 : i1
    %6 = arith.extui %5 : i1 to i32
    %c0_i32_3 = arith.constant 0 : i32
    %7 = arith.cmpi ne, %6, %c0_i32_3 : i32
    scf.if %7 {
      %cst_13 = arith.constant 0.000000e+00 : f32
      %17 = vector.broadcast %cst_13 : f32 to vector<1x128xf32>
      %c0_14 = arith.constant 0 : index
      %c0_15 = arith.constant 0 : index
      %18 = vector.load %arg6[%c0_14, %c0_15] : memref<1x128xf32, #tpu.memory_space<vmem>>, vector<1x128xf32>
      tpu.vector_store %arg6[%c0_14, %c0_15], %17 {strides = array<i32>} : memref<1x128xf32, #tpu.memory_space<vmem>>, vector<1x128xf32>,
      %cst_16 = arith.constant 0.000000e+00 : f32
      %19 = vector.broadcast %cst_16 : f32 to vector<1x128xf32>
      %c0_17 = arith.constant 0 : index
      %c0_18 = arith.constant 0 : index
      %20 = vector.load %arg7[%c0_17, %c0_18] : memref<1x128xf32, #tpu.memory_space<vmem>>, vector<1x128xf32>
      tpu.vector_store %arg7[%c0_17, %c0_18], %19 {strides = array<i32>} : memref<1x128xf32, #tpu.memory_space<vmem>>, vector<1x128xf32>,
    } else {
    }
    %c0 = arith.constant 0 : index
    %c0_4 = arith.constant 0 : index
    %8 = vector.load %arg4[%c0, %c0_4] : memref<128x128xbf16, #tpu.memory_space<vmem>>, vector<128x128xbf16>
    %c0_5 = arith.constant 0 : index
    %c0_6 = arith.constant 0 : index
    %9 = vector.load %arg8[%c0_5, %c0_6] : memref<128x128xf32, #tpu.memory_space<vmem>>, vector<128x128xf32>
    %c0_7 = arith.constant 0 : index
    %c0_8 = arith.constant 0 : index
    %10 = vector.load %arg3[%c0_7, %c0_8] : memref<128x128xbf16, #tpu.memory_space<vmem>>, vector<128x128xbf16>
    %cst = arith.constant dense<0.000000e+00> : vector<128x128xf32>
    %11 = tpu.matmul %10, %8, %cst {dimension_numbers = #tpu.dot_dimension_numbers<[1], [0], [0], [1], [0, 0, 1, 1], [], []>} : vector<128x128xbf16>, vector<128x128xbf16>, vector<128x128xf32> -> vector<128x128xf32>
    %12 = arith.addf %9, %11 : vector<128x128xf32>
    %c0_9 = arith.constant 0 : index
    %c0_10 = arith.constant 0 : index
    %13 = vector.load %arg8[%c0_9, %c0_10] : memref<128x128xf32, #tpu.memory_space<vmem>>, vector<128x128xf32>
    tpu.vector_store %arg8[%c0_9, %c0_10], %12 {strides = array<i32>} : memref<128x128xf32, #tpu.memory_space<vmem>>, vector<128x128xf32>,
    %c0_i32_11 = arith.constant 0 : i32
    %14 = arith.cmpi eq, %arg2, %c0_i32_11 : i32
    %15 = arith.extui %14 : i1 to i32
    %c0_i32_12 = arith.constant 0 : i32
    %16 = arith.cmpi ne, %15, %c0_i32_12 : i32
    scf.if %16 {
      %c0_13 = arith.constant 0 : index
      %c0_14 = arith.constant 0 : index
      %17 = vector.load %arg8[%c0_13, %c0_14] : memref<128x128xf32, #tpu.memory_space<vmem>>, vector<128x128xf32>
      %c0_15 = arith.constant 0 : index
      %c0_16 = arith.constant 0 : index
      %18 = vector.load %arg6[%c0_15, %c0_16] : memref<1x128xf32, #tpu.memory_space<vmem>>, vector<1x128xf32>
      %cst_17 = arith.constant dense<0.000000e+00> : vector<128xf32>
      %19 = vector.multi_reduction <add>, %17, %cst_17 [0] : vector<128x128xf32> to vector<128xf32>
      %20 = vector.shape_cast %19 : vector<128xf32> to vector<1x128xf32>
      %21 = arith.addf %18, %20 : vector<1x128xf32>
      %c0_18 = arith.constant 0 : index
      %c0_19 = arith.constant 0 : index
      %22 = vector.load %arg6[%c0_18, %c0_19] : memref<1x128xf32, #tpu.memory_space<vmem>>, vector<1x128xf32>
      tpu.vector_store %arg6[%c0_18, %c0_19], %21 {strides = array<i32>} : memref<1x128xf32, #tpu.memory_space<vmem>>, vector<1x128xf32>,
      %c0_20 = arith.constant 0 : index
      %c0_21 = arith.constant 0 : index
      %23 = vector.load %arg7[%c0_20, %c0_21] : memref<1x128xf32, #tpu.memory_space<vmem>>, vector<1x128xf32>
      %24 = arith.mulf %17, %17 : vector<128x128xf32>
      %cst_22 = arith.constant dense<0.000000e+00> : vector<128xf32>
      %25 = vector.multi_reduction <add>, %24, %cst_22 [0] : vector<128x128xf32> to vector<128xf32>
      %26 = vector.shape_cast %25 : vector<128xf32> to vector<1x128xf32>
      %27 = arith.addf %23, %26 : vector<1x128xf32>
      %c0_23 = arith.constant 0 : index
      %c0_24 = arith.constant 0 : index
      %28 = vector.load %arg7[%c0_23, %c0_24] : memref<1x128xf32, #tpu.memory_space<vmem>>, vector<1x128xf32>
      tpu.vector_store %arg7[%c0_23, %c0_24], %27 {strides = array<i32>} : memref<1x128xf32, #tpu.memory_space<vmem>>, vector<1x128xf32>,
      %29 = arith.truncf %17 : vector<128x128xf32> to vector<128x128xbf16>
      %c0_25 = arith.constant 0 : index
      %c0_26 = arith.constant 0 : index
      %30 = vector.load %arg5[%c0_25, %c0_26] : memref<128x128xbf16, #tpu.memory_space<vmem>>, vector<128x128xbf16>
      tpu.vector_store %arg5[%c0_25, %c0_26], %29 {strides = array<i32>} : memref<128x128xbf16, #tpu.memory_space<vmem>>, vector<128x128xbf16>,
    } else {
    }
    return
  }
  func.func @transform_0(%arg0: i32, %arg1: i32, %arg2: i32) -> (i32, i32) {
    %c0_i32 = arith.constant 0 : i32
    return %arg1, %arg2 : i32, i32
  }
  func.func @transform_1(%arg0: i32, %arg1: i32, %arg2: i32) -> (i32, i32) {
    %c0_i32 = arith.constant 0 : i32
    %c0_i32_0 = arith.constant 0 : i32
    return %c0_i32, %arg0 : i32, i32
  }
  func.func @transform_2(%arg0: i32, %arg1: i32, %arg2: i32) -> (i32, i32) {
    %c0_i32 = arith.constant 0 : i32
    return %arg1, %arg0 : i32, i32
  }
  func.func @transform_3(%arg0: i32, %arg1: i32, %arg2: i32) -> (i32, i32) {
    %c0_i32 = arith.constant 0 : i32
    %c0_i32_0 = arith.constant 0 : i32
    return %c0_i32, %arg0 : i32, i32
  }
  func.func @transform_4(%arg0: i32, %arg1: i32, %arg2: i32) -> (i32, i32) {
    %c0_i32 = arith.constant 0 : i32
    %c0_i32_0 = arith.constant 0 : i32
    return %c0_i32, %arg0 : i32, i32
  }
}

module attributes {stable_mosaic.version = 11 : i64} {
  func.func @kernel(%arg0: i32, %arg1: i32, %arg2: memref<128x128xbf16, #tpu.memory_space<vmem>>, %arg3: memref<1x128xf32, #tpu.memory_space<vmem>>, %arg4: memref<1x128xf32, #tpu.memory_space<vmem>>, %arg5: memref<1x128xf32, #tpu.memory_space<vmem>>, %arg6: memref<1x128xf32, #tpu.memory_space<vmem>>, %arg7: memref<128x128xbf16, #tpu.memory_space<vmem>>) attributes {dimension_semantics = [#tpu.dimension_semantics<parallel>, #tpu.dimension_semantics<parallel>], iteration_bounds = array<i64: 1, 1>, scalar_prefetch = 0 : i64, scratch_operands = 0 : i64, tpu.core_type = #tpu.core_type<tc>, window_params = [{transform_indices = @transform_0, window_bounds = array<i64: 128, 128>}, {transform_indices = @transform_1, window_bounds = array<i64: 1, 128>}, {transform_indices = @transform_2, window_bounds = array<i64: 1, 128>}, {transform_indices = @transform_3, window_bounds = array<i64: 1, 128>}, {transform_indices = @transform_4, window_bounds = array<i64: 1, 128>}, {transform_indices = @transform_5, window_bounds = array<i64: 128, 128>}]} {
    %c0 = arith.constant 0 : index
    %c0_0 = arith.constant 0 : index
    %0 = vector.load %arg3[%c0, %c0_0] : memref<1x128xf32, #tpu.memory_space<vmem>>, vector<1x128xf32>
    %cst = arith.constant 7.812500e-03 : f32
    %1 = vector.broadcast %cst : f32 to vector<1x128xf32>
    %2 = arith.mulf %0, %1 : vector<1x128xf32>
    %c0_1 = arith.constant 0 : index
    %c0_2 = arith.constant 0 : index
    %3 = vector.load %arg4[%c0_1, %c0_2] : memref<1x128xf32, #tpu.memory_space<vmem>>, vector<1x128xf32>
    %cst_3 = arith.constant 7.812500e-03 : f32
    %4 = vector.broadcast %cst_3 : f32 to vector<1x128xf32>
    %5 = arith.mulf %3, %4 : vector<1x128xf32>
    %6 = arith.mulf %2, %2 : vector<1x128xf32>
    %7 = arith.subf %5, %6 : vector<1x128xf32>
    %c0_4 = arith.constant 0 : index
    %c0_5 = arith.constant 0 : index
    %8 = vector.load %arg5[%c0_4, %c0_5] : memref<1x128xf32, #tpu.memory_space<vmem>>, vector<1x128xf32>
    %cst_6 = arith.constant 9.99999974E-6 : f32
    %9 = vector.broadcast %cst_6 : f32 to vector<1x128xf32>
    %10 = arith.addf %7, %9 : vector<1x128xf32>
    %11 = math.rsqrt %10 : vector<1x128xf32>
    %12 = arith.mulf %8, %11 : vector<1x128xf32>
    %c0_7 = arith.constant 0 : index
    %c0_8 = arith.constant 0 : index
    %13 = vector.load %arg6[%c0_7, %c0_8] : memref<1x128xf32, #tpu.memory_space<vmem>>, vector<1x128xf32>
    %14 = arith.mulf %2, %12 : vector<1x128xf32>
    %15 = arith.subf %13, %14 : vector<1x128xf32>
    %c0_9 = arith.constant 0 : index
    %c0_10 = arith.constant 0 : index
    %16 = vector.load %arg2[%c0_9, %c0_10] : memref<128x128xbf16, #tpu.memory_space<vmem>>, vector<128x128xbf16>
    %17 = arith.extf %16 : vector<128x128xbf16> to vector<128x128xf32>
    %18 = vector.broadcast %12 : vector<1x128xf32> to vector<128x128xf32>
    %19 = arith.mulf %17, %18 : vector<128x128xf32>
    %20 = vector.broadcast %15 : vector<1x128xf32> to vector<128x128xf32>
    %21 = arith.addf %19, %20 : vector<128x128xf32>
    %cst_11 = arith.constant 0.000000e+00 : f32
    %22 = vector.broadcast %cst_11 : f32 to vector<128x128xf32>
    %23 = arith.cmpf oge, %21, %22 : vector<128x128xf32>
    %cst_12 = arith.constant 2.000000e-01 : f32
    %24 = vector.broadcast %cst_12 : f32 to vector<128x128xf32>
    %25 = arith.mulf %24, %21 : vector<128x128xf32>
    %26 = arith.select %23, %21, %25 : vector<128x128xi1>, vector<128x128xf32>
    %27 = arith.truncf %26 : vector<128x128xf32> to vector<128x128xbf16>
    %c0_13 = arith.constant 0 : index
    %c0_14 = arith.constant 0 : index
    %28 = vector.load %arg7[%c0_13, %c0_14] : memref<128x128xbf16, #tpu.memory_space<vmem>>, vector<128x128xbf16>
    tpu.vector_store %arg7[%c0_13, %c0_14], %27 {strides = array<i32>} : memref<128x128xbf16, #tpu.memory_space<vmem>>, vector<128x128xbf16>,
    return
  }
  func.func @transform_0(%arg0: i32, %arg1: i32) -> (i32, i32) {
    %c0_i32 = arith.constant 0 : i32
    return %arg0, %arg1 : i32, i32
  }
  func.func @transform_1(%arg0: i32, %arg1: i32) -> (i32, i32) {
    %c0_i32 = arith.constant 0 : i32
    %c0_i32_0 = arith.constant 0 : i32
    return %c0_i32, %arg1 : i32, i32
  }
  func.func @transform_2(%arg0: i32, %arg1: i32) -> (i32, i32) {
    %c0_i32 = arith.constant 0 : i32
    %c0_i32_0 = arith.constant 0 : i32
    return %c0_i32, %arg1 : i32, i32
  }
  func.func @transform_3(%arg0: i32, %arg1: i32) -> (i32, i32) {
    %c0_i32 = arith.constant 0 : i32
    %c0_i32_0 = arith.constant 0 : i32
    return %c0_i32, %arg1 : i32, i32
  }
  func.func @transform_4(%arg0: i32, %arg1: i32) -> (i32, i32) {
    %c0_i32 = arith.constant 0 : i32
    %c0_i32_0 = arith.constant 0 : i32
    return %c0_i32, %arg1 : i32, i32
  }
  func.func @transform_5(%arg0: i32, %arg1: i32) -> (i32, i32) {
    %c0_i32 = arith.constant 0 : i32
    return %arg0, %arg1 : i32, i32
  }
}

module attributes {stable_mosaic.version = 11 : i64} {
  func.func @kernel(%arg0: i32, %arg1: i32, %arg2: i32, %arg3: memref<128x512xbf16, #tpu.memory_space<vmem>>, %arg4: memref<512x128xbf16, #tpu.memory_space<vmem>>, %arg5: memref<128x128xbf16, #tpu.memory_space<vmem>>, %arg6: memref<1x128xf32, #tpu.memory_space<vmem>>, %arg7: memref<1x128xf32, #tpu.memory_space<vmem>>, %arg8: memref<128x128xf32, #tpu.memory_space<vmem>>) attributes {dimension_semantics = [#tpu.dimension_semantics<parallel>, #tpu.dimension_semantics<arbitrary>, #tpu.dimension_semantics<arbitrary>], iteration_bounds = array<i64: 1, 1, 1>, scalar_prefetch = 0 : i64, scratch_operands = 1 : i64, tpu.core_type = #tpu.core_type<tc>, window_params = [{transform_indices = @transform_0, window_bounds = array<i64: 128, 512>}, {transform_indices = @transform_1, window_bounds = array<i64: 512, 128>}, {transform_indices = @transform_2, window_bounds = array<i64: 128, 128>}, {transform_indices = @transform_3, window_bounds = array<i64: 1, 128>}, {transform_indices = @transform_4, window_bounds = array<i64: 1, 128>}]} {
    %c0_i32 = arith.constant 0 : i32
    %0 = arith.cmpi eq, %arg2, %c0_i32 : i32
    %1 = arith.extui %0 : i1 to i32
    %c0_i32_0 = arith.constant 0 : i32
    %2 = arith.cmpi ne, %1, %c0_i32_0 : i32
    scf.if %2 {
      %cst_13 = arith.constant 0.000000e+00 : f32
      %17 = vector.broadcast %cst_13 : f32 to vector<128x128xf32>
      %c0_14 = arith.constant 0 : index
      %c0_15 = arith.constant 0 : index
      %18 = vector.load %arg8[%c0_14, %c0_15] : memref<128x128xf32, #tpu.memory_space<vmem>>, vector<128x128xf32>
      tpu.vector_store %arg8[%c0_14, %c0_15], %17 {strides = array<i32>} : memref<128x128xf32, #tpu.memory_space<vmem>>, vector<128x128xf32>,
    } else {
    }
    %c0_i32_1 = arith.constant 0 : i32
    %3 = arith.cmpi eq, %arg1, %c0_i32_1 : i32
    %c0_i32_2 = arith.constant 0 : i32
    %4 = arith.cmpi eq, %arg2, %c0_i32_2 : i32
    %5 = arith.andi %3, %4 : i1
    %6 = arith.extui %5 : i1 to i32
    %c0_i32_3 = arith.constant 0 : i32
    %7 = arith.cmpi ne, %6, %c0_i32_3 : i32
    scf.if %7 {
      %cst_13 = arith.constant 0.000000e+00 : f32
      %17 = vector.broadcast %cst_13 : f32 to vector<1x128xf32>
      %c0_14 = arith.constant 0 : index
      %c0_15 = arith.constant 0 : index
      %18 = vector.load %arg6[%c0_14, %c0_15] : memref<1x128xf32, #tpu.memory_space<vmem>>, vector<1x128xf32>
      tpu.vector_store %arg6[%c0_14, %c0_15], %17 {strides = array<i32>} : memref<1x128xf32, #tpu.memory_space<vmem>>, vector<1x128xf32>,
      %cst_16 = arith.constant 0.000000e+00 : f32
      %19 = vector.broadcast %cst_16 : f32 to vector<1x128xf32>
      %c0_17 = arith.constant 0 : index
      %c0_18 = arith.constant 0 : index
      %20 = vector.load %arg7[%c0_17, %c0_18] : memref<1x128xf32, #tpu.memory_space<vmem>>, vector<1x128xf32>
      tpu.vector_store %arg7[%c0_17, %c0_18], %19 {strides = array<i32>} : memref<1x128xf32, #tpu.memory_space<vmem>>, vector<1x128xf32>,
    } else {
    }
    %c0 = arith.constant 0 : index
    %c0_4 = arith.constant 0 : index
    %8 = vector.load %arg4[%c0, %c0_4] : memref<512x128xbf16, #tpu.memory_space<vmem>>, vector<512x128xbf16>
    %c0_5 = arith.constant 0 : index
    %c0_6 = arith.constant 0 : index
    %9 = vector.load %arg8[%c0_5, %c0_6] : memref<128x128xf32, #tpu.memory_space<vmem>>, vector<128x128xf32>
    %c0_7 = arith.constant 0 : index
    %c0_8 = arith.constant 0 : index
    %10 = vector.load %arg3[%c0_7, %c0_8] : memref<128x512xbf16, #tpu.memory_space<vmem>>, vector<128x512xbf16>
    %cst = arith.constant dense<0.000000e+00> : vector<128x128xf32>
    %11 = tpu.matmul %10, %8, %cst {dimension_numbers = #tpu.dot_dimension_numbers<[1], [0], [0], [1], [0, 0, 1, 1], [], []>} : vector<128x512xbf16>, vector<512x128xbf16>, vector<128x128xf32> -> vector<128x128xf32>
    %12 = arith.addf %9, %11 : vector<128x128xf32>
    %c0_9 = arith.constant 0 : index
    %c0_10 = arith.constant 0 : index
    %13 = vector.load %arg8[%c0_9, %c0_10] : memref<128x128xf32, #tpu.memory_space<vmem>>, vector<128x128xf32>
    tpu.vector_store %arg8[%c0_9, %c0_10], %12 {strides = array<i32>} : memref<128x128xf32, #tpu.memory_space<vmem>>, vector<128x128xf32>,
    %c0_i32_11 = arith.constant 0 : i32
    %14 = arith.cmpi eq, %arg2, %c0_i32_11 : i32
    %15 = arith.extui %14 : i1 to i32
    %c0_i32_12 = arith.constant 0 : i32
    %16 = arith.cmpi ne, %15, %c0_i32_12 : i32
    scf.if %16 {
      %c0_13 = arith.constant 0 : index
      %c0_14 = arith.constant 0 : index
      %17 = vector.load %arg8[%c0_13, %c0_14] : memref<128x128xf32, #tpu.memory_space<vmem>>, vector<128x128xf32>
      %c0_15 = arith.constant 0 : index
      %c0_16 = arith.constant 0 : index
      %18 = vector.load %arg6[%c0_15, %c0_16] : memref<1x128xf32, #tpu.memory_space<vmem>>, vector<1x128xf32>
      %cst_17 = arith.constant dense<0.000000e+00> : vector<128xf32>
      %19 = vector.multi_reduction <add>, %17, %cst_17 [0] : vector<128x128xf32> to vector<128xf32>
      %20 = vector.shape_cast %19 : vector<128xf32> to vector<1x128xf32>
      %21 = arith.addf %18, %20 : vector<1x128xf32>
      %c0_18 = arith.constant 0 : index
      %c0_19 = arith.constant 0 : index
      %22 = vector.load %arg6[%c0_18, %c0_19] : memref<1x128xf32, #tpu.memory_space<vmem>>, vector<1x128xf32>
      tpu.vector_store %arg6[%c0_18, %c0_19], %21 {strides = array<i32>} : memref<1x128xf32, #tpu.memory_space<vmem>>, vector<1x128xf32>,
      %c0_20 = arith.constant 0 : index
      %c0_21 = arith.constant 0 : index
      %23 = vector.load %arg7[%c0_20, %c0_21] : memref<1x128xf32, #tpu.memory_space<vmem>>, vector<1x128xf32>
      %24 = arith.mulf %17, %17 : vector<128x128xf32>
      %cst_22 = arith.constant dense<0.000000e+00> : vector<128xf32>
      %25 = vector.multi_reduction <add>, %24, %cst_22 [0] : vector<128x128xf32> to vector<128xf32>
      %26 = vector.shape_cast %25 : vector<128xf32> to vector<1x128xf32>
      %27 = arith.addf %23, %26 : vector<1x128xf32>
      %c0_23 = arith.constant 0 : index
      %c0_24 = arith.constant 0 : index
      %28 = vector.load %arg7[%c0_23, %c0_24] : memref<1x128xf32, #tpu.memory_space<vmem>>, vector<1x128xf32>
      tpu.vector_store %arg7[%c0_23, %c0_24], %27 {strides = array<i32>} : memref<1x128xf32, #tpu.memory_space<vmem>>, vector<1x128xf32>,
      %29 = arith.truncf %17 : vector<128x128xf32> to vector<128x128xbf16>
      %c0_25 = arith.constant 0 : index
      %c0_26 = arith.constant 0 : index
      %30 = vector.load %arg5[%c0_25, %c0_26] : memref<128x128xbf16, #tpu.memory_space<vmem>>, vector<128x128xbf16>
      tpu.vector_store %arg5[%c0_25, %c0_26], %29 {strides = array<i32>} : memref<128x128xbf16, #tpu.memory_space<vmem>>, vector<128x128xbf16>,
    } else {
    }
    return
  }
  func.func @transform_0(%arg0: i32, %arg1: i32, %arg2: i32) -> (i32, i32) {
    %c0_i32 = arith.constant 0 : i32
    return %arg1, %arg2 : i32, i32
  }
  func.func @transform_1(%arg0: i32, %arg1: i32, %arg2: i32) -> (i32, i32) {
    %c0_i32 = arith.constant 0 : i32
    %c0_i32_0 = arith.constant 0 : i32
    return %c0_i32, %arg0 : i32, i32
  }
  func.func @transform_2(%arg0: i32, %arg1: i32, %arg2: i32) -> (i32, i32) {
    %c0_i32 = arith.constant 0 : i32
    return %arg1, %arg0 : i32, i32
  }
  func.func @transform_3(%arg0: i32, %arg1: i32, %arg2: i32) -> (i32, i32) {
    %c0_i32 = arith.constant 0 : i32
    %c0_i32_0 = arith.constant 0 : i32
    return %c0_i32, %arg0 : i32, i32
  }
  func.func @transform_4(%arg0: i32, %arg1: i32, %arg2: i32) -> (i32, i32) {
    %c0_i32 = arith.constant 0 : i32
    %c0_i32_0 = arith.constant 0 : i32
    return %c0_i32, %arg0 : i32, i32
  }
}

module attributes {stable_mosaic.version = 11 : i64} {
  func.func @kernel(%arg0: i32, %arg1: i32, %arg2: memref<128x128xbf16, #tpu.memory_space<vmem>>, %arg3: memref<1x128xf32, #tpu.memory_space<vmem>>, %arg4: memref<1x128xf32, #tpu.memory_space<vmem>>, %arg5: memref<1x128xf32, #tpu.memory_space<vmem>>, %arg6: memref<1x128xf32, #tpu.memory_space<vmem>>, %arg7: memref<128x128xbf16, #tpu.memory_space<vmem>>) attributes {dimension_semantics = [#tpu.dimension_semantics<parallel>, #tpu.dimension_semantics<parallel>], iteration_bounds = array<i64: 1, 1>, scalar_prefetch = 0 : i64, scratch_operands = 0 : i64, tpu.core_type = #tpu.core_type<tc>, window_params = [{transform_indices = @transform_0, window_bounds = array<i64: 128, 128>}, {transform_indices = @transform_1, window_bounds = array<i64: 1, 128>}, {transform_indices = @transform_2, window_bounds = array<i64: 1, 128>}, {transform_indices = @transform_3, window_bounds = array<i64: 1, 128>}, {transform_indices = @transform_4, window_bounds = array<i64: 1, 128>}, {transform_indices = @transform_5, window_bounds = array<i64: 128, 128>}]} {
    %c0 = arith.constant 0 : index
    %c0_0 = arith.constant 0 : index
    %0 = vector.load %arg3[%c0, %c0_0] : memref<1x128xf32, #tpu.memory_space<vmem>>, vector<1x128xf32>
    %cst = arith.constant 3.125000e-02 : f32
    %1 = vector.broadcast %cst : f32 to vector<1x128xf32>
    %2 = arith.mulf %0, %1 : vector<1x128xf32>
    %c0_1 = arith.constant 0 : index
    %c0_2 = arith.constant 0 : index
    %3 = vector.load %arg4[%c0_1, %c0_2] : memref<1x128xf32, #tpu.memory_space<vmem>>, vector<1x128xf32>
    %cst_3 = arith.constant 3.125000e-02 : f32
    %4 = vector.broadcast %cst_3 : f32 to vector<1x128xf32>
    %5 = arith.mulf %3, %4 : vector<1x128xf32>
    %6 = arith.mulf %2, %2 : vector<1x128xf32>
    %7 = arith.subf %5, %6 : vector<1x128xf32>
    %c0_4 = arith.constant 0 : index
    %c0_5 = arith.constant 0 : index
    %8 = vector.load %arg5[%c0_4, %c0_5] : memref<1x128xf32, #tpu.memory_space<vmem>>, vector<1x128xf32>
    %cst_6 = arith.constant 9.99999974E-6 : f32
    %9 = vector.broadcast %cst_6 : f32 to vector<1x128xf32>
    %10 = arith.addf %7, %9 : vector<1x128xf32>
    %11 = math.rsqrt %10 : vector<1x128xf32>
    %12 = arith.mulf %8, %11 : vector<1x128xf32>
    %c0_7 = arith.constant 0 : index
    %c0_8 = arith.constant 0 : index
    %13 = vector.load %arg6[%c0_7, %c0_8] : memref<1x128xf32, #tpu.memory_space<vmem>>, vector<1x128xf32>
    %14 = arith.mulf %2, %12 : vector<1x128xf32>
    %15 = arith.subf %13, %14 : vector<1x128xf32>
    %c0_9 = arith.constant 0 : index
    %c0_10 = arith.constant 0 : index
    %16 = vector.load %arg2[%c0_9, %c0_10] : memref<128x128xbf16, #tpu.memory_space<vmem>>, vector<128x128xbf16>
    %17 = arith.extf %16 : vector<128x128xbf16> to vector<128x128xf32>
    %18 = vector.broadcast %12 : vector<1x128xf32> to vector<128x128xf32>
    %19 = arith.mulf %17, %18 : vector<128x128xf32>
    %20 = vector.broadcast %15 : vector<1x128xf32> to vector<128x128xf32>
    %21 = arith.addf %19, %20 : vector<128x128xf32>
    %cst_11 = arith.constant 0.000000e+00 : f32
    %22 = vector.broadcast %cst_11 : f32 to vector<128x128xf32>
    %23 = arith.cmpf oge, %21, %22 : vector<128x128xf32>
    %cst_12 = arith.constant 2.000000e-01 : f32
    %24 = vector.broadcast %cst_12 : f32 to vector<128x128xf32>
    %25 = arith.mulf %24, %21 : vector<128x128xf32>
    %26 = arith.select %23, %21, %25 : vector<128x128xi1>, vector<128x128xf32>
    %27 = arith.truncf %26 : vector<128x128xf32> to vector<128x128xbf16>
    %c0_13 = arith.constant 0 : index
    %c0_14 = arith.constant 0 : index
    %28 = vector.load %arg7[%c0_13, %c0_14] : memref<128x128xbf16, #tpu.memory_space<vmem>>, vector<128x128xbf16>
    tpu.vector_store %arg7[%c0_13, %c0_14], %27 {strides = array<i32>} : memref<128x128xbf16, #tpu.memory_space<vmem>>, vector<128x128xbf16>,
    return
  }
  func.func @transform_0(%arg0: i32, %arg1: i32) -> (i32, i32) {
    %c0_i32 = arith.constant 0 : i32
    return %arg0, %arg1 : i32, i32
  }
  func.func @transform_1(%arg0: i32, %arg1: i32) -> (i32, i32) {
    %c0_i32 = arith.constant 0 : i32
    %c0_i32_0 = arith.constant 0 : i32
    return %c0_i32, %arg1 : i32, i32
  }
  func.func @transform_2(%arg0: i32, %arg1: i32) -> (i32, i32) {
    %c0_i32 = arith.constant 0 : i32
    %c0_i32_0 = arith.constant 0 : i32
    return %c0_i32, %arg1 : i32, i32
  }
  func.func @transform_3(%arg0: i32, %arg1: i32) -> (i32, i32) {
    %c0_i32 = arith.constant 0 : i32
    %c0_i32_0 = arith.constant 0 : i32
    return %c0_i32, %arg1 : i32, i32
  }
  func.func @transform_4(%arg0: i32, %arg1: i32) -> (i32, i32) {
    %c0_i32 = arith.constant 0 : i32
    %c0_i32_0 = arith.constant 0 : i32
    return %c0_i32, %arg1 : i32, i32
  }
  func.func @transform_5(%arg0: i32, %arg1: i32) -> (i32, i32) {
    %c0_i32 = arith.constant 0 : i32
    return %arg0, %arg1 : i32, i32
  }
}

module attributes {stable_mosaic.version = 11 : i64} {
  func.func @kernel(%arg0: i32, %arg1: i32, %arg2: i32, %arg3: memref<128x256xbf16, #tpu.memory_space<vmem>>, %arg4: memref<256x128xbf16, #tpu.memory_space<vmem>>, %arg5: memref<128x128xbf16, #tpu.memory_space<vmem>>, %arg6: memref<1x128xf32, #tpu.memory_space<vmem>>, %arg7: memref<1x128xf32, #tpu.memory_space<vmem>>, %arg8: memref<128x128xf32, #tpu.memory_space<vmem>>) attributes {dimension_semantics = [#tpu.dimension_semantics<parallel>, #tpu.dimension_semantics<arbitrary>, #tpu.dimension_semantics<arbitrary>], iteration_bounds = array<i64: 1, 1, 1>, scalar_prefetch = 0 : i64, scratch_operands = 1 : i64, tpu.core_type = #tpu.core_type<tc>, window_params = [{transform_indices = @transform_0, window_bounds = array<i64: 128, 256>}, {transform_indices = @transform_1, window_bounds = array<i64: 256, 128>}, {transform_indices = @transform_2, window_bounds = array<i64: 128, 128>}, {transform_indices = @transform_3, window_bounds = array<i64: 1, 128>}, {transform_indices = @transform_4, window_bounds = array<i64: 1, 128>}]} {
    %c0_i32 = arith.constant 0 : i32
    %0 = arith.cmpi eq, %arg2, %c0_i32 : i32
    %1 = arith.extui %0 : i1 to i32
    %c0_i32_0 = arith.constant 0 : i32
    %2 = arith.cmpi ne, %1, %c0_i32_0 : i32
    scf.if %2 {
      %cst_13 = arith.constant 0.000000e+00 : f32
      %17 = vector.broadcast %cst_13 : f32 to vector<128x128xf32>
      %c0_14 = arith.constant 0 : index
      %c0_15 = arith.constant 0 : index
      %18 = vector.load %arg8[%c0_14, %c0_15] : memref<128x128xf32, #tpu.memory_space<vmem>>, vector<128x128xf32>
      tpu.vector_store %arg8[%c0_14, %c0_15], %17 {strides = array<i32>} : memref<128x128xf32, #tpu.memory_space<vmem>>, vector<128x128xf32>,
    } else {
    }
    %c0_i32_1 = arith.constant 0 : i32
    %3 = arith.cmpi eq, %arg1, %c0_i32_1 : i32
    %c0_i32_2 = arith.constant 0 : i32
    %4 = arith.cmpi eq, %arg2, %c0_i32_2 : i32
    %5 = arith.andi %3, %4 : i1
    %6 = arith.extui %5 : i1 to i32
    %c0_i32_3 = arith.constant 0 : i32
    %7 = arith.cmpi ne, %6, %c0_i32_3 : i32
    scf.if %7 {
      %cst_13 = arith.constant 0.000000e+00 : f32
      %17 = vector.broadcast %cst_13 : f32 to vector<1x128xf32>
      %c0_14 = arith.constant 0 : index
      %c0_15 = arith.constant 0 : index
      %18 = vector.load %arg6[%c0_14, %c0_15] : memref<1x128xf32, #tpu.memory_space<vmem>>, vector<1x128xf32>
      tpu.vector_store %arg6[%c0_14, %c0_15], %17 {strides = array<i32>} : memref<1x128xf32, #tpu.memory_space<vmem>>, vector<1x128xf32>,
      %cst_16 = arith.constant 0.000000e+00 : f32
      %19 = vector.broadcast %cst_16 : f32 to vector<1x128xf32>
      %c0_17 = arith.constant 0 : index
      %c0_18 = arith.constant 0 : index
      %20 = vector.load %arg7[%c0_17, %c0_18] : memref<1x128xf32, #tpu.memory_space<vmem>>, vector<1x128xf32>
      tpu.vector_store %arg7[%c0_17, %c0_18], %19 {strides = array<i32>} : memref<1x128xf32, #tpu.memory_space<vmem>>, vector<1x128xf32>,
    } else {
    }
    %c0 = arith.constant 0 : index
    %c0_4 = arith.constant 0 : index
    %8 = vector.load %arg4[%c0, %c0_4] : memref<256x128xbf16, #tpu.memory_space<vmem>>, vector<256x128xbf16>
    %c0_5 = arith.constant 0 : index
    %c0_6 = arith.constant 0 : index
    %9 = vector.load %arg8[%c0_5, %c0_6] : memref<128x128xf32, #tpu.memory_space<vmem>>, vector<128x128xf32>
    %c0_7 = arith.constant 0 : index
    %c0_8 = arith.constant 0 : index
    %10 = vector.load %arg3[%c0_7, %c0_8] : memref<128x256xbf16, #tpu.memory_space<vmem>>, vector<128x256xbf16>
    %cst = arith.constant dense<0.000000e+00> : vector<128x128xf32>
    %11 = tpu.matmul %10, %8, %cst {dimension_numbers = #tpu.dot_dimension_numbers<[1], [0], [0], [1], [0, 0, 1, 1], [], []>} : vector<128x256xbf16>, vector<256x128xbf16>, vector<128x128xf32> -> vector<128x128xf32>
    %12 = arith.addf %9, %11 : vector<128x128xf32>
    %c0_9 = arith.constant 0 : index
    %c0_10 = arith.constant 0 : index
    %13 = vector.load %arg8[%c0_9, %c0_10] : memref<128x128xf32, #tpu.memory_space<vmem>>, vector<128x128xf32>
    tpu.vector_store %arg8[%c0_9, %c0_10], %12 {strides = array<i32>} : memref<128x128xf32, #tpu.memory_space<vmem>>, vector<128x128xf32>,
    %c0_i32_11 = arith.constant 0 : i32
    %14 = arith.cmpi eq, %arg2, %c0_i32_11 : i32
    %15 = arith.extui %14 : i1 to i32
    %c0_i32_12 = arith.constant 0 : i32
    %16 = arith.cmpi ne, %15, %c0_i32_12 : i32
    scf.if %16 {
      %c0_13 = arith.constant 0 : index
      %c0_14 = arith.constant 0 : index
      %17 = vector.load %arg8[%c0_13, %c0_14] : memref<128x128xf32, #tpu.memory_space<vmem>>, vector<128x128xf32>
      %c0_15 = arith.constant 0 : index
      %c0_16 = arith.constant 0 : index
      %18 = vector.load %arg6[%c0_15, %c0_16] : memref<1x128xf32, #tpu.memory_space<vmem>>, vector<1x128xf32>
      %cst_17 = arith.constant dense<0.000000e+00> : vector<128xf32>
      %19 = vector.multi_reduction <add>, %17, %cst_17 [0] : vector<128x128xf32> to vector<128xf32>
      %20 = vector.shape_cast %19 : vector<128xf32> to vector<1x128xf32>
      %21 = arith.addf %18, %20 : vector<1x128xf32>
      %c0_18 = arith.constant 0 : index
      %c0_19 = arith.constant 0 : index
      %22 = vector.load %arg6[%c0_18, %c0_19] : memref<1x128xf32, #tpu.memory_space<vmem>>, vector<1x128xf32>
      tpu.vector_store %arg6[%c0_18, %c0_19], %21 {strides = array<i32>} : memref<1x128xf32, #tpu.memory_space<vmem>>, vector<1x128xf32>,
      %c0_20 = arith.constant 0 : index
      %c0_21 = arith.constant 0 : index
      %23 = vector.load %arg7[%c0_20, %c0_21] : memref<1x128xf32, #tpu.memory_space<vmem>>, vector<1x128xf32>
      %24 = arith.mulf %17, %17 : vector<128x128xf32>
      %cst_22 = arith.constant dense<0.000000e+00> : vector<128xf32>
      %25 = vector.multi_reduction <add>, %24, %cst_22 [0] : vector<128x128xf32> to vector<128xf32>
      %26 = vector.shape_cast %25 : vector<128xf32> to vector<1x128xf32>
      %27 = arith.addf %23, %26 : vector<1x128xf32>
      %c0_23 = arith.constant 0 : index
      %c0_24 = arith.constant 0 : index
      %28 = vector.load %arg7[%c0_23, %c0_24] : memref<1x128xf32, #tpu.memory_space<vmem>>, vector<1x128xf32>
      tpu.vector_store %arg7[%c0_23, %c0_24], %27 {strides = array<i32>} : memref<1x128xf32, #tpu.memory_space<vmem>>, vector<1x128xf32>,
      %29 = arith.truncf %17 : vector<128x128xf32> to vector<128x128xbf16>
      %c0_25 = arith.constant 0 : index
      %c0_26 = arith.constant 0 : index
      %30 = vector.load %arg5[%c0_25, %c0_26] : memref<128x128xbf16, #tpu.memory_space<vmem>>, vector<128x128xbf16>
      tpu.vector_store %arg5[%c0_25, %c0_26], %29 {strides = array<i32>} : memref<128x128xbf16, #tpu.memory_space<vmem>>, vector<128x128xbf16>,
    } else {
    }
    return
  }
  func.func @transform_0(%arg0: i32, %arg1: i32, %arg2: i32) -> (i32, i32) {
    %c0_i32 = arith.constant 0 : i32
    return %arg1, %arg2 : i32, i32
  }
  func.func @transform_1(%arg0: i32, %arg1: i32, %arg2: i32) -> (i32, i32) {
    %c0_i32 = arith.constant 0 : i32
    %c0_i32_0 = arith.constant 0 : i32
    return %c0_i32, %arg0 : i32, i32
  }
  func.func @transform_2(%arg0: i32, %arg1: i32, %arg2: i32) -> (i32, i32) {
    %c0_i32 = arith.constant 0 : i32
    return %arg1, %arg0 : i32, i32
  }
  func.func @transform_3(%arg0: i32, %arg1: i32, %arg2: i32) -> (i32, i32) {
    %c0_i32 = arith.constant 0 : i32
    %c0_i32_0 = arith.constant 0 : i32
    return %c0_i32, %arg0 : i32, i32
  }
  func.func @transform_4(%arg0: i32, %arg1: i32, %arg2: i32) -> (i32, i32) {
    %c0_i32 = arith.constant 0 : i32
    %c0_i32_0 = arith.constant 0 : i32
    return %c0_i32, %arg0 : i32, i32
  }
}

module attributes {stable_mosaic.version = 11 : i64} {
  func.func @kernel(%arg0: i32, %arg1: i32, %arg2: i32, %arg3: memref<128x256xbf16, #tpu.memory_space<vmem>>, %arg4: memref<256x128xbf16, #tpu.memory_space<vmem>>, %arg5: memref<1x128xf32, #tpu.memory_space<vmem>>, %arg6: memref<128x128xbf16, #tpu.memory_space<vmem>>, %arg7: memref<128x128xbf16, #tpu.memory_space<vmem>>, %arg8: memref<128x128xf32, #tpu.memory_space<vmem>>) attributes {dimension_semantics = [#tpu.dimension_semantics<parallel>, #tpu.dimension_semantics<parallel>, #tpu.dimension_semantics<arbitrary>], iteration_bounds = array<i64: 1, 1, 1>, scalar_prefetch = 0 : i64, scratch_operands = 1 : i64, tpu.core_type = #tpu.core_type<tc>, window_params = [{transform_indices = @transform_0, window_bounds = array<i64: 128, 256>}, {transform_indices = @transform_1, window_bounds = array<i64: 256, 128>}, {transform_indices = @transform_2, window_bounds = array<i64: 1, 128>}, {transform_indices = @transform_3, window_bounds = array<i64: 128, 128>}, {transform_indices = @transform_4, window_bounds = array<i64: 128, 128>}]} {
    %c0_i32 = arith.constant 0 : i32
    %0 = arith.cmpi eq, %arg2, %c0_i32 : i32
    %1 = arith.extui %0 : i1 to i32
    %c0_i32_0 = arith.constant 0 : i32
    %2 = arith.cmpi ne, %1, %c0_i32_0 : i32
    scf.if %2 {
      %cst_10 = arith.constant 0.000000e+00 : f32
      %12 = vector.broadcast %cst_10 : f32 to vector<128x128xf32>
      %c0_11 = arith.constant 0 : index
      %c0_12 = arith.constant 0 : index
      %13 = vector.load %arg8[%c0_11, %c0_12] : memref<128x128xf32, #tpu.memory_space<vmem>>, vector<128x128xf32>
      tpu.vector_store %arg8[%c0_11, %c0_12], %12 {strides = array<i32>} : memref<128x128xf32, #tpu.memory_space<vmem>>, vector<128x128xf32>,
    } else {
    }
    %c0 = arith.constant 0 : index
    %c0_1 = arith.constant 0 : index
    %3 = vector.load %arg4[%c0, %c0_1] : memref<256x128xbf16, #tpu.memory_space<vmem>>, vector<256x128xbf16>
    %c0_2 = arith.constant 0 : index
    %c0_3 = arith.constant 0 : index
    %4 = vector.load %arg8[%c0_2, %c0_3] : memref<128x128xf32, #tpu.memory_space<vmem>>, vector<128x128xf32>
    %c0_4 = arith.constant 0 : index
    %c0_5 = arith.constant 0 : index
    %5 = vector.load %arg3[%c0_4, %c0_5] : memref<128x256xbf16, #tpu.memory_space<vmem>>, vector<128x256xbf16>
    %cst = arith.constant dense<0.000000e+00> : vector<128x128xf32>
    %6 = tpu.matmul %5, %3, %cst {dimension_numbers = #tpu.dot_dimension_numbers<[1], [0], [0], [1], [0, 0, 1, 1], [], []>} : vector<128x256xbf16>, vector<256x128xbf16>, vector<128x128xf32> -> vector<128x128xf32>
    %7 = arith.addf %4, %6 : vector<128x128xf32>
    %c0_6 = arith.constant 0 : index
    %c0_7 = arith.constant 0 : index
    %8 = vector.load %arg8[%c0_6, %c0_7] : memref<128x128xf32, #tpu.memory_space<vmem>>, vector<128x128xf32>
    tpu.vector_store %arg8[%c0_6, %c0_7], %7 {strides = array<i32>} : memref<128x128xf32, #tpu.memory_space<vmem>>, vector<128x128xf32>,
    %c0_i32_8 = arith.constant 0 : i32
    %9 = arith.cmpi eq, %arg2, %c0_i32_8 : i32
    %10 = arith.extui %9 : i1 to i32
    %c0_i32_9 = arith.constant 0 : i32
    %11 = arith.cmpi ne, %10, %c0_i32_9 : i32
    scf.if %11 {
      %c0_10 = arith.constant 0 : index
      %c0_11 = arith.constant 0 : index
      %12 = vector.load %arg8[%c0_10, %c0_11] : memref<128x128xf32, #tpu.memory_space<vmem>>, vector<128x128xf32>
      %c0_12 = arith.constant 0 : index
      %c0_13 = arith.constant 0 : index
      %13 = vector.load %arg5[%c0_12, %c0_13] : memref<1x128xf32, #tpu.memory_space<vmem>>, vector<1x128xf32>
      %14 = vector.broadcast %13 : vector<1x128xf32> to vector<128x128xf32>
      %15 = arith.addf %12, %14 : vector<128x128xf32>
      %c0_14 = arith.constant 0 : index
      %c0_15 = arith.constant 0 : index
      %16 = vector.load %arg6[%c0_14, %c0_15] : memref<128x128xbf16, #tpu.memory_space<vmem>>, vector<128x128xbf16>
      %17 = arith.extf %16 : vector<128x128xbf16> to vector<128x128xf32>
      %18 = arith.addf %15, %17 : vector<128x128xf32>
      %19 = arith.truncf %18 : vector<128x128xf32> to vector<128x128xbf16>
      %c0_16 = arith.constant 0 : index
      %c0_17 = arith.constant 0 : index
      %20 = vector.load %arg7[%c0_16, %c0_17] : memref<128x128xbf16, #tpu.memory_space<vmem>>, vector<128x128xbf16>
      tpu.vector_store %arg7[%c0_16, %c0_17], %19 {strides = array<i32>} : memref<128x128xbf16, #tpu.memory_space<vmem>>, vector<128x128xbf16>,
    } else {
    }
    return
  }
  func.func @transform_0(%arg0: i32, %arg1: i32, %arg2: i32) -> (i32, i32) {
    %c0_i32 = arith.constant 0 : i32
    return %arg1, %arg2 : i32, i32
  }
  func.func @transform_1(%arg0: i32, %arg1: i32, %arg2: i32) -> (i32, i32) {
    %c0_i32 = arith.constant 0 : i32
    %c0_i32_0 = arith.constant 0 : i32
    return %c0_i32, %arg0 : i32, i32
  }
  func.func @transform_2(%arg0: i32, %arg1: i32, %arg2: i32) -> (i32, i32) {
    %c0_i32 = arith.constant 0 : i32
    %c0_i32_0 = arith.constant 0 : i32
    return %c0_i32, %arg0 : i32, i32
  }
  func.func @transform_3(%arg0: i32, %arg1: i32, %arg2: i32) -> (i32, i32) {
    %c0_i32 = arith.constant 0 : i32
    return %arg1, %arg0 : i32, i32
  }
  func.func @transform_4(%arg0: i32, %arg1: i32, %arg2: i32) -> (i32, i32) {
    %c0_i32 = arith.constant 0 : i32
    return %arg1, %arg0 : i32, i32
  }
}

module attributes {stable_mosaic.version = 11 : i64} {
  func.func @kernel(%arg0: i32, %arg1: i32, %arg2: memref<128x128xbf16, #tpu.memory_space<vmem>>, %arg3: memref<128x128xbf16, #tpu.memory_space<vmem>>, %arg4: memref<128x128xbf16, #tpu.memory_space<vmem>>, %arg5: memref<128x128xbf16, #tpu.memory_space<vmem>>, %arg6: memref<1x128xf32, #tpu.memory_space<vmem>>, %arg7: memref<1x128xf32, #tpu.memory_space<vmem>>, %arg8: memref<1x128xf32, #tpu.memory_space<vmem>>, %arg9: memref<1x128xf32, #tpu.memory_space<vmem>>, %arg10: memref<128x128xbf16, #tpu.memory_space<vmem>>, %arg11: memref<128x128xbf16, #tpu.memory_space<vmem>>, %arg12: memref<128x128xbf16, #tpu.memory_space<vmem>>, %arg13: memref<128x128xbf16, #tpu.memory_space<vmem>>) attributes {dimension_semantics = [#tpu.dimension_semantics<parallel>, #tpu.dimension_semantics<parallel>], iteration_bounds = array<i64: 1, 1>, scalar_prefetch = 0 : i64, scratch_operands = 0 : i64, tpu.core_type = #tpu.core_type<tc>, window_params = [{transform_indices = @transform_0, window_bounds = array<i64: 128, 128>}, {transform_indices = @transform_1, window_bounds = array<i64: 128, 128>}, {transform_indices = @transform_2, window_bounds = array<i64: 128, 128>}, {transform_indices = @transform_3, window_bounds = array<i64: 128, 128>}, {transform_indices = @transform_4, window_bounds = array<i64: 1, 128>}, {transform_indices = @transform_5, window_bounds = array<i64: 1, 128>}, {transform_indices = @transform_6, window_bounds = array<i64: 1, 128>}, {transform_indices = @transform_7, window_bounds = array<i64: 1, 128>}, {transform_indices = @transform_8, window_bounds = array<i64: 128, 128>}, {transform_indices = @transform_9, window_bounds = array<i64: 128, 128>}, {transform_indices = @transform_10, window_bounds = array<i64: 128, 128>}, {transform_indices = @transform_11, window_bounds = array<i64: 128, 128>}]} {
    %c0 = arith.constant 0 : index
    %c0_0 = arith.constant 0 : index
    %0 = vector.load %arg6[%c0, %c0_0] : memref<1x128xf32, #tpu.memory_space<vmem>>, vector<1x128xf32>
    %cst = arith.constant 7.812500e-03 : f32
    %1 = vector.broadcast %cst : f32 to vector<1x128xf32>
    %2 = arith.mulf %0, %1 : vector<1x128xf32>
    %c0_1 = arith.constant 0 : index
    %c0_2 = arith.constant 0 : index
    %3 = vector.load %arg7[%c0_1, %c0_2] : memref<1x128xf32, #tpu.memory_space<vmem>>, vector<1x128xf32>
    %cst_3 = arith.constant 7.812500e-03 : f32
    %4 = vector.broadcast %cst_3 : f32 to vector<1x128xf32>
    %5 = arith.mulf %3, %4 : vector<1x128xf32>
    %6 = arith.mulf %2, %2 : vector<1x128xf32>
    %7 = arith.subf %5, %6 : vector<1x128xf32>
    %c0_4 = arith.constant 0 : index
    %c0_5 = arith.constant 0 : index
    %8 = vector.load %arg8[%c0_4, %c0_5] : memref<1x128xf32, #tpu.memory_space<vmem>>, vector<1x128xf32>
    %cst_6 = arith.constant 9.99999974E-6 : f32
    %9 = vector.broadcast %cst_6 : f32 to vector<1x128xf32>
    %10 = arith.addf %7, %9 : vector<1x128xf32>
    %11 = math.rsqrt %10 : vector<1x128xf32>
    %12 = arith.mulf %8, %11 : vector<1x128xf32>
    %c0_7 = arith.constant 0 : index
    %c0_8 = arith.constant 0 : index
    %13 = vector.load %arg9[%c0_7, %c0_8] : memref<1x128xf32, #tpu.memory_space<vmem>>, vector<1x128xf32>
    %14 = arith.mulf %2, %12 : vector<1x128xf32>
    %15 = arith.subf %13, %14 : vector<1x128xf32>
    %c0_9 = arith.constant 0 : index
    %c0_10 = arith.constant 0 : index
    %16 = vector.load %arg2[%c0_9, %c0_10] : memref<128x128xbf16, #tpu.memory_space<vmem>>, vector<128x128xbf16>
    %17 = arith.extf %16 : vector<128x128xbf16> to vector<128x128xf32>
    %18 = vector.broadcast %12 : vector<1x128xf32> to vector<128x128xf32>
    %19 = arith.mulf %17, %18 : vector<128x128xf32>
    %20 = vector.broadcast %15 : vector<1x128xf32> to vector<128x128xf32>
    %21 = arith.addf %19, %20 : vector<128x128xf32>
    %22 = arith.truncf %21 : vector<128x128xf32> to vector<128x128xbf16>
    %c0_11 = arith.constant 0 : index
    %c0_12 = arith.constant 0 : index
    %23 = vector.load %arg10[%c0_11, %c0_12] : memref<128x128xbf16, #tpu.memory_space<vmem>>, vector<128x128xbf16>
    tpu.vector_store %arg10[%c0_11, %c0_12], %22 {strides = array<i32>} : memref<128x128xbf16, #tpu.memory_space<vmem>>, vector<128x128xbf16>,
    %c0_13 = arith.constant 0 : index
    %c0_14 = arith.constant 0 : index
    %24 = vector.load %arg3[%c0_13, %c0_14] : memref<128x128xbf16, #tpu.memory_space<vmem>>, vector<128x128xbf16>
    %25 = arith.extf %24 : vector<128x128xbf16> to vector<128x128xf32>
    %26 = vector.broadcast %12 : vector<1x128xf32> to vector<128x128xf32>
    %27 = arith.mulf %25, %26 : vector<128x128xf32>
    %28 = vector.broadcast %15 : vector<1x128xf32> to vector<128x128xf32>
    %29 = arith.addf %27, %28 : vector<128x128xf32>
    %30 = arith.truncf %29 : vector<128x128xf32> to vector<128x128xbf16>
    %c0_15 = arith.constant 0 : index
    %c0_16 = arith.constant 0 : index
    %31 = vector.load %arg11[%c0_15, %c0_16] : memref<128x128xbf16, #tpu.memory_space<vmem>>, vector<128x128xbf16>
    tpu.vector_store %arg11[%c0_15, %c0_16], %30 {strides = array<i32>} : memref<128x128xbf16, #tpu.memory_space<vmem>>, vector<128x128xbf16>,
    %c0_17 = arith.constant 0 : index
    %c0_18 = arith.constant 0 : index
    %32 = vector.load %arg4[%c0_17, %c0_18] : memref<128x128xbf16, #tpu.memory_space<vmem>>, vector<128x128xbf16>
    %33 = arith.extf %32 : vector<128x128xbf16> to vector<128x128xf32>
    %34 = vector.broadcast %12 : vector<1x128xf32> to vector<128x128xf32>
    %35 = arith.mulf %33, %34 : vector<128x128xf32>
    %36 = vector.broadcast %15 : vector<1x128xf32> to vector<128x128xf32>
    %37 = arith.addf %35, %36 : vector<128x128xf32>
    %38 = arith.truncf %37 : vector<128x128xf32> to vector<128x128xbf16>
    %c0_19 = arith.constant 0 : index
    %c0_20 = arith.constant 0 : index
    %39 = vector.load %arg12[%c0_19, %c0_20] : memref<128x128xbf16, #tpu.memory_space<vmem>>, vector<128x128xbf16>
    tpu.vector_store %arg12[%c0_19, %c0_20], %38 {strides = array<i32>} : memref<128x128xbf16, #tpu.memory_space<vmem>>, vector<128x128xbf16>,
    %c0_21 = arith.constant 0 : index
    %c0_22 = arith.constant 0 : index
    %40 = vector.load %arg5[%c0_21, %c0_22] : memref<128x128xbf16, #tpu.memory_space<vmem>>, vector<128x128xbf16>
    %41 = arith.extf %40 : vector<128x128xbf16> to vector<128x128xf32>
    %42 = vector.broadcast %12 : vector<1x128xf32> to vector<128x128xf32>
    %43 = arith.mulf %41, %42 : vector<128x128xf32>
    %44 = vector.broadcast %15 : vector<1x128xf32> to vector<128x128xf32>
    %45 = arith.addf %43, %44 : vector<128x128xf32>
    %46 = arith.truncf %45 : vector<128x128xf32> to vector<128x128xbf16>
    %c0_23 = arith.constant 0 : index
    %c0_24 = arith.constant 0 : index
    %47 = vector.load %arg13[%c0_23, %c0_24] : memref<128x128xbf16, #tpu.memory_space<vmem>>, vector<128x128xbf16>
    tpu.vector_store %arg13[%c0_23, %c0_24], %46 {strides = array<i32>} : memref<128x128xbf16, #tpu.memory_space<vmem>>, vector<128x128xbf16>,
    return
  }
  func.func @transform_0(%arg0: i32, %arg1: i32) -> (i32, i32) {
    %c0_i32 = arith.constant 0 : i32
    return %arg0, %arg1 : i32, i32
  }
  func.func @transform_1(%arg0: i32, %arg1: i32) -> (i32, i32) {
    %c0_i32 = arith.constant 0 : i32
    return %arg0, %arg1 : i32, i32
  }
  func.func @transform_2(%arg0: i32, %arg1: i32) -> (i32, i32) {
    %c0_i32 = arith.constant 0 : i32
    return %arg0, %arg1 : i32, i32
  }
  func.func @transform_3(%arg0: i32, %arg1: i32) -> (i32, i32) {
    %c0_i32 = arith.constant 0 : i32
    return %arg0, %arg1 : i32, i32
  }
  func.func @transform_4(%arg0: i32, %arg1: i32) -> (i32, i32) {
    %c0_i32 = arith.constant 0 : i32
    %c0_i32_0 = arith.constant 0 : i32
    return %c0_i32, %arg1 : i32, i32
  }
  func.func @transform_5(%arg0: i32, %arg1: i32) -> (i32, i32) {
    %c0_i32 = arith.constant 0 : i32
    %c0_i32_0 = arith.constant 0 : i32
    return %c0_i32, %arg1 : i32, i32
  }
  func.func @transform_6(%arg0: i32, %arg1: i32) -> (i32, i32) {
    %c0_i32 = arith.constant 0 : i32
    %c0_i32_0 = arith.constant 0 : i32
    return %c0_i32, %arg1 : i32, i32
  }
  func.func @transform_7(%arg0: i32, %arg1: i32) -> (i32, i32) {
    %c0_i32 = arith.constant 0 : i32
    %c0_i32_0 = arith.constant 0 : i32
    return %c0_i32, %arg1 : i32, i32
  }
  func.func @transform_8(%arg0: i32, %arg1: i32) -> (i32, i32) {
    %c0_i32 = arith.constant 0 : i32
    return %arg0, %arg1 : i32, i32
  }
  func.func @transform_9(%arg0: i32, %arg1: i32) -> (i32, i32) {
    %c0_i32 = arith.constant 0 : i32
    return %arg0, %arg1 : i32, i32
  }
  func.func @transform_10(%arg0: i32, %arg1: i32) -> (i32, i32) {
    %c0_i32 = arith.constant 0 : i32
    return %arg0, %arg1 : i32, i32
  }
  func.func @transform_11(%arg0: i32, %arg1: i32) -> (i32, i32) {
    %c0_i32 = arith.constant 0 : i32
    return %arg0, %arg1 : i32, i32
  }
}

module attributes {stable_mosaic.version = 11 : i64} {
  func.func @kernel(%arg0: i32, %arg1: i32, %arg2: memref<128x128xbf16, #tpu.memory_space<vmem>>, %arg3: memref<128x128xbf16, #tpu.memory_space<vmem>>, %arg4: memref<128x128xbf16, #tpu.memory_space<vmem>>, %arg5: memref<128x128xbf16, #tpu.memory_space<vmem>>, %arg6: memref<1x128xf32, #tpu.memory_space<vmem>>, %arg7: memref<1x128xf32, #tpu.memory_space<vmem>>, %arg8: memref<1x128xf32, #tpu.memory_space<vmem>>, %arg9: memref<1x128xf32, #tpu.memory_space<vmem>>, %arg10: memref<128x128xbf16, #tpu.memory_space<vmem>>, %arg11: memref<128x128xbf16, #tpu.memory_space<vmem>>, %arg12: memref<128x128xbf16, #tpu.memory_space<vmem>>, %arg13: memref<128x128xbf16, #tpu.memory_space<vmem>>) attributes {dimension_semantics = [#tpu.dimension_semantics<parallel>, #tpu.dimension_semantics<parallel>], iteration_bounds = array<i64: 1, 1>, scalar_prefetch = 0 : i64, scratch_operands = 0 : i64, tpu.core_type = #tpu.core_type<tc>, window_params = [{transform_indices = @transform_0, window_bounds = array<i64: 128, 128>}, {transform_indices = @transform_1, window_bounds = array<i64: 128, 128>}, {transform_indices = @transform_2, window_bounds = array<i64: 128, 128>}, {transform_indices = @transform_3, window_bounds = array<i64: 128, 128>}, {transform_indices = @transform_4, window_bounds = array<i64: 1, 128>}, {transform_indices = @transform_5, window_bounds = array<i64: 1, 128>}, {transform_indices = @transform_6, window_bounds = array<i64: 1, 128>}, {transform_indices = @transform_7, window_bounds = array<i64: 1, 128>}, {transform_indices = @transform_8, window_bounds = array<i64: 128, 128>}, {transform_indices = @transform_9, window_bounds = array<i64: 128, 128>}, {transform_indices = @transform_10, window_bounds = array<i64: 128, 128>}, {transform_indices = @transform_11, window_bounds = array<i64: 128, 128>}]} {
    %c0 = arith.constant 0 : index
    %c0_0 = arith.constant 0 : index
    %0 = vector.load %arg6[%c0, %c0_0] : memref<1x128xf32, #tpu.memory_space<vmem>>, vector<1x128xf32>
    %cst = arith.constant 0.001953125 : f32
    %1 = vector.broadcast %cst : f32 to vector<1x128xf32>
    %2 = arith.mulf %0, %1 : vector<1x128xf32>
    %c0_1 = arith.constant 0 : index
    %c0_2 = arith.constant 0 : index
    %3 = vector.load %arg7[%c0_1, %c0_2] : memref<1x128xf32, #tpu.memory_space<vmem>>, vector<1x128xf32>
    %cst_3 = arith.constant 0.001953125 : f32
    %4 = vector.broadcast %cst_3 : f32 to vector<1x128xf32>
    %5 = arith.mulf %3, %4 : vector<1x128xf32>
    %6 = arith.mulf %2, %2 : vector<1x128xf32>
    %7 = arith.subf %5, %6 : vector<1x128xf32>
    %c0_4 = arith.constant 0 : index
    %c0_5 = arith.constant 0 : index
    %8 = vector.load %arg8[%c0_4, %c0_5] : memref<1x128xf32, #tpu.memory_space<vmem>>, vector<1x128xf32>
    %cst_6 = arith.constant 9.99999974E-6 : f32
    %9 = vector.broadcast %cst_6 : f32 to vector<1x128xf32>
    %10 = arith.addf %7, %9 : vector<1x128xf32>
    %11 = math.rsqrt %10 : vector<1x128xf32>
    %12 = arith.mulf %8, %11 : vector<1x128xf32>
    %c0_7 = arith.constant 0 : index
    %c0_8 = arith.constant 0 : index
    %13 = vector.load %arg9[%c0_7, %c0_8] : memref<1x128xf32, #tpu.memory_space<vmem>>, vector<1x128xf32>
    %14 = arith.mulf %2, %12 : vector<1x128xf32>
    %15 = arith.subf %13, %14 : vector<1x128xf32>
    %c0_9 = arith.constant 0 : index
    %c0_10 = arith.constant 0 : index
    %16 = vector.load %arg2[%c0_9, %c0_10] : memref<128x128xbf16, #tpu.memory_space<vmem>>, vector<128x128xbf16>
    %17 = arith.extf %16 : vector<128x128xbf16> to vector<128x128xf32>
    %18 = vector.broadcast %12 : vector<1x128xf32> to vector<128x128xf32>
    %19 = arith.mulf %17, %18 : vector<128x128xf32>
    %20 = vector.broadcast %15 : vector<1x128xf32> to vector<128x128xf32>
    %21 = arith.addf %19, %20 : vector<128x128xf32>
    %22 = arith.truncf %21 : vector<128x128xf32> to vector<128x128xbf16>
    %c0_11 = arith.constant 0 : index
    %c0_12 = arith.constant 0 : index
    %23 = vector.load %arg10[%c0_11, %c0_12] : memref<128x128xbf16, #tpu.memory_space<vmem>>, vector<128x128xbf16>
    tpu.vector_store %arg10[%c0_11, %c0_12], %22 {strides = array<i32>} : memref<128x128xbf16, #tpu.memory_space<vmem>>, vector<128x128xbf16>,
    %c0_13 = arith.constant 0 : index
    %c0_14 = arith.constant 0 : index
    %24 = vector.load %arg3[%c0_13, %c0_14] : memref<128x128xbf16, #tpu.memory_space<vmem>>, vector<128x128xbf16>
    %25 = arith.extf %24 : vector<128x128xbf16> to vector<128x128xf32>
    %26 = vector.broadcast %12 : vector<1x128xf32> to vector<128x128xf32>
    %27 = arith.mulf %25, %26 : vector<128x128xf32>
    %28 = vector.broadcast %15 : vector<1x128xf32> to vector<128x128xf32>
    %29 = arith.addf %27, %28 : vector<128x128xf32>
    %30 = arith.truncf %29 : vector<128x128xf32> to vector<128x128xbf16>
    %c0_15 = arith.constant 0 : index
    %c0_16 = arith.constant 0 : index
    %31 = vector.load %arg11[%c0_15, %c0_16] : memref<128x128xbf16, #tpu.memory_space<vmem>>, vector<128x128xbf16>
    tpu.vector_store %arg11[%c0_15, %c0_16], %30 {strides = array<i32>} : memref<128x128xbf16, #tpu.memory_space<vmem>>, vector<128x128xbf16>,
    %c0_17 = arith.constant 0 : index
    %c0_18 = arith.constant 0 : index
    %32 = vector.load %arg4[%c0_17, %c0_18] : memref<128x128xbf16, #tpu.memory_space<vmem>>, vector<128x128xbf16>
    %33 = arith.extf %32 : vector<128x128xbf16> to vector<128x128xf32>
    %34 = vector.broadcast %12 : vector<1x128xf32> to vector<128x128xf32>
    %35 = arith.mulf %33, %34 : vector<128x128xf32>
    %36 = vector.broadcast %15 : vector<1x128xf32> to vector<128x128xf32>
    %37 = arith.addf %35, %36 : vector<128x128xf32>
    %38 = arith.truncf %37 : vector<128x128xf32> to vector<128x128xbf16>
    %c0_19 = arith.constant 0 : index
    %c0_20 = arith.constant 0 : index
    %39 = vector.load %arg12[%c0_19, %c0_20] : memref<128x128xbf16, #tpu.memory_space<vmem>>, vector<128x128xbf16>
    tpu.vector_store %arg12[%c0_19, %c0_20], %38 {strides = array<i32>} : memref<128x128xbf16, #tpu.memory_space<vmem>>, vector<128x128xbf16>,
    %c0_21 = arith.constant 0 : index
    %c0_22 = arith.constant 0 : index
    %40 = vector.load %arg5[%c0_21, %c0_22] : memref<128x128xbf16, #tpu.memory_space<vmem>>, vector<128x128xbf16>
    %41 = arith.extf %40 : vector<128x128xbf16> to vector<128x128xf32>
    %42 = vector.broadcast %12 : vector<1x128xf32> to vector<128x128xf32>
    %43 = arith.mulf %41, %42 : vector<128x128xf32>
    %44 = vector.broadcast %15 : vector<1x128xf32> to vector<128x128xf32>
    %45 = arith.addf %43, %44 : vector<128x128xf32>
    %46 = arith.truncf %45 : vector<128x128xf32> to vector<128x128xbf16>
    %c0_23 = arith.constant 0 : index
    %c0_24 = arith.constant 0 : index
    %47 = vector.load %arg13[%c0_23, %c0_24] : memref<128x128xbf16, #tpu.memory_space<vmem>>, vector<128x128xbf16>
    tpu.vector_store %arg13[%c0_23, %c0_24], %46 {strides = array<i32>} : memref<128x128xbf16, #tpu.memory_space<vmem>>, vector<128x128xbf16>,
    return
  }
  func.func @transform_0(%arg0: i32, %arg1: i32) -> (i32, i32) {
    %c0_i32 = arith.constant 0 : i32
    return %arg0, %arg1 : i32, i32
  }
  func.func @transform_1(%arg0: i32, %arg1: i32) -> (i32, i32) {
    %c0_i32 = arith.constant 0 : i32
    return %arg0, %arg1 : i32, i32
  }
  func.func @transform_2(%arg0: i32, %arg1: i32) -> (i32, i32) {
    %c0_i32 = arith.constant 0 : i32
    return %arg0, %arg1 : i32, i32
  }
  func.func @transform_3(%arg0: i32, %arg1: i32) -> (i32, i32) {
    %c0_i32 = arith.constant 0 : i32
    return %arg0, %arg1 : i32, i32
  }
  func.func @transform_4(%arg0: i32, %arg1: i32) -> (i32, i32) {
    %c0_i32 = arith.constant 0 : i32
    %c0_i32_0 = arith.constant 0 : i32
    return %c0_i32, %arg1 : i32, i32
  }
  func.func @transform_5(%arg0: i32, %arg1: i32) -> (i32, i32) {
    %c0_i32 = arith.constant 0 : i32
    %c0_i32_0 = arith.constant 0 : i32
    return %c0_i32, %arg1 : i32, i32
  }
  func.func @transform_6(%arg0: i32, %arg1: i32) -> (i32, i32) {
    %c0_i32 = arith.constant 0 : i32
    %c0_i32_0 = arith.constant 0 : i32
    return %c0_i32, %arg1 : i32, i32
  }
  func.func @transform_7(%arg0: i32, %arg1: i32) -> (i32, i32) {
    %c0_i32 = arith.constant 0 : i32
    %c0_i32_0 = arith.constant 0 : i32
    return %c0_i32, %arg1 : i32, i32
  }
  func.func @transform_8(%arg0: i32, %arg1: i32) -> (i32, i32) {
    %c0_i32 = arith.constant 0 : i32
    return %arg0, %arg1 : i32, i32
  }
  func.func @transform_9(%arg0: i32, %arg1: i32) -> (i32, i32) {
    %c0_i32 = arith.constant 0 : i32
    return %arg0, %arg1 : i32, i32
  }
  func.func @transform_10(%arg0: i32, %arg1: i32) -> (i32, i32) {
    %c0_i32 = arith.constant 0 : i32
    return %arg0, %arg1 : i32, i32
  }
  func.func @transform_11(%arg0: i32, %arg1: i32) -> (i32, i32) {
    %c0_i32 = arith.constant 0 : i32
    return %arg0, %arg1 : i32, i32
  }
}

module attributes {stable_mosaic.version = 11 : i64} {
  func.func @_tanh_kernel(%arg0: i32, %arg1: memref<8x128xbf16, #tpu.memory_space<vmem>>, %arg2: memref<8x128xf32, #tpu.memory_space<vmem>>) attributes {dimension_semantics = [#tpu.dimension_semantics<parallel>], iteration_bounds = array<i64: 1>, scalar_prefetch = 0 : i64, scratch_operands = 0 : i64, tpu.core_type = #tpu.core_type<tc>, window_params = [{transform_indices = @transform_0, window_bounds = array<i64: 8, 128>}, {transform_indices = @transform_1, window_bounds = array<i64: 8, 128>}]} {
    %c0 = arith.constant 0 : index
    %c0_0 = arith.constant 0 : index
    %0 = vector.load %arg1[%c0, %c0_0] : memref<8x128xbf16, #tpu.memory_space<vmem>>, vector<8x128xbf16>
    %1 = arith.extf %0 : vector<8x128xbf16> to vector<8x128xf32>
    %2 = math.tanh %1 : vector<8x128xf32>
    %c0_1 = arith.constant 0 : index
    %c0_2 = arith.constant 0 : index
    %3 = vector.load %arg2[%c0_1, %c0_2] : memref<8x128xf32, #tpu.memory_space<vmem>>, vector<8x128xf32>
    tpu.vector_store %arg2[%c0_1, %c0_2], %2 {strides = array<i32>} : memref<8x128xf32, #tpu.memory_space<vmem>>, vector<8x128xf32>,
    return
  }
  func.func @transform_0(%arg0: i32) -> (i32, i32) {
    %c0_i32 = arith.constant 0 : i32
    %c0_i32_0 = arith.constant 0 : i32
    return %arg0, %c0_i32 : i32, i32
  }
  func.func @transform_1(%arg0: i32) -> (i32, i32) {
    %c0_i32 = arith.constant 0 : i32
    %c0_i32_0 = arith.constant 0 : i32
    return %arg0, %c0_i32 : i32, i32
  }
}

</mosaic_0001>

<bundles_post_ra>
// kernel: _lambda_.22
= control target key start
LH: loop header
LB: loop body
LE: loop exit
PB: predicated region body
PF: predicated region fallthrough
CT: control target
= control target key end

     0   :  { %s418_s1 = inlined_call_operand.vmem [shape: f32[1,128], index: 1, kind: input, shape index: {}]   ;;  %s419_s2 = inlined_call_operand.vmem [shape: f32[1,128], index: 2, kind: input, shape index: {}]   ;;  %s420_s0 = inlined_call_operand.vmem [shape: bf16[128,128], index: 0, kind: input, shape index: {}]   ;;  %s421_s3 = inlined_call_operand.vmem [shape: f32[1,128], index: 3, kind: input, shape index: {}]   ;;  %s422_s4 = inlined_call_operand.vmem [shape: f32[1,128], index: 4, kind: input, shape index: {}]   ;;  %s423_s5 = inlined_call_operand.vmem [shape: bf16[128,128], index: 5, kind: output, shape index: {}]  }
   0x1   :  { %v20_v0 = vld [vmem:[%s418_s1] sm:$0x1]  ;;  %v268_v13 = vld [vmem:[%s420_s0 + $0x8] sm:$0xff]   ;;  %v269_v16 = vld [vmem:[%s420_s0 + $0x10] sm:$0xff]  }
   0x2   :  { %v22_v1 = vld [vmem:[%s419_s2] sm:$0x1]  ;;  %v21_v2 = vmul.f32 0.0078125, %v20_v0  ;;  %v270_v17 = vld [vmem:[%s420_s0 + $0x18] sm:$0xff]   ;;  %v202_v22 = vunpack.c.l.bf16 %v268_v13  ;;  %v272_v23 = vld [vmem:[%s420_s0 + $0x28] sm:$0xff]   ;;  %v203_v25 = vunpack.c.h.bf16 %v268_v13  ;;  %v206_v26 = vunpack.c.l.bf16 %v269_v16 }
   0x3   :  { %v23_v3 = vmul.f32 0.0078125, %v22_v1  ;;  %v197_v12 = vld [vmem:[%s420_s0] sm:$0xff]   ;;  %v207_v27 = vunpack.c.h.bf16 %v269_v16  ;;  %v273_v28 = vld [vmem:[%s420_s0 + $0x30] sm:$0xff]   ;;  %v347_v29 = vld [vmem:[%s420_s0 + $0x38] sm:$0xff]   ;;  %v210_v31 = vunpack.c.l.bf16 %v270_v17  ;;  %v211_v32 = vunpack.c.h.bf16 %v270_v17 }
   0x4   :  { %v24_v4 = vmul.f32 %v21_v2, %v21_v2  ;;  %v26_v14 = vld [vmem:[%s421_s3] sm:$0x1]  ;;  %v198_v20 = vunpack.c.l.bf16 %v197_v12  ;;  %v199_v21 = vunpack.c.h.bf16 %v197_v12  ;;  %v218_v37 = vunpack.c.l.bf16 %v272_v23 }
   0x5   :  { %v271_v18 = vld [vmem:[%s420_s0 + $0x20] sm:$0xff]   ;;  %v219_v38 = vunpack.c.h.bf16 %v272_v23  ;;  %v222_v39 = vunpack.c.l.bf16 %v273_v28  ;;  %v223_v40 = vunpack.c.h.bf16 %v273_v28  ;;  %v226_v41 = vunpack.c.l.bf16 %v347_v29 }
   0x6   :  { %v25_v5 = vsub.f32 %v23_v3, %v24_v4  ;;  %v39_v30 = vld [vmem:[%s422_s4] sm:$0x1]  ;;  %v214_v33 = vunpack.c.l.bf16 %v271_v18  ;;  %v215_v34 = vunpack.c.h.bf16 %v271_v18  ;;  %v227_v42 = vunpack.c.h.bf16 %v347_v29 }
   0x8   :  { %v27_v6 = vadd.f32 1e-05, %v25_v5 }
   0xa   :  { %282 = vrsqrt.f32 %v27_v6  ;;  %vm34_vm0 = vweird.f32 %v27_v6 }
  0x10   :  { %v283_v7 = vpop.eup %282 }
  0x11   :  { %v29_v8 = vmul.f32 %v283_v7, %v27_v6  ;;  %vm35_vm1 = vweird.f32 %v283_v7 }
  0x12   :  { %vm36_vm2 = vmor %vm34_vm0, %vm35_vm1 }
  0x13   :  { %v30_v9 = vmul.f32 %v283_v7, %v29_v8 }
  0x15   :  { %v31_v10 = vmul.f32 0.5, %v30_v9 }
  0x17   :  { %v32_v11 = vsub.f32 1.5, %v31_v10 }
  0x19   :  { %v33_v15 = vmul.f32 %v283_v7, %v32_v11 }
  0x1b   :  { %v37_v19 = vsel %vm36_vm2, %v283_v7, %v33_v15 }
  0x1c   :  { %v38_v24 = vmul.f32 %v37_v19, %v26_v14 }
  0x1e   :  { %v40_v35 = vmul.f32 %v38_v24, %v21_v2  ;;  %v352_v36 = vperm.slane %v38_v24, 0 }
  0x20   :  { %v41_v43 = vsub.f32 %v39_v30, %v40_v35  ;;  %v77_v44 = vmul.f32 %v198_v20, %v352_v36  ;;  %v78_v45 = vmul.f32 %v199_v21, %v352_v36  ;;  %v79_v46 = vmul.f32 %v202_v22, %v352_v36 }
  0x21   :  { %v80_v47 = vmul.f32 %v203_v25, %v352_v36  ;;  %v81_v48 = vmul.f32 %v206_v26, %v352_v36  ;;  %v82_v49 = vmul.f32 %v207_v27, %v352_v36  ;;  %v83_v50 = vmul.f32 %v210_v31, %v352_v36 }
  0x22   :  { %v363_v51 = vperm.slane %v41_v43, 0  ;;  %v84_v52 = vmul.f32 %v211_v32, %v352_v36  ;;  %v85_v53 = vmul.f32 %v214_v33, %v352_v36  ;;  %v86_v54 = vmul.f32 %v215_v34, %v352_v36 }
  0x23   :  { %v87_v55 = vmul.f32 %v218_v37, %v352_v36  ;;  %v88_v56 = vmul.f32 %v219_v38, %v352_v36  ;;  %v89_v57 = vmul.f32 %v222_v39, %v352_v36  ;;  %v90_v58 = vmul.f32 %v223_v40, %v352_v36 }
  0x24   :  { %v96_v59 = vadd.f32 %v363_v51, %v77_v44  ;;  %v97_v60 = vadd.f32 %v363_v51, %v78_v45  ;;  %v98_v61 = vadd.f32 %v363_v51, %v79_v46  ;;  %v99_v62 = vadd.f32 %v363_v51, %v80_v47 }
  0x25   :  { %v100_v63 = vadd.f32 %v363_v51, %v81_v48  ;;  %v101_v0 = vadd.f32 %v363_v51, %v82_v49  ;;  %v102_v1 = vadd.f32 %v363_v51, %v83_v50  ;;  %v103_v2 = vadd.f32 %v363_v51, %v84_v52 }
  0x26   :  { %vm112_vm3 = vcmp.ge.f32.partialorder %v96_v59, 0.0  ;;  %vm113_vm4 = vcmp.ge.f32.partialorder %v97_v60, 0.0  ;;  %v128_v3 = vmul.f32 0.2, %v96_v59  ;;  %v129_v4 = vmul.f32 0.2, %v97_v60 }
  0x27   :  { %vm114_vm5 = vcmp.ge.f32.partialorder %v98_v61, 0.0  ;;  %vm115_vm6 = vcmp.ge.f32.partialorder %v99_v62, 0.0  ;;  %v130_v5 = vmul.f32 0.2, %v98_v61  ;;  %v131_v6 = vmul.f32 0.2, %v99_v62 }
  0x28   :  { %v144_v7 = vsel %vm112_vm3, %v96_v59, %v128_v3  ;;  %v145_v8 = vsel %vm113_vm4, %v97_v60, %v129_v4  ;;  %vm116_vm7 = vcmp.ge.f32.partialorder %v100_v63, 0.0  ;;  %vm117_vm8 = vcmp.ge.f32.partialorder %v101_v0, 0.0 }
  0x29   :  { %v231_v9 = vpack.c.bf16 %v145_v8, %v144_v7  ;;  %v146_v10 = vsel %vm114_vm5, %v98_v61, %v130_v5  ;;  %v147_v11 = vsel %vm115_vm6, %v99_v62, %v131_v6  ;;  %v132_v12 = vmul.f32 0.2, %v100_v63 }
  0x2a   :  { %v236_v13 = vpack.c.bf16 %v147_v11, %v146_v10  ;;  %v133_v14 = vmul.f32 0.2, %v101_v0  ;;  %vm118_vm9 = vcmp.ge.f32.partialorder %v102_v1, 0.0  ;;  %vm119_vm10 = vcmp.ge.f32.partialorder %v103_v2, 0.0 }
  0x2b   :  { %232 = vst [vmem:[%s423_s5] sm:$0xff] %v231_v9   ;;  %v148_v15 = vsel %vm116_vm7, %v100_v63, %v132_v12  ;;  %v134_v16 = vmul.f32 0.2, %v102_v1  ;;  %v135_v17 = vmul.f32 0.2, %v103_v2  ;;  %v104_v18 = vadd.f32 %v363_v51, %v85_v53 }
  0x2c   :  { %275 = vst [vmem:[%s423_s5 + $0x8] sm:$0xff] %v236_v13   ;;  %v149_v19 = vsel %vm117_vm8, %v101_v0, %v133_v14  ;;  %v105_v20 = vadd.f32 %v363_v51, %v86_v54  ;;  %v106_v21 = vadd.f32 %v363_v51, %v87_v55  ;;  %v107_v22 = vadd.f32 %v363_v51, %v88_v56 }
  0x2d   :  { %v241_v23 = vpack.c.bf16 %v149_v19, %v148_v15  ;;  %v150_v24 = vsel %vm118_vm9, %v102_v1, %v134_v16  ;;  %v151_v25 = vsel %vm119_vm10, %v103_v2, %v135_v17  ;;  %vm120_vm11 = vcmp.ge.f32.partialorder %v104_v18, 0.0 }
  0x2e   :  { %v246_v26 = vpack.c.bf16 %v151_v25, %v150_v24  ;;  %vm121_vm12 = vcmp.ge.f32.partialorder %v105_v20, 0.0  ;;  %v136_v27 = vmul.f32 0.2, %v104_v18  ;;  %v137_v28 = vmul.f32 0.2, %v105_v20 }
  0x2f   :  { %276 = vst [vmem:[%s423_s5 + $0x10] sm:$0xff] %v241_v23   ;;  %vm122_vm13 = vcmp.ge.f32.partialorder %v106_v21, 0.0  ;;  %vm123_vm14 = vcmp.ge.f32.partialorder %v107_v22, 0.0  ;;  %v138_v30 = vmul.f32 0.2, %v106_v21  ;;  %v108_v31 = vadd.f32 %v363_v51, %v89_v57 }
  0x30   :  { %277 = vst [vmem:[%s423_s5 + $0x18] sm:$0xff] %v246_v26   ;;  %v152_v32 = vsel %vm120_vm11, %v104_v18, %v136_v27  ;;  %v153_v33 = vsel %vm121_vm12, %v105_v20, %v137_v28  ;;  %v139_v34 = vmul.f32 0.2, %v107_v22  ;;  %v109_v35 = vadd.f32 %v363_v51, %v90_v58 }
  0x31   :  { %v251_v37 = vpack.c.bf16 %v153_v33, %v152_v32  ;;  %v154_v38 = vsel %vm122_vm13, %v106_v21, %v138_v30  ;;  %vm124_vm15 = vcmp.ge.f32.partialorder %v108_v31, 0.0  ;;  %v140_v39 = vmul.f32 0.2, %v108_v31 }
  0x32   :  { %v155_v40 = vsel %vm123_vm14, %v107_v22, %v139_v34  ;;  %vm125_vm0 = vcmp.ge.f32.partialorder %v109_v35, 0.0  ;;  %v141_v43 = vmul.f32 0.2, %v109_v35  ;;  %v91_v44 = vmul.f32 %v226_v41, %v352_v36 }
  0x33   :  { %278 = vst [vmem:[%s423_s5 + $0x20] sm:$0xff] %v251_v37   ;;  %v256_v45 = vpack.c.bf16 %v155_v40, %v154_v38  ;;  %v156_v46 = vsel %vm124_vm15, %v108_v31, %v140_v39  ;;  %v92_v47 = vmul.f32 %v227_v42, %v352_v36 }
  0x34   :  { %v157_v48 = vsel %vm125_vm0, %v109_v35, %v141_v43  ;;  %v110_v49 = vadd.f32 %v363_v51, %v91_v44 }
  0x35   :  { %279 = vst [vmem:[%s423_s5 + $0x28] sm:$0xff] %v256_v45   ;;  %v261_v50 = vpack.c.bf16 %v157_v48, %v156_v46  ;;  %v111_v41 = vadd.f32 %v363_v51, %v92_v47 }
  0x36   :  { %vm126_vm1 = vcmp.ge.f32.partialorder %v110_v49, 0.0  ;;  %v142_v52 = vmul.f32 0.2, %v110_v49 }
  0x37   :  { %280 = vst [vmem:[%s423_s5 + $0x30] sm:$0xff] %v261_v50   ;;  %vm127_vm2 = vcmp.ge.f32.partialorder %v111_v41, 0.0  ;;  %v143_v53 = vmul.f32 0.2, %v111_v41 }
  0x38   :  { %v158_v29 = vsel %vm126_vm1, %v110_v49, %v142_v52 }
  0x39   :  { %v159_v36 = vsel %vm127_vm2, %v111_v41, %v143_v53 }
  0x3a   :  { %v266_v42 = vpack.c.bf16 %v159_v36, %v158_v29 }
  0x3c   :  { %281 = vst [vmem:[%s423_s5 + $0x38] sm:$0xff] %v266_v42  }

// kernel: _lambda_.21
= control target key start
LH: loop header
LB: loop body
LE: loop exit
PB: predicated region body
PF: predicated region fallthrough
CT: control target
= control target key end

     0   :  { %v545_v31 = vmov 0.0   ;;  %s673_s1 = inlined_call_operand.vmem [shape: bf16[128,128], index: 1, kind: input, shape index: {}]   ;;  %s674_s0 = inlined_call_operand.vmem [shape: bf16[128,128], index: 0, kind: input, shape index: {}]   ;;  %s675_s2 = inlined_call_operand.vmem [shape: bf16[128,128], index: 2, kind: output, shape index: {0}]   ;;  %s676_s3 = inlined_call_operand.vmem [shape: f32[1,128], index: 3, kind: output, shape index: {1}]   ;;  %s677_s4 = inlined_call_operand.vmem [shape: f32[1,128], index: 4, kind: output, shape index: {2}]  }
   0x1   :  { %v464_v0 = vld [vmem:[%s673_s1 + $0x38] sm:$0xff]  ;;  %v463_v1 = vld [vmem:[%s673_s1 + $0x30] sm:$0xff]  ;;  %v462_v2 = vld [vmem:[%s673_s1 + $0x28] sm:$0xff]  ;;  %39 = vst [vmem:[%s676_s3] sm:$0x1] %v545_v31 }
   0x2   :  { %185 = vmatpush.bf16.msra.mxu0 %v464_v0  ;;  %520 = vmatpush.bf16.msra.mxu1 %v464_v0  ;;  %v461_v3 = vld [vmem:[%s673_s1 + $0x20] sm:$0xff]  ;;  %v460_v4 = vld [vmem:[%s673_s1 + $0x18] sm:$0xff]  ;;  %v459_v5 = vld [vmem:[%s673_s1 + $0x10] sm:$0xff]  ;;  %40 = vst [vmem:[%s677_s4] sm:$0x1] %v545_v31 }
   0x3   :  { %521 = vmatpush.bf16.msra.mxu2 %v464_v0  ;;  %522 = vmatpush.bf16.msra.mxu3 %v464_v0  ;;  %v458_v6 = vld [vmem:[%s673_s1 + $0x8] sm:$0xff]  ;;  %v457_v7 = vld [vmem:[%s673_s1] sm:$0xff]  ;;  %v467_v9 = vld [vmem:[%s674_s0 + $0x10] sm:$0xff] }
   0x4   :  { %v465_v8 = vld [vmem:[%s674_s0] sm:$0xff]  ;;  %v471_v11 = vld [vmem:[%s674_s0 + $0x30] sm:$0xff]  ;;  %v466_v12 = vld [vmem:[%s674_s0 + $0x8] sm:$0xff] }
   0x5   :  { %v469_v10 = vld [vmem:[%s674_s0 + $0x20] sm:$0xff]  ;;  %v468_v13 = vld [vmem:[%s674_s0 + $0x18] sm:$0xff]  ;;  %v470_v14 = vld [vmem:[%s674_s0 + $0x28] sm:$0xff] }
   0x6   :  { %186 = vmatpush.bf16.msra.mxu0 %v463_v1  ;;  %523 = vmatpush.bf16.msra.mxu1 %v463_v1  ;;  %v472_v15 = vld [vmem:[%s674_s0 + $0x38] sm:$0xff] }
   0x7   :  { %524 = vmatpush.bf16.msra.mxu2 %v463_v1  ;;  %525 = vmatpush.bf16.msra.mxu3 %v463_v1 }
   0xa   :  { %187 = vmatpush.bf16.msra.mxu0 %v462_v2  ;;  %526 = vmatpush.bf16.msra.mxu1 %v462_v2 }
   0xb   :  { %527 = vmatpush.bf16.msra.mxu2 %v462_v2  ;;  %528 = vmatpush.bf16.msra.mxu3 %v462_v2 }
   0xe   :  { %188 = vmatpush.bf16.msra.mxu0 %v461_v3  ;;  %529 = vmatpush.bf16.msra.mxu1 %v461_v3 }
   0xf   :  { %530 = vmatpush.bf16.msra.mxu2 %v461_v3  ;;  %531 = vmatpush.bf16.msra.mxu3 %v461_v3 }
  0x12   :  { %189 = vmatpush.bf16.msra.mxu0 %v460_v4  ;;  %532 = vmatpush.bf16.msra.mxu1 %v460_v4 }
  0x13   :  { %533 = vmatpush.bf16.msra.mxu2 %v460_v4  ;;  %534 = vmatpush.bf16.msra.mxu3 %v460_v4 }
  0x16   :  { %190 = vmatpush.bf16.msra.mxu0 %v459_v5  ;;  %535 = vmatpush.bf16.msra.mxu1 %v459_v5 }
  0x17   :  { %536 = vmatpush.bf16.msra.mxu2 %v459_v5  ;;  %537 = vmatpush.bf16.msra.mxu3 %v459_v5 }
  0x1a   :  { %191 = vmatpush.bf16.msra.mxu0 %v458_v6  ;;  %538 = vmatpush.bf16.msra.mxu1 %v458_v6 }
  0x1b   :  { %539 = vmatpush.bf16.msra.mxu2 %v458_v6  ;;  %540 = vmatpush.bf16.msra.mxu3 %v458_v6 }
  0x1e   :  { %192 = vmatpush.bf16.msra.mxu0 %v457_v7  ;;  %541 = vmatpush.bf16.msra.mxu1 %v457_v7 }
  0x1f   :  { %542 = vmatpush.bf16.msra.mxu2 %v457_v7  ;;  %543 = vmatpush.bf16.msra.mxu3 %v457_v7 }
  0x21   :  { %193 = vmatmul.bf16.vlgmr.msra.gmra.mxu0 %v465_v8  ;;  %203 = vmatmul.bf16.vlgmr.msra.gmra.mxu1 %v467_v9 }
  0x22   :  { %213 = vmatmul.bf16.vlgmr.msra.gmra.mxu2 %v469_v10  ;;  %223 = vmatmul.bf16.vlgmr.msra.gmra.mxu3 %v471_v11 }
  0x31   :  { %198 = vmatmul.bf16.gmra.mxu0 %v466_v12  ;;  %208 = vmatmul.bf16.gmra.mxu1 %v468_v13 }
  0x32   :  { %218 = vmatmul.bf16.gmra.mxu2 %v470_v14  ;;  %228 = vmatmul.bf16.gmra.mxu3 %v472_v15 }
  0x9e   :  { %v194_v16 = vpop.f32.mrf.mxu0  ;;  %v204_v17 = vpop.f32.mrf.mxu1 }
  0x9f   :  { %v310_v32 = vmul.f32 %v194_v16, %v194_v16  ;;  %v314_v46 = vmul.f32 %v204_v17, %v204_v17 }
  0xa5   :  { %v214_v18 = vpop.f32.mrf.mxu2  ;;  %v619_v19 = vpop.f32.mrf.mxu3 }
  0xa6   :  { %v196_v20 = vpop.f32.mrf.mxu0  ;;  %v206_v21 = vpop.f32.mrf.mxu1  ;;  %v318_v62 = vmul.f32 %v214_v18, %v214_v18  ;;  %v322_v10 = vmul.f32 %v619_v19, %v619_v19 }
  0xa7   :  { %v476_v22 = vpack.c.bf16 %v196_v20, %v194_v16  ;;  %v486_v23 = vpack.c.bf16 %v206_v21, %v204_v17  ;;  %v311_v30 = vmul.f32 %v196_v20, %v196_v20  ;;  %v286_v33 = vadd.f32 %v196_v20, %v194_v16 }
  0xa8   :  { %v315_v49 = vmul.f32 %v206_v21, %v206_v21 }
  0xa9   :  { %477 = vst [vmem:[%s675_s2] sm:$0xff] %v476_v22   ;;  %v326_v35 = vadd.f32 %v311_v30, %v310_v32 }
  0xaa   :  { %514 = vst [vmem:[%s675_s2 + $0x10] sm:$0xff] %v486_v23  }
  0xad   :  { %v216_v24 = vpop.f32.mrf.mxu2  ;;  %v627_v25 = vpop.f32.mrf.mxu3 }
  0xae   :  { %v199_v26 = vpop.f32.mrf.mxu0  ;;  %v209_v27 = vpop.f32.mrf.mxu1  ;;  %v496_v28 = vpack.c.bf16 %v216_v24, %v214_v18  ;;  %v506_v29 = vpack.c.bf16 %v627_v25, %v619_v19  ;;  %v319_v1 = vmul.f32 %v216_v24, %v216_v24  ;;  %v323_v13 = vmul.f32 %v627_v25, %v627_v25 }
  0xaf   :  { %v312_v34 = vmul.f32 %v199_v26, %v199_v26  ;;  %v287_v36 = vadd.f32 %v286_v33, %v199_v26  ;;  %v316_v52 = vmul.f32 %v209_v27, %v209_v27 }
  0xb0   :  { %516 = vst [vmem:[%s675_s2 + $0x20] sm:$0xff] %v496_v28  }
  0xb1   :  { %518 = vst [vmem:[%s675_s2 + $0x30] sm:$0xff] %v506_v29   ;;  %v327_v41 = vadd.f32 %v326_v35, %v312_v34  ;;  %v309_v35 = vld [vmem:[%s677_s4] sm:$0x1] }
  0xb5   :  { %v219_v37 = vpop.f32.mrf.mxu2  ;;  %v229_v38 = vpop.f32.mrf.mxu3 }
  0xb6   :  { %v201_v39 = vpop.f32.mrf.mxu0  ;;  %v211_v40 = vpop.f32.mrf.mxu1  ;;  %v320_v5 = vmul.f32 %v219_v37, %v219_v37 }
  0xb7   :  { %v288_v42 = vadd.f32 %v287_v36, %v201_v39  ;;  %v313_v43 = vmul.f32 %v201_v39, %v201_v39  ;;  %v481_v44 = vpack.c.bf16 %v201_v39, %v199_v26  ;;  %v491_v45 = vpack.c.bf16 %v211_v40, %v209_v27 }
  0xb8   :  { %v317_v60 = vmul.f32 %v211_v40, %v211_v40 }
  0xb9   :  { %v289_v47 = vadd.f32 %v288_v42, %v204_v17  ;;  %v328_v48 = vadd.f32 %v327_v41, %v313_v43  ;;  %513 = vst [vmem:[%s675_s2 + $0x8] sm:$0xff] %v481_v44   ;;  %v324_v17 = vmul.f32 %v229_v38, %v229_v38 }
  0xba   :  { %515 = vst [vmem:[%s675_s2 + $0x18] sm:$0xff] %v491_v45  }
  0xbb   :  { %v329_v50 = vadd.f32 %v328_v48, %v314_v46  ;;  %v290_v51 = vadd.f32 %v289_v47, %v206_v21 }
  0xbd   :  { %v291_v53 = vadd.f32 %v290_v51, %v209_v27  ;;  %v330_v54 = vadd.f32 %v329_v50, %v315_v49  ;;  %v221_v55 = vpop.f32.mrf.mxu2  ;;  %v231_v56 = vpop.f32.mrf.mxu3 }
  0xbe   :  { %v501_v57 = vpack.c.bf16 %v221_v55, %v219_v37  ;;  %v511_v58 = vpack.c.bf16 %v231_v56, %v229_v38  ;;  %v321_v9 = vmul.f32 %v221_v55, %v221_v55  ;;  %v325_v22 = vmul.f32 %v231_v56, %v231_v56 }
  0xbf   :  { %v292_v59 = vadd.f32 %v291_v53, %v211_v40  ;;  %v331_v61 = vadd.f32 %v330_v54, %v316_v52 }
  0xc0   :  { %517 = vst [vmem:[%s675_s2 + $0x28] sm:$0xff] %v501_v57  }
  0xc1   :  { %v293_v63 = vadd.f32 %v292_v59, %v214_v18  ;;  %v332_v0 = vadd.f32 %v331_v61, %v317_v60  ;;  %519 = vst [vmem:[%s675_s2 + $0x38] sm:$0xff] %v511_v58  }
  0xc3   :  { %v333_v2 = vadd.f32 %v332_v0, %v318_v62  ;;  %v294_v3 = vadd.f32 %v293_v63, %v216_v24 }
  0xc5   :  { %v295_v4 = vadd.f32 %v294_v3, %v219_v37  ;;  %v334_v6 = vadd.f32 %v333_v2, %v319_v1 }
  0xc7   :  { %v335_v7 = vadd.f32 %v334_v6, %v320_v5  ;;  %v296_v8 = vadd.f32 %v295_v4, %v221_v55 }
  0xc9   :  { %v297_v11 = vadd.f32 %v296_v8, %v619_v19  ;;  %v336_v12 = vadd.f32 %v335_v7, %v321_v9 }
  0xcb   :  { %v337_v14 = vadd.f32 %v336_v12, %v322_v10  ;;  %v298_v15 = vadd.f32 %v297_v11, %v627_v25  ;;  %v285_v25 = vld [vmem:[%s676_s3] sm:$0x1] }
  0xcd   :  { %v299_v16 = vadd.f32 %v298_v15, %v229_v38  ;;  %v338_v18 = vadd.f32 %v337_v14, %v323_v13 }
  0xcf   :  { %v339_v20 = vadd.f32 %v338_v18, %v324_v17  ;;  %v300_v21 = vadd.f32 %v299_v16, %v231_v56 }
  0xd1   :  { %v301_v23 = vrot.slane %v300_v21, 4  ;;  %v340_v24 = vadd.f32 %v339_v20, %v325_v22 }
  0xd3   :  { %v302_v26 = vadd.f32 %v301_v23, %v300_v21  ;;  %v341_v27 = vrot.slane %v340_v24, 4 }
  0xd5   :  { %v303_v28 = vrot.slane %v302_v26, 2  ;;  %v342_v29 = vadd.f32 %v341_v27, %v340_v24 }
  0xd7   :  { %v304_v19 = vadd.f32 %v303_v28, %v302_v26  ;;  %v343_v30 = vrot.slane %v342_v29, 2 }
  0xd9   :  { %v305_v31 = vrot.slane %v304_v19, 1  ;;  %v344_v32 = vadd.f32 %v343_v30, %v342_v29 }
  0xdb   :  { %v306_v33 = vadd.f32 %v305_v31, %v304_v19  ;;  %v345_v34 = vrot.slane %v344_v32, 1 }
  0xdd   :  { %v307_v36 = vadd.f32 %v306_v33, %v285_v25  ;;  %v346_v37 = vadd.f32 %v345_v34, %v344_v32 }
  0xdf   :  { %308 = vst [vmem:[%s676_s3] sm:$0x1] %v307_v36  ;;  %v347_v38 = vadd.f32 %v346_v37, %v309_v35 }
  0xe1   :  { %348 = vst [vmem:[%s677_s4] sm:$0x1] %v347_v38 }

// kernel: _lambda_.23
= control target key start
LH: loop header
LB: loop body
LE: loop exit
PB: predicated region body
PF: predicated region fallthrough
CT: control target
= control target key end

     0   :  { %s1608_s1 = inlined_call_operand.vmem [shape: bf16[512,128], index: 1, kind: input, shape index: {}]   ;;  %s1609_s0 = inlined_call_operand.vmem [shape: bf16[128,512], index: 0, kind: input, shape index: {}]   ;;  %s1610_s2 = inlined_call_operand.vmem [shape: bf16[128,128], index: 2, kind: output, shape index: {0}]   ;;  %s1611_s3 = inlined_call_operand.vmem [shape: f32[1,128], index: 3, kind: output, shape index: {1}]   ;;  %s1612_s4 = inlined_call_operand.vmem [shape: f32[1,128], index: 4, kind: output, shape index: {2}]  }
   0x1   :  { %v1123_v0 = vld [vmem:[%s1608_s1 + $0x38] sm:$0xff]  ;;  %v1122_v4 = vld [vmem:[%s1608_s1 + $0x30] sm:$0xff]  ;;  %v1121_v8 = vld [vmem:[%s1608_s1 + $0x28] sm:$0xff] }
   0x2   :  { %v1131_v1 = vld [vmem:[%s1608_s1 + $0x78] sm:$0xff]  ;;  %505 = vmatpush.bf16.msra.mxu0 %v1123_v0  ;;  %v1130_v5 = vld [vmem:[%s1608_s1 + $0x70] sm:$0xff]  ;;  %v1129_v9 = vld [vmem:[%s1608_s1 + $0x68] sm:$0xff] }
   0x3   :  { %v1139_v2 = vld [vmem:[%s1608_s1 + $0xb8] sm:$0xff]  ;;  %554 = vmatpush.bf16.msra.mxu1 %v1131_v1  ;;  %v1138_v6 = vld [vmem:[%s1608_s1 + $0xb0] sm:$0xff]  ;;  %v1137_v10 = vld [vmem:[%s1608_s1 + $0xa8] sm:$0xff] }
   0x4   :  { %v1147_v3 = vld [vmem:[%s1608_s1 + $0xf8] sm:$0xff]  ;;  %603 = vmatpush.bf16.msra.mxu2 %v1139_v2  ;;  %v1146_v7 = vld [vmem:[%s1608_s1 + $0xf0] sm:$0xff]  ;;  %v1145_v11 = vld [vmem:[%s1608_s1 + $0xe8] sm:$0xff] }
   0x5   :  { %652 = vmatpush.bf16.msra.mxu3 %v1147_v3  ;;  %v1120_v12 = vld [vmem:[%s1608_s1 + $0x20] sm:$0xff]  ;;  %v1119_v16 = vld [vmem:[%s1608_s1 + $0x18] sm:$0xff]  ;;  %v1118_v20 = vld [vmem:[%s1608_s1 + $0x10] sm:$0xff] }
   0x6   :  { %506 = vmatpush.bf16.msra.mxu0 %v1122_v4  ;;  %v1128_v13 = vld [vmem:[%s1608_s1 + $0x60] sm:$0xff]  ;;  %v1127_v17 = vld [vmem:[%s1608_s1 + $0x58] sm:$0xff]  ;;  %v1126_v21 = vld [vmem:[%s1608_s1 + $0x50] sm:$0xff] }
   0x7   :  { %555 = vmatpush.bf16.msra.mxu1 %v1130_v5  ;;  %v1136_v14 = vld [vmem:[%s1608_s1 + $0xa0] sm:$0xff]  ;;  %v1135_v18 = vld [vmem:[%s1608_s1 + $0x98] sm:$0xff]  ;;  %v1134_v22 = vld [vmem:[%s1608_s1 + $0x90] sm:$0xff] }
   0x8   :  { %604 = vmatpush.bf16.msra.mxu2 %v1138_v6  ;;  %v1144_v15 = vld [vmem:[%s1608_s1 + $0xe0] sm:$0xff]  ;;  %v1143_v19 = vld [vmem:[%s1608_s1 + $0xd8] sm:$0xff]  ;;  %v1142_v23 = vld [vmem:[%s1608_s1 + $0xd0] sm:$0xff] }
   0x9   :  { %653 = vmatpush.bf16.msra.mxu3 %v1146_v7  ;;  %v1117_v24 = vld [vmem:[%s1608_s1 + $0x8] sm:$0xff]  ;;  %v1116_v28 = vld [vmem:[%s1608_s1] sm:$0xff]  ;;  %v1150_v33 = vld [vmem:[%s1609_s0 + $0xc] sm:$0xf0] }
   0xa   :  { %507 = vmatpush.bf16.msra.mxu0 %v1121_v8  ;;  %v1125_v25 = vld [vmem:[%s1608_s1 + $0x48] sm:$0xff]  ;;  %v1124_v29 = vld [vmem:[%s1608_s1 + $0x40] sm:$0xff]  ;;  %v864_v35 = vld [vmem:[%s1609_s0 + $0x10] sm:$0xf0] }
   0xb   :  { %556 = vmatpush.bf16.msra.mxu1 %v1129_v9  ;;  %v1133_v26 = vld [vmem:[%s1608_s1 + $0x88] sm:$0xff]  ;;  %v1132_v30 = vld [vmem:[%s1608_s1 + $0x80] sm:$0xff]  ;;  %v1151_v37 = vld [vmem:[%s1609_s0 + $0x14] sm:$0xf0] }
   0xc   :  { %605 = vmatpush.bf16.msra.mxu2 %v1137_v10  ;;  %v1141_v27 = vld [vmem:[%s1608_s1 + $0xc8] sm:$0xff]  ;;  %v1140_v31 = vld [vmem:[%s1608_s1 + $0xc0] sm:$0xff]  ;;  %v872_v39 = vld [vmem:[%s1609_s0 + $0x18] sm:$0xf0] }
   0xd   :  { %654 = vmatpush.bf16.msra.mxu3 %v1145_v11  ;;  %v862_v32 = vld [vmem:[%s1609_s0] sm:$0xf]  ;;  %v1148_v34 = vld [vmem:[%s1609_s0 + $0x4] sm:$0xf]  ;;  %v870_v36 = vld [vmem:[%s1609_s0 + $0x8] sm:$0xf] }
   0xe   :  { %508 = vmatpush.bf16.msra.mxu0 %v1120_v12  ;;  %v1149_v38 = vld [vmem:[%s1609_s0 + $0xc] sm:$0xf]  ;;  %v863_v40 = vor.u32 %v1150_v33, %v862_v32  ;;  %v867_v41 = vor.u32 %v1148_v34, %v864_v35  ;;  %v871_v42 = vor.u32 %v1151_v37, %v870_v36  ;;  %v878_v44 = vld [vmem:[%s1609_s0 + $0x20] sm:$0xf]  ;;  %v1154_v45 = vld [vmem:[%s1609_s0 + $0x2c] sm:$0xf0] }
   0xf   :  { %557 = vmatpush.bf16.msra.mxu1 %v1128_v13  ;;  %v875_v43 = vor.u32 %v1149_v38, %v872_v39  ;;  %v1152_v46 = vld [vmem:[%s1609_s0 + $0x24] sm:$0xf]  ;;  %v880_v47 = vld [vmem:[%s1609_s0 + $0x30] sm:$0xf0]  ;;  %v886_v48 = vld [vmem:[%s1609_s0 + $0x28] sm:$0xf]  ;;  %v879_v52 = vor.u32 %v1154_v45, %v878_v44 }
  0x10   :  { %606 = vmatpush.bf16.msra.mxu2 %v1136_v14  ;;  %v1155_v49 = vld [vmem:[%s1609_s0 + $0x34] sm:$0xf0]  ;;  %v1153_v50 = vld [vmem:[%s1609_s0 + $0x2c] sm:$0xf]  ;;  %v888_v51 = vld [vmem:[%s1609_s0 + $0x38] sm:$0xf0]  ;;  %v883_v53 = vor.u32 %v1152_v46, %v880_v47 }
  0x11   :  { %655 = vmatpush.bf16.msra.mxu3 %v1144_v15  ;;  %v887_v54 = vor.u32 %v1155_v49, %v886_v48  ;;  %v891_v55 = vor.u32 %v1153_v50, %v888_v51  ;;  %v894_v56 = vld [vmem:[%s1609_s0 + $0x40] sm:$0xf]  ;;  %v1158_v57 = vld [vmem:[%s1609_s0 + $0x4c] sm:$0xf0]  ;;  %v1156_v58 = vld [vmem:[%s1609_s0 + $0x44] sm:$0xf] }
  0x12   :  { %509 = vmatpush.bf16.msra.mxu0 %v1119_v16  ;;  %v896_v59 = vld [vmem:[%s1609_s0 + $0x50] sm:$0xf0]  ;;  %v902_v60 = vld [vmem:[%s1609_s0 + $0x48] sm:$0xf]  ;;  %v1159_v61 = vld [vmem:[%s1609_s0 + $0x54] sm:$0xf0]  ;;  %v895_v0 = vor.u32 %v1158_v57, %v894_v56 }
  0x13   :  { %558 = vmatpush.bf16.msra.mxu1 %v1127_v17  ;;  %v1157_v62 = vld [vmem:[%s1609_s0 + $0x4c] sm:$0xf]  ;;  %v904_v63 = vld [vmem:[%s1609_s0 + $0x58] sm:$0xf0]  ;;  %v899_v1 = vor.u32 %v1156_v58, %v896_v59  ;;  %v903_v2 = vor.u32 %v1159_v61, %v902_v60  ;;  %v910_v4 = vld [vmem:[%s1609_s0 + $0x60] sm:$0xf] }
  0x14   :  { %607 = vmatpush.bf16.msra.mxu2 %v1135_v18  ;;  %v907_v3 = vor.u32 %v1157_v62, %v904_v63  ;;  %v1162_v5 = vld [vmem:[%s1609_s0 + $0x6c] sm:$0xf0]  ;;  %v1160_v6 = vld [vmem:[%s1609_s0 + $0x64] sm:$0xf]  ;;  %v912_v7 = vld [vmem:[%s1609_s0 + $0x70] sm:$0xf0] }
  0x15   :  { %656 = vmatpush.bf16.msra.mxu3 %v1143_v19  ;;  %v918_v8 = vld [vmem:[%s1609_s0 + $0x68] sm:$0xf]  ;;  %v1163_v9 = vld [vmem:[%s1609_s0 + $0x74] sm:$0xf0]  ;;  %v1161_v10 = vld [vmem:[%s1609_s0 + $0x6c] sm:$0xf]  ;;  %v911_v12 = vor.u32 %v1162_v5, %v910_v4  ;;  %v915_v13 = vor.u32 %v1160_v6, %v912_v7 }
  0x16   :  { %510 = vmatpush.bf16.msra.mxu0 %v1118_v20  ;;  %v920_v11 = vld [vmem:[%s1609_s0 + $0x78] sm:$0xf0]  ;;  %v919_v14 = vor.u32 %v1163_v9, %v918_v8  ;;  %v926_v16 = vld [vmem:[%s1609_s0 + $0x80] sm:$0xf]  ;;  %v1166_v17 = vld [vmem:[%s1609_s0 + $0x8c] sm:$0xf0] }
  0x17   :  { %559 = vmatpush.bf16.msra.mxu1 %v1126_v21  ;;  %v923_v15 = vor.u32 %v1161_v10, %v920_v11  ;;  %v1164_v18 = vld [vmem:[%s1609_s0 + $0x84] sm:$0xf]  ;;  %v928_v19 = vld [vmem:[%s1609_s0 + $0x90] sm:$0xf0]  ;;  %v934_v20 = vld [vmem:[%s1609_s0 + $0x88] sm:$0xf] }
  0x18   :  { %608 = vmatpush.bf16.msra.mxu2 %v1134_v22  ;;  %v1167_v21 = vld [vmem:[%s1609_s0 + $0x94] sm:$0xf0]  ;;  %v1165_v22 = vld [vmem:[%s1609_s0 + $0x8c] sm:$0xf]  ;;  %v950_v32 = vld [vmem:[%s1609_s0 + $0xa8] sm:$0xf] }
  0x19   :  { %657 = vmatpush.bf16.msra.mxu3 %v1142_v23  ;;  %v936_v23 = vld [vmem:[%s1609_s0 + $0x98] sm:$0xf0]  ;;  %v1171_v33 = vld [vmem:[%s1609_s0 + $0xb4] sm:$0xf0]  ;;  %v1169_v34 = vld [vmem:[%s1609_s0 + $0xac] sm:$0xf] }
  0x1a   :  { %511 = vmatpush.bf16.msra.mxu0 %v1117_v24  ;;  %v927_v24 = vor.u32 %v1166_v17, %v926_v16  ;;  %v952_v35 = vld [vmem:[%s1609_s0 + $0xb8] sm:$0xf0]  ;;  %v951_v38 = vor.u32 %v1171_v33, %v950_v32  ;;  %v966_v44 = vld [vmem:[%s1609_s0 + $0xc8] sm:$0xf]  ;;  %v1175_v45 = vld [vmem:[%s1609_s0 + $0xd4] sm:$0xf0] }
  0x1b   :  { %560 = vmatpush.bf16.msra.mxu1 %v1125_v25  ;;  %v931_v25 = vor.u32 %v1164_v18, %v928_v19  ;;  %v955_v39 = vor.u32 %v1169_v34, %v952_v35  ;;  %v1173_v46 = vld [vmem:[%s1609_s0 + $0xcc] sm:$0xf]  ;;  %v968_v47 = vld [vmem:[%s1609_s0 + $0xd8] sm:$0xf0]  ;;  %v967_v50 = vor.u32 %v1175_v45, %v966_v44  ;;  %v982_v56 = vld [vmem:[%s1609_s0 + $0xe8] sm:$0xf] }
  0x1c   :  { %609 = vmatpush.bf16.msra.mxu2 %v1133_v26  ;;  %v935_v26 = vor.u32 %v1167_v21, %v934_v20  ;;  %v971_v51 = vor.u32 %v1173_v46, %v968_v47  ;;  %v1179_v57 = vld [vmem:[%s1609_s0 + $0xf4] sm:$0xf0]  ;;  %v1177_v58 = vld [vmem:[%s1609_s0 + $0xec] sm:$0xf]  ;;  %v984_v59 = vld [vmem:[%s1609_s0 + $0xf8] sm:$0xf0] }
  0x1d   :  { %658 = vmatpush.bf16.msra.mxu3 %v1141_v27  ;;  %v939_v27 = vor.u32 %v1165_v22, %v936_v23  ;;  %v983_v62 = vor.u32 %v1179_v57, %v982_v56  ;;  %v987_v63 = vor.u32 %v1177_v58, %v984_v59 }
  0x1e   :  { %512 = vmatpush.bf16.msra.mxu0 %v1116_v28  ;;  %v942_v28 = vld [vmem:[%s1609_s0 + $0xa0] sm:$0xf] }
  0x1f   :  { %561 = vmatpush.bf16.msra.mxu1 %v1124_v29  ;;  %v1170_v29 = vld [vmem:[%s1609_s0 + $0xac] sm:$0xf0] }
  0x20   :  { %610 = vmatpush.bf16.msra.mxu2 %v1132_v30  ;;  %v1168_v30 = vld [vmem:[%s1609_s0 + $0xa4] sm:$0xf]  ;;  %v943_v36 = vor.u32 %v1170_v29, %v942_v28 }
  0x21   :  { %659 = vmatpush.bf16.msra.mxu3 %v1140_v31  ;;  %513 = vmatmul.bf16.vlgmr.msra.gmra.mxu0 %v863_v40  ;;  %v944_v31 = vld [vmem:[%s1609_s0 + $0xb0] sm:$0xf0]  ;;  %v958_v40 = vld [vmem:[%s1609_s0 + $0xc0] sm:$0xf] }
  0x22   :  { %562 = vmatmul.bf16.vlgmr.msra.gmra.mxu1 %v867_v41  ;;  %v947_v37 = vor.u32 %v1168_v30, %v944_v31  ;;  %v1174_v41 = vld [vmem:[%s1609_s0 + $0xcc] sm:$0xf0] }
  0x23   :  { %611 = vmatmul.bf16.vlgmr.msra.gmra.mxu2 %v871_v42  ;;  %v1172_v42 = vld [vmem:[%s1609_s0 + $0xc4] sm:$0xf]  ;;  %v959_v48 = vor.u32 %v1174_v41, %v958_v40 }
  0x24   :  { %660 = vmatmul.bf16.vlgmr.msra.gmra.mxu3 %v875_v43  ;;  %v960_v43 = vld [vmem:[%s1609_s0 + $0xd0] sm:$0xf0] }
  0x25   :  { %v963_v49 = vor.u32 %v1172_v42, %v960_v43 }
  0x31   :  { %518 = vmatmul.bf16.gmra.mxu0 %v879_v52  ;;  %v974_v52 = vld [vmem:[%s1609_s0 + $0xe0] sm:$0xf] }
  0x32   :  { %567 = vmatmul.bf16.gmra.mxu1 %v883_v53  ;;  %v1178_v53 = vld [vmem:[%s1609_s0 + $0xec] sm:$0xf0] }
  0x33   :  { %616 = vmatmul.bf16.gmra.mxu2 %v887_v54  ;;  %v1176_v54 = vld [vmem:[%s1609_s0 + $0xe4] sm:$0xf]  ;;  %v975_v60 = vor.u32 %v1178_v53, %v974_v52 }
  0x34   :  { %665 = vmatmul.bf16.gmra.mxu3 %v891_v55  ;;  %v976_v55 = vld [vmem:[%s1609_s0 + $0xf0] sm:$0xf0] }
  0x35   :  { %v979_v61 = vor.u32 %v1176_v54, %v976_v55 }
  0x41   :  { %523 = vmatmul.bf16.gmra.mxu0 %v895_v0 }
  0x42   :  { %572 = vmatmul.bf16.gmra.mxu1 %v899_v1 }
  0x43   :  { %621 = vmatmul.bf16.gmra.mxu2 %v903_v2 }
  0x44   :  { %670 = vmatmul.bf16.gmra.mxu3 %v907_v3 }
  0x51   :  { %528 = vmatmul.bf16.gmra.mxu0 %v911_v12 }
  0x52   :  { %577 = vmatmul.bf16.gmra.mxu1 %v915_v13 }
  0x53   :  { %626 = vmatmul.bf16.gmra.mxu2 %v919_v14 }
  0x54   :  { %675 = vmatmul.bf16.gmra.mxu3 %v923_v15 }
  0x61   :  { %533 = vmatmul.bf16.gmra.mxu0 %v927_v24 }
  0x62   :  { %582 = vmatmul.bf16.gmra.mxu1 %v931_v25 }
  0x63   :  { %631 = vmatmul.bf16.gmra.mxu2 %v935_v26 }
  0x64   :  { %680 = vmatmul.bf16.gmra.mxu3 %v939_v27 }
  0x71   :  { %538 = vmatmul.bf16.gmra.mxu0 %v943_v36 }
  0x72   :  { %587 = vmatmul.bf16.gmra.mxu1 %v947_v37 }
  0x73   :  { %636 = vmatmul.bf16.gmra.mxu2 %v951_v38 }
  0x74   :  { %685 = vmatmul.bf16.gmra.mxu3 %v955_v39 }
  0x81   :  { %543 = vmatmul.bf16.gmra.mxu0 %v959_v48 }
  0x82   :  { %592 = vmatmul.bf16.gmra.mxu1 %v963_v49 }
  0x83   :  { %641 = vmatmul.bf16.gmra.mxu2 %v967_v50 }
  0x84   :  { %690 = vmatmul.bf16.gmra.mxu3 %v971_v51 }
  0x91   :  { %548 = vmatmul.bf16.gmra.mxu0 %v975_v60 }
  0x92   :  { %597 = vmatmul.bf16.gmra.mxu1 %v979_v61 }
  0x93   :  { %646 = vmatmul.bf16.gmra.mxu2 %v983_v62 }
  0x94   :  { %695 = vmatmul.bf16.gmra.mxu3 %v987_v63 }
  0x9e   :  { %v514_v0 = vpop.f32.mrf.mxu0 }
  0x9f   :  { %v563_v1 = vpop.f32.mrf.mxu1 }
  0xa0   :  { %v564_v2 = vadd.f32 %v563_v1, %v514_v0 }
  0xa6   :  { %v612_v3 = vpop.f32.mrf.mxu2  ;;  %v516_v5 = vpop.f32.mrf.mxu0 }
  0xa7   :  { %v661_v4 = vpop.f32.mrf.mxu3  ;;  %v565_v6 = vpop.f32.mrf.mxu1  ;;  %v613_v7 = vadd.f32 %v612_v3, %v564_v2 }
  0xa8   :  { %v566_v8 = vadd.f32 %v565_v6, %v516_v5 }
  0xa9   :  { %v662_v9 = vadd.f32 %v661_v4, %v613_v7 }
  0xab   :  { %v777_v16 = vmul.f32 %v662_v9, %v662_v9 }
  0xae   :  { %v614_v10 = vpop.f32.mrf.mxu2  ;;  %v519_v13 = vpop.f32.mrf.mxu0 }
  0xaf   :  { %v663_v11 = vpop.f32.mrf.mxu3  ;;  %v615_v12 = vadd.f32 %v614_v10, %v566_v8  ;;  %v568_v14 = vpop.f32.mrf.mxu1 }
  0xb0   :  { %v569_v20 = vadd.f32 %v568_v14, %v519_v13 }
  0xb1   :  { %v664_v15 = vadd.f32 %v663_v11, %v615_v12 }
  0xb3   :  { %v753_v17 = vadd.f32 %v664_v15, %v662_v9  ;;  %v778_v18 = vmul.f32 %v664_v15, %v664_v15  ;;  %v1183_v19 = vpack.c.bf16 %v664_v15, %v662_v9 }
  0xb5   :  { %v793_v21 = vadd.f32 %v778_v18, %v777_v16  ;;  %1184 = vst [vmem:[%s1610_s2] sm:$0xff] %v1183_v19  }
  0xb6   :  { %v617_v22 = vpop.f32.mrf.mxu2  ;;  %v521_v25 = vpop.f32.mrf.mxu0 }
  0xb7   :  { %v666_v23 = vpop.f32.mrf.mxu3  ;;  %v618_v24 = vadd.f32 %v617_v22, %v569_v20  ;;  %v570_v26 = vpop.f32.mrf.mxu1 }
  0xb8   :  { %v571_v31 = vadd.f32 %v570_v26, %v521_v25 }
  0xb9   :  { %v667_v27 = vadd.f32 %v666_v23, %v618_v24 }
  0xbb   :  { %v754_v28 = vadd.f32 %v753_v17, %v667_v27  ;;  %v779_v29 = vmul.f32 %v667_v27, %v667_v27 }
  0xbd   :  { %v794_v30 = vadd.f32 %v793_v21, %v779_v29 }
  0xbe   :  { %v619_v32 = vpop.f32.mrf.mxu2  ;;  %v524_v35 = vpop.f32.mrf.mxu0 }
  0xbf   :  { %v668_v33 = vpop.f32.mrf.mxu3  ;;  %v620_v34 = vadd.f32 %v619_v32, %v571_v31  ;;  %v573_v36 = vpop.f32.mrf.mxu1 }
  0xc0   :  { %v574_v46 = vadd.f32 %v573_v36, %v524_v35  ;;  %v1228_v35 = vmov 0.0  }
  0xc1   :  { %v669_v37 = vadd.f32 %v668_v33, %v620_v34  ;;  %39 = vst [vmem:[%s1611_s3] sm:$0x1] %v1228_v35 }
  0xc2   :  { %40 = vst [vmem:[%s1612_s4] sm:$0x1] %v1228_v35 }
  0xc3   :  { %v1545_v38 = vadd.f32 %v754_v28, %v669_v37  ;;  %v780_v39 = vmul.f32 %v669_v37, %v669_v37  ;;  %v1188_v40 = vpack.c.bf16 %v669_v37, %v667_v27 }
  0xc5   :  { %v1547_v41 = vadd.f32 %v794_v30, %v780_v39  ;;  %1220 = vst [vmem:[%s1610_s2 + $0x8] sm:$0xff] %v1188_v40  }
  0xc6   :  { %v622_v42 = vpop.f32.mrf.mxu2  ;;  %v526_v44 = vpop.f32.mrf.mxu0 }
  0xc7   :  { %v671_v43 = vpop.f32.mrf.mxu3  ;;  %v575_v45 = vpop.f32.mrf.mxu1  ;;  %v623_v47 = vadd.f32 %v622_v42, %v574_v46 }
  0xc8   :  { %v576_v48 = vadd.f32 %v575_v45, %v526_v44 }
  0xc9   :  { %v1552_v54 = vadd.f32 %v671_v43, %v623_v47 }
  0xcb   :  { %v781_v46 = vmul.f32 %v1552_v54, %v1552_v54 }
  0xce   :  { %v624_v49 = vpop.f32.mrf.mxu2  ;;  %v529_v52 = vpop.f32.mrf.mxu0 }
  0xcf   :  { %v673_v50 = vpop.f32.mrf.mxu3  ;;  %v625_v51 = vadd.f32 %v624_v49, %v576_v48  ;;  %v578_v53 = vpop.f32.mrf.mxu1  ;;  %v756_v48 = vadd.f32 %v1545_v38, %v1552_v54 }
  0xd0   :  { %v579_v61 = vadd.f32 %v578_v53, %v529_v52 }
  0xd1   :  { %v1554_v55 = vadd.f32 %v673_v50, %v625_v51  ;;  %v796_v51 = vadd.f32 %v1547_v41, %v781_v46 }
  0xd3   :  { %v1193_v56 = vpack.c.bf16 %v1554_v55, %v1552_v54  ;;  %v782_v47 = vmul.f32 %v1554_v55, %v1554_v55 }
  0xd5   :  { %1221 = vst [vmem:[%s1610_s2 + $0x10] sm:$0xff] %v1193_v56  }
  0xd6   :  { %v627_v57 = vpop.f32.mrf.mxu2  ;;  %v531_v59 = vpop.f32.mrf.mxu0 }
  0xd7   :  { %v676_v58 = vpop.f32.mrf.mxu3  ;;  %v580_v60 = vpop.f32.mrf.mxu1  ;;  %v628_v62 = vadd.f32 %v627_v57, %v579_v61  ;;  %v757_v57 = vadd.f32 %v756_v48, %v1554_v55 }
  0xd8   :  { %v581_v63 = vadd.f32 %v580_v60, %v531_v59  ;;  %v797_v59 = vadd.f32 %v796_v51, %v782_v47 }
  0xd9   :  { %v677_v5 = vadd.f32 %v676_v58, %v628_v62 }
  0xdb   :  { %v783_v52 = vmul.f32 %v677_v5, %v677_v5  ;;  %v758_v62 = vadd.f32 %v757_v57, %v677_v5 }
  0xdd   :  { %v798_v38 = vadd.f32 %v797_v59, %v783_v52 }
  0xde   :  { %v629_v0 = vpop.f32.mrf.mxu2  ;;  %v534_v3 = vpop.f32.mrf.mxu0 }
  0xdf   :  { %v678_v1 = vpop.f32.mrf.mxu3  ;;  %v630_v2 = vadd.f32 %v629_v0, %v581_v63  ;;  %v583_v4 = vpop.f32.mrf.mxu1 }
  0xe0   :  { %v584_v12 = vadd.f32 %v583_v4, %v534_v3 }
  0xe1   :  { %v1561_v6 = vadd.f32 %v678_v1, %v630_v2 }
  0xe3   :  { %v1198_v7 = vpack.c.bf16 %v1561_v6, %v677_v5  ;;  %v784_v63 = vmul.f32 %v1561_v6, %v1561_v6  ;;  %v759_v54 = vadd.f32 %v758_v62, %v1561_v6 }
  0xe5   :  { %1222 = vst [vmem:[%s1610_s2 + $0x18] sm:$0xff] %v1198_v7   ;;  %v799_v4 = vadd.f32 %v798_v38, %v784_v63 }
  0xe6   :  { %v632_v8 = vpop.f32.mrf.mxu2  ;;  %v536_v10 = vpop.f32.mrf.mxu0 }
  0xe7   :  { %v681_v9 = vpop.f32.mrf.mxu3  ;;  %v585_v11 = vpop.f32.mrf.mxu1  ;;  %v633_v13 = vadd.f32 %v632_v8, %v584_v12 }
  0xe8   :  { %v586_v14 = vadd.f32 %v585_v11, %v536_v10 }
  0xe9   :  { %v682_v20 = vadd.f32 %v681_v9, %v633_v13 }
  0xeb   :  { %v785_v2 = vmul.f32 %v682_v20, %v682_v20  ;;  %v760_v7 = vadd.f32 %v759_v54, %v682_v20 }
  0xed   :  { %v800_v9 = vadd.f32 %v799_v4, %v785_v2 }
  0xee   :  { %v634_v15 = vpop.f32.mrf.mxu2  ;;  %v539_v18 = vpop.f32.mrf.mxu0 }
  0xef   :  { %v683_v16 = vpop.f32.mrf.mxu3  ;;  %v635_v17 = vadd.f32 %v634_v15, %v586_v14  ;;  %v588_v19 = vpop.f32.mrf.mxu1 }
  0xf0   :  { %v589_v27 = vadd.f32 %v588_v19, %v539_v18 }
  0xf1   :  { %v684_v21 = vadd.f32 %v683_v16, %v635_v17 }
  0xf3   :  { %v1203_v22 = vpack.c.bf16 %v684_v21, %v682_v20  ;;  %v786_v8 = vmul.f32 %v684_v21, %v684_v21  ;;  %v761_v10 = vadd.f32 %v760_v7, %v684_v21 }
  0xf5   :  { %1223 = vst [vmem:[%s1610_s2 + $0x20] sm:$0xff] %v1203_v22   ;;  %v801_v13 = vadd.f32 %v800_v9, %v786_v8 }
  0xf6   :  { %v637_v23 = vpop.f32.mrf.mxu2  ;;  %v541_v25 = vpop.f32.mrf.mxu0 }
  0xf7   :  { %v686_v24 = vpop.f32.mrf.mxu3  ;;  %v590_v26 = vpop.f32.mrf.mxu1  ;;  %v638_v28 = vadd.f32 %v637_v23, %v589_v27 }
  0xf8   :  { %v591_v29 = vadd.f32 %v590_v26, %v541_v25 }
  0xf9   :  { %v687_v36 = vadd.f32 %v686_v24, %v638_v28 }
  0xfb   :  { %v787_v11 = vmul.f32 %v687_v36, %v687_v36  ;;  %v762_v14 = vadd.f32 %v761_v10, %v687_v36 }
  0xfd   :  { %v802_v17 = vadd.f32 %v801_v13, %v787_v11 }
  0xfe   :  { %v639_v30 = vpop.f32.mrf.mxu2  ;;  %v544_v33 = vpop.f32.mrf.mxu0 }
  0xff   :  { %v688_v31 = vpop.f32.mrf.mxu3  ;;  %v640_v32 = vadd.f32 %v639_v30, %v591_v29  ;;  %v593_v34 = vpop.f32.mrf.mxu1 }
 0x100   :  { %v594_v45 = vadd.f32 %v593_v34, %v544_v33 }
 0x101   :  { %v689_v37 = vadd.f32 %v688_v31, %v640_v32 }
 0x103   :  { %v1208_v39 = vpack.c.bf16 %v689_v37, %v687_v36  ;;  %v788_v15 = vmul.f32 %v689_v37, %v689_v37  ;;  %v763_v18 = vadd.f32 %v762_v14, %v689_v37 }
 0x105   :  { %1224 = vst [vmem:[%s1610_s2 + $0x28] sm:$0xff] %v1208_v39   ;;  %v803_v22 = vadd.f32 %v802_v17, %v788_v15 }
 0x106   :  { %v642_v40 = vpop.f32.mrf.mxu2  ;;  %v546_v43 = vpop.f32.mrf.mxu0 }
 0x107   :  { %v691_v42 = vpop.f32.mrf.mxu3  ;;  %v595_v44 = vpop.f32.mrf.mxu1  ;;  %v643_v49 = vadd.f32 %v642_v40, %v594_v45 }
 0x108   :  { %v596_v50 = vadd.f32 %v595_v44, %v546_v43 }
 0x109   :  { %v692_v0 = vadd.f32 %v691_v42, %v643_v49 }
 0x10b   :  { %v789_v19 = vmul.f32 %v692_v0, %v692_v0  ;;  %v764_v23 = vadd.f32 %v763_v18, %v692_v0 }
 0x10d   :  { %v804_v27 = vadd.f32 %v803_v22, %v789_v19 }
 0x10e   :  { %v644_v53 = vpop.f32.mrf.mxu2  ;;  %v549_v60 = vpop.f32.mrf.mxu0 }
 0x10f   :  { %v693_v56 = vpop.f32.mrf.mxu3  ;;  %v645_v58 = vadd.f32 %v644_v53, %v596_v50  ;;  %v598_v61 = vpop.f32.mrf.mxu1  ;;  %v752_v50 = vld [vmem:[%s1611_s3] sm:$0x1] }
 0x110   :  { %v599_v3 = vadd.f32 %v598_v61, %v549_v60  ;;  %v776_v53 = vld [vmem:[%s1612_s4] sm:$0x1] }
 0x111   :  { %v694_v1 = vadd.f32 %v693_v56, %v645_v58 }
 0x113   :  { %v1213_v41 = vpack.c.bf16 %v694_v1, %v692_v0  ;;  %v790_v24 = vmul.f32 %v694_v1, %v694_v1  ;;  %v765_v28 = vadd.f32 %v764_v23, %v694_v1 }
 0x115   :  { %1225 = vst [vmem:[%s1610_s2 + $0x30] sm:$0xff] %v1213_v41   ;;  %v805_v31 = vadd.f32 %v804_v27, %v790_v24 }
 0x116   :  { %v647_v55 = vpop.f32.mrf.mxu2  ;;  %v551_v6 = vpop.f32.mrf.mxu0 }
 0x117   :  { %v696_v5 = vpop.f32.mrf.mxu3  ;;  %v648_v12 = vadd.f32 %v647_v55, %v599_v3  ;;  %v600_v16 = vpop.f32.mrf.mxu1 }
 0x118   :  { %v601_v25 = vadd.f32 %v600_v16, %v551_v6 }
 0x119   :  { %v697_v20 = vadd.f32 %v696_v5, %v648_v12 }
 0x11b   :  { %v791_v29 = vmul.f32 %v697_v20, %v697_v20  ;;  %v766_v32 = vadd.f32 %v765_v28, %v697_v20 }
 0x11d   :  { %v806_v34 = vadd.f32 %v805_v31, %v791_v29 }
 0x11e   :  { %v649_v26 = vpop.f32.mrf.mxu2 }
 0x11f   :  { %v650_v21 = vadd.f32 %v649_v26, %v601_v25  ;;  %v698_v30 = vpop.f32.mrf.mxu3 }
 0x121   :  { %v699_v33 = vadd.f32 %v698_v30, %v650_v21 }
 0x123   :  { %v767_v35 = vadd.f32 %v766_v32, %v699_v33  ;;  %v792_v36 = vmul.f32 %v699_v33, %v699_v33  ;;  %v1218_v39 = vpack.c.bf16 %v699_v33, %v697_v20 }
 0x125   :  { %v768_v37 = vrot.slane %v767_v35, 4  ;;  %v807_v40 = vadd.f32 %v806_v34, %v792_v36  ;;  %1226 = vst [vmem:[%s1610_s2 + $0x38] sm:$0xff] %v1218_v39  }
 0x127   :  { %v769_v42 = vadd.f32 %v768_v37, %v767_v35  ;;  %v808_v43 = vrot.slane %v807_v40, 4 }
 0x129   :  { %v770_v44 = vrot.slane %v769_v42, 2  ;;  %v809_v45 = vadd.f32 %v808_v43, %v807_v40 }
 0x12b   :  { %v771_v46 = vadd.f32 %v770_v44, %v769_v42  ;;  %v810_v47 = vrot.slane %v809_v45, 2 }
 0x12d   :  { %v772_v48 = vrot.slane %v771_v46, 1  ;;  %v811_v49 = vadd.f32 %v810_v47, %v809_v45 }
 0x12f   :  { %v773_v51 = vadd.f32 %v772_v48, %v771_v46  ;;  %v812_v52 = vrot.slane %v811_v49, 1 }
 0x131   :  { %v774_v56 = vadd.f32 %v773_v51, %v752_v50  ;;  %v813_v57 = vadd.f32 %v812_v52, %v811_v49 }
 0x133   :  { %775 = vst [vmem:[%s1611_s3] sm:$0x1] %v774_v56  ;;  %v814_v58 = vadd.f32 %v813_v57, %v776_v53 }
 0x135   :  { %815 = vst [vmem:[%s1612_s4] sm:$0x1] %v814_v58 }

// kernel: _lambda_.24
= control target key start
LH: loop header
LB: loop body
LE: loop exit
PB: predicated region body
PF: predicated region fallthrough
CT: control target
= control target key end

     0   :  { %s418_s1 = inlined_call_operand.vmem [shape: f32[1,128], index: 1, kind: input, shape index: {}]   ;;  %s419_s2 = inlined_call_operand.vmem [shape: f32[1,128], index: 2, kind: input, shape index: {}]   ;;  %s420_s0 = inlined_call_operand.vmem [shape: bf16[128,128], index: 0, kind: input, shape index: {}]   ;;  %s421_s3 = inlined_call_operand.vmem [shape: f32[1,128], index: 3, kind: input, shape index: {}]   ;;  %s422_s4 = inlined_call_operand.vmem [shape: f32[1,128], index: 4, kind: input, shape index: {}]   ;;  %s423_s5 = inlined_call_operand.vmem [shape: bf16[128,128], index: 5, kind: output, shape index: {}]  }
   0x1   :  { %v20_v0 = vld [vmem:[%s418_s1] sm:$0x1]  ;;  %v268_v13 = vld [vmem:[%s420_s0 + $0x8] sm:$0xff]   ;;  %v269_v16 = vld [vmem:[%s420_s0 + $0x10] sm:$0xff]  }
   0x2   :  { %v22_v1 = vld [vmem:[%s419_s2] sm:$0x1]  ;;  %v21_v2 = vmul.f32 0.03125, %v20_v0  ;;  %v270_v17 = vld [vmem:[%s420_s0 + $0x18] sm:$0xff]   ;;  %v202_v22 = vunpack.c.l.bf16 %v268_v13  ;;  %v272_v23 = vld [vmem:[%s420_s0 + $0x28] sm:$0xff]   ;;  %v203_v25 = vunpack.c.h.bf16 %v268_v13  ;;  %v206_v26 = vunpack.c.l.bf16 %v269_v16 }
   0x3   :  { %v23_v3 = vmul.f32 0.03125, %v22_v1  ;;  %v197_v12 = vld [vmem:[%s420_s0] sm:$0xff]   ;;  %v207_v27 = vunpack.c.h.bf16 %v269_v16  ;;  %v273_v28 = vld [vmem:[%s420_s0 + $0x30] sm:$0xff]   ;;  %v347_v29 = vld [vmem:[%s420_s0 + $0x38] sm:$0xff]   ;;  %v210_v31 = vunpack.c.l.bf16 %v270_v17  ;;  %v211_v32 = vunpack.c.h.bf16 %v270_v17 }
   0x4   :  { %v24_v4 = vmul.f32 %v21_v2, %v21_v2  ;;  %v26_v14 = vld [vmem:[%s421_s3] sm:$0x1]  ;;  %v198_v20 = vunpack.c.l.bf16 %v197_v12  ;;  %v199_v21 = vunpack.c.h.bf16 %v197_v12  ;;  %v218_v37 = vunpack.c.l.bf16 %v272_v23 }
   0x5   :  { %v271_v18 = vld [vmem:[%s420_s0 + $0x20] sm:$0xff]   ;;  %v219_v38 = vunpack.c.h.bf16 %v272_v23  ;;  %v222_v39 = vunpack.c.l.bf16 %v273_v28  ;;  %v223_v40 = vunpack.c.h.bf16 %v273_v28  ;;  %v226_v41 = vunpack.c.l.bf16 %v347_v29 }
   0x6   :  { %v25_v5 = vsub.f32 %v23_v3, %v24_v4  ;;  %v39_v30 = vld [vmem:[%s422_s4] sm:$0x1]  ;;  %v214_v33 = vunpack.c.l.bf16 %v271_v18  ;;  %v215_v34 = vunpack.c.h.bf16 %v271_v18  ;;  %v227_v42 = vunpack.c.h.bf16 %v347_v29 }
   0x8   :  { %v27_v6 = vadd.f32 1e-05, %v25_v5 }
   0xa   :  { %282 = vrsqrt.f32 %v27_v6  ;;  %vm34_vm0 = vweird.f32 %v27_v6 }
  0x10   :  { %v283_v7 = vpop.eup %282 }
  0x11   :  { %v29_v8 = vmul.f32 %v283_v7, %v27_v6  ;;  %vm35_vm1 = vweird.f32 %v283_v7 }
  0x12   :  { %vm36_vm2 = vmor %vm34_vm0, %vm35_vm1 }
  0x13   :  { %v30_v9 = vmul.f32 %v283_v7, %v29_v8 }
  0x15   :  { %v31_v10 = vmul.f32 0.5, %v30_v9 }
  0x17   :  { %v32_v11 = vsub.f32 1.5, %v31_v10 }
  0x19   :  { %v33_v15 = vmul.f32 %v283_v7, %v32_v11 }
  0x1b   :  { %v37_v19 = vsel %vm36_vm2, %v283_v7, %v33_v15 }
  0x1c   :  { %v38_v24 = vmul.f32 %v37_v19, %v26_v14 }
  0x1e   :  { %v40_v35 = vmul.f32 %v38_v24, %v21_v2  ;;  %v352_v36 = vperm.slane %v38_v24, 0 }
  0x20   :  { %v41_v43 = vsub.f32 %v39_v30, %v40_v35  ;;  %v77_v44 = vmul.f32 %v198_v20, %v352_v36  ;;  %v78_v45 = vmul.f32 %v199_v21, %v352_v36  ;;  %v79_v46 = vmul.f32 %v202_v22, %v352_v36 }
  0x21   :  { %v80_v47 = vmul.f32 %v203_v25, %v352_v36  ;;  %v81_v48 = vmul.f32 %v206_v26, %v352_v36  ;;  %v82_v49 = vmul.f32 %v207_v27, %v352_v36  ;;  %v83_v50 = vmul.f32 %v210_v31, %v352_v36 }
  0x22   :  { %v363_v51 = vperm.slane %v41_v43, 0  ;;  %v84_v52 = vmul.f32 %v211_v32, %v352_v36  ;;  %v85_v53 = vmul.f32 %v214_v33, %v352_v36  ;;  %v86_v54 = vmul.f32 %v215_v34, %v352_v36 }
  0x23   :  { %v87_v55 = vmul.f32 %v218_v37, %v352_v36  ;;  %v88_v56 = vmul.f32 %v219_v38, %v352_v36  ;;  %v89_v57 = vmul.f32 %v222_v39, %v352_v36  ;;  %v90_v58 = vmul.f32 %v223_v40, %v352_v36 }
  0x24   :  { %v96_v59 = vadd.f32 %v363_v51, %v77_v44  ;;  %v97_v60 = vadd.f32 %v363_v51, %v78_v45  ;;  %v98_v61 = vadd.f32 %v363_v51, %v79_v46  ;;  %v99_v62 = vadd.f32 %v363_v51, %v80_v47 }
  0x25   :  { %v100_v63 = vadd.f32 %v363_v51, %v81_v48  ;;  %v101_v0 = vadd.f32 %v363_v51, %v82_v49  ;;  %v102_v1 = vadd.f32 %v363_v51, %v83_v50  ;;  %v103_v2 = vadd.f32 %v363_v51, %v84_v52 }
  0x26   :  { %vm112_vm3 = vcmp.ge.f32.partialorder %v96_v59, 0.0  ;;  %vm113_vm4 = vcmp.ge.f32.partialorder %v97_v60, 0.0  ;;  %v128_v3 = vmul.f32 0.2, %v96_v59  ;;  %v129_v4 = vmul.f32 0.2, %v97_v60 }
  0x27   :  { %vm114_vm5 = vcmp.ge.f32.partialorder %v98_v61, 0.0  ;;  %vm115_vm6 = vcmp.ge.f32.partialorder %v99_v62, 0.0  ;;  %v130_v5 = vmul.f32 0.2, %v98_v61  ;;  %v131_v6 = vmul.f32 0.2, %v99_v62 }
  0x28   :  { %v144_v7 = vsel %vm112_vm3, %v96_v59, %v128_v3  ;;  %v145_v8 = vsel %vm113_vm4, %v97_v60, %v129_v4  ;;  %vm116_vm7 = vcmp.ge.f32.partialorder %v100_v63, 0.0  ;;  %vm117_vm8 = vcmp.ge.f32.partialorder %v101_v0, 0.0 }
  0x29   :  { %v231_v9 = vpack.c.bf16 %v145_v8, %v144_v7  ;;  %v146_v10 = vsel %vm114_vm5, %v98_v61, %v130_v5  ;;  %v147_v11 = vsel %vm115_vm6, %v99_v62, %v131_v6  ;;  %v132_v12 = vmul.f32 0.2, %v100_v63 }
  0x2a   :  { %v236_v13 = vpack.c.bf16 %v147_v11, %v146_v10  ;;  %v133_v14 = vmul.f32 0.2, %v101_v0  ;;  %vm118_vm9 = vcmp.ge.f32.partialorder %v102_v1, 0.0  ;;  %vm119_vm10 = vcmp.ge.f32.partialorder %v103_v2, 0.0 }
  0x2b   :  { %232 = vst [vmem:[%s423_s5] sm:$0xff] %v231_v9   ;;  %v148_v15 = vsel %vm116_vm7, %v100_v63, %v132_v12  ;;  %v134_v16 = vmul.f32 0.2, %v102_v1  ;;  %v135_v17 = vmul.f32 0.2, %v103_v2  ;;  %v104_v18 = vadd.f32 %v363_v51, %v85_v53 }
  0x2c   :  { %275 = vst [vmem:[%s423_s5 + $0x8] sm:$0xff] %v236_v13   ;;  %v149_v19 = vsel %vm117_vm8, %v101_v0, %v133_v14  ;;  %v105_v20 = vadd.f32 %v363_v51, %v86_v54  ;;  %v106_v21 = vadd.f32 %v363_v51, %v87_v55  ;;  %v107_v22 = vadd.f32 %v363_v51, %v88_v56 }
  0x2d   :  { %v241_v23 = vpack.c.bf16 %v149_v19, %v148_v15  ;;  %v150_v24 = vsel %vm118_vm9, %v102_v1, %v134_v16  ;;  %v151_v25 = vsel %vm119_vm10, %v103_v2, %v135_v17  ;;  %vm120_vm11 = vcmp.ge.f32.partialorder %v104_v18, 0.0 }
  0x2e   :  { %v246_v26 = vpack.c.bf16 %v151_v25, %v150_v24  ;;  %vm121_vm12 = vcmp.ge.f32.partialorder %v105_v20, 0.0  ;;  %v136_v27 = vmul.f32 0.2, %v104_v18  ;;  %v137_v28 = vmul.f32 0.2, %v105_v20 }
  0x2f   :  { %276 = vst [vmem:[%s423_s5 + $0x10] sm:$0xff] %v241_v23   ;;  %vm122_vm13 = vcmp.ge.f32.partialorder %v106_v21, 0.0  ;;  %vm123_vm14 = vcmp.ge.f32.partialorder %v107_v22, 0.0  ;;  %v138_v30 = vmul.f32 0.2, %v106_v21  ;;  %v108_v31 = vadd.f32 %v363_v51, %v89_v57 }
  0x30   :  { %277 = vst [vmem:[%s423_s5 + $0x18] sm:$0xff] %v246_v26   ;;  %v152_v32 = vsel %vm120_vm11, %v104_v18, %v136_v27  ;;  %v153_v33 = vsel %vm121_vm12, %v105_v20, %v137_v28  ;;  %v139_v34 = vmul.f32 0.2, %v107_v22  ;;  %v109_v35 = vadd.f32 %v363_v51, %v90_v58 }
  0x31   :  { %v251_v37 = vpack.c.bf16 %v153_v33, %v152_v32  ;;  %v154_v38 = vsel %vm122_vm13, %v106_v21, %v138_v30  ;;  %vm124_vm15 = vcmp.ge.f32.partialorder %v108_v31, 0.0  ;;  %v140_v39 = vmul.f32 0.2, %v108_v31 }
  0x32   :  { %v155_v40 = vsel %vm123_vm14, %v107_v22, %v139_v34  ;;  %vm125_vm0 = vcmp.ge.f32.partialorder %v109_v35, 0.0  ;;  %v141_v43 = vmul.f32 0.2, %v109_v35  ;;  %v91_v44 = vmul.f32 %v226_v41, %v352_v36 }
  0x33   :  { %278 = vst [vmem:[%s423_s5 + $0x20] sm:$0xff] %v251_v37   ;;  %v256_v45 = vpack.c.bf16 %v155_v40, %v154_v38  ;;  %v156_v46 = vsel %vm124_vm15, %v108_v31, %v140_v39  ;;  %v92_v47 = vmul.f32 %v227_v42, %v352_v36 }
  0x34   :  { %v157_v48 = vsel %vm125_vm0, %v109_v35, %v141_v43  ;;  %v110_v49 = vadd.f32 %v363_v51, %v91_v44 }
  0x35   :  { %279 = vst [vmem:[%s423_s5 + $0x28] sm:$0xff] %v256_v45   ;;  %v261_v50 = vpack.c.bf16 %v157_v48, %v156_v46  ;;  %v111_v41 = vadd.f32 %v363_v51, %v92_v47 }
  0x36   :  { %vm126_vm1 = vcmp.ge.f32.partialorder %v110_v49, 0.0  ;;  %v142_v52 = vmul.f32 0.2, %v110_v49 }
  0x37   :  { %280 = vst [vmem:[%s423_s5 + $0x30] sm:$0xff] %v261_v50   ;;  %vm127_vm2 = vcmp.ge.f32.partialorder %v111_v41, 0.0  ;;  %v143_v53 = vmul.f32 0.2, %v111_v41 }
  0x38   :  { %v158_v29 = vsel %vm126_vm1, %v110_v49, %v142_v52 }
  0x39   :  { %v159_v36 = vsel %vm127_vm2, %v111_v41, %v143_v53 }
  0x3a   :  { %v266_v42 = vpack.c.bf16 %v159_v36, %v158_v29 }
  0x3c   :  { %281 = vst [vmem:[%s423_s5 + $0x38] sm:$0xff] %v266_v42  }

// kernel: _lambda_.25
= control target key start
LH: loop header
LB: loop body
LE: loop exit
PB: predicated region body
PF: predicated region fallthrough
CT: control target
= control target key end

     0   :  { %s998_s1 = inlined_call_operand.vmem [shape: bf16[256,128], index: 1, kind: input, shape index: {}]   ;;  %s999_s0 = inlined_call_operand.vmem [shape: bf16[128,256], index: 0, kind: input, shape index: {}]   ;;  %s1000_s2 = inlined_call_operand.vmem [shape: bf16[128,128], index: 2, kind: output, shape index: {0}]   ;;  %s1001_s3 = inlined_call_operand.vmem [shape: f32[1,128], index: 3, kind: output, shape index: {1}]   ;;  %s1002_s4 = inlined_call_operand.vmem [shape: f32[1,128], index: 4, kind: output, shape index: {2}]  }
   0x1   :  { %v673_v0 = vld [vmem:[%s998_s1 + $0x38] sm:$0xff]  ;;  %v672_v2 = vld [vmem:[%s998_s1 + $0x30] sm:$0xff]  ;;  %v671_v4 = vld [vmem:[%s998_s1 + $0x28] sm:$0xff] }
   0x2   :  { %v681_v1 = vld [vmem:[%s998_s1 + $0x78] sm:$0xff]  ;;  %281 = vmatpush.bf16.msra.mxu0 %v673_v0  ;;  %v680_v3 = vld [vmem:[%s998_s1 + $0x70] sm:$0xff]  ;;  %745 = vmatpush.bf16.msra.mxu2 %v673_v0  ;;  %v679_v5 = vld [vmem:[%s998_s1 + $0x68] sm:$0xff] }
   0x3   :  { %330 = vmatpush.bf16.msra.mxu1 %v681_v1  ;;  %753 = vmatpush.bf16.msra.mxu3 %v681_v1  ;;  %v670_v6 = vld [vmem:[%s998_s1 + $0x20] sm:$0xff]  ;;  %v669_v8 = vld [vmem:[%s998_s1 + $0x18] sm:$0xff]  ;;  %v668_v10 = vld [vmem:[%s998_s1 + $0x10] sm:$0xff] }
   0x4   :  { %v678_v7 = vld [vmem:[%s998_s1 + $0x60] sm:$0xff]  ;;  %v677_v9 = vld [vmem:[%s998_s1 + $0x58] sm:$0xff]  ;;  %v676_v11 = vld [vmem:[%s998_s1 + $0x50] sm:$0xff] }
   0x5   :  { %v667_v12 = vld [vmem:[%s998_s1 + $0x8] sm:$0xff]  ;;  %v666_v14 = vld [vmem:[%s998_s1] sm:$0xff]  ;;  %v548_v28 = vld [vmem:[%s999_s0 + $0x10] sm:$0xf] }
   0x6   :  { %282 = vmatpush.bf16.msra.mxu0 %v672_v2  ;;  %746 = vmatpush.bf16.msra.mxu2 %v672_v2  ;;  %v675_v13 = vld [vmem:[%s998_s1 + $0x48] sm:$0xff]  ;;  %v674_v15 = vld [vmem:[%s998_s1 + $0x40] sm:$0xff]  ;;  %v685_v29 = vld [vmem:[%s999_s0 + $0x14] sm:$0xf0] }
   0x7   :  { %331 = vmatpush.bf16.msra.mxu1 %v680_v3  ;;  %754 = vmatpush.bf16.msra.mxu3 %v680_v3  ;;  %v540_v16 = vld [vmem:[%s999_s0] sm:$0xf]  ;;  %v683_v17 = vld [vmem:[%s999_s0 + $0x4] sm:$0xf0]  ;;  %v682_v18 = vld [vmem:[%s999_s0 + $0x4] sm:$0xf]  ;;  %v549_v36 = vor.u32 %v685_v29, %v548_v28 }
   0x8   :  { %v542_v19 = vld [vmem:[%s999_s0 + $0x8] sm:$0xf0]  ;;  %v572_v20 = vld [vmem:[%s999_s0 + $0x40] sm:$0xf]  ;;  %v691_v21 = vld [vmem:[%s999_s0 + $0x44] sm:$0xf0]  ;;  %v541_v24 = vor.u32 %v683_v17, %v540_v16 }
   0x9   :  { %v690_v22 = vld [vmem:[%s999_s0 + $0x44] sm:$0xf]  ;;  %v574_v23 = vld [vmem:[%s999_s0 + $0x48] sm:$0xf0]  ;;  %v545_v25 = vor.u32 %v682_v18, %v542_v19  ;;  %v573_v26 = vor.u32 %v691_v21, %v572_v20  ;;  %v684_v30 = vld [vmem:[%s999_s0 + $0x14] sm:$0xf] }
   0xa   :  { %283 = vmatpush.bf16.msra.mxu0 %v671_v4  ;;  %747 = vmatpush.bf16.msra.mxu2 %v671_v4  ;;  %v577_v27 = vor.u32 %v690_v22, %v574_v23  ;;  %v550_v31 = vld [vmem:[%s999_s0 + $0x18] sm:$0xf0]  ;;  %v580_v32 = vld [vmem:[%s999_s0 + $0x50] sm:$0xf]  ;;  %v693_v33 = vld [vmem:[%s999_s0 + $0x54] sm:$0xf0] }
   0xb   :  { %332 = vmatpush.bf16.msra.mxu1 %v679_v5  ;;  %755 = vmatpush.bf16.msra.mxu3 %v679_v5  ;;  %v692_v34 = vld [vmem:[%s999_s0 + $0x54] sm:$0xf]  ;;  %v582_v35 = vld [vmem:[%s999_s0 + $0x58] sm:$0xf0]  ;;  %v553_v37 = vor.u32 %v684_v30, %v550_v31  ;;  %v581_v38 = vor.u32 %v693_v33, %v580_v32  ;;  %v556_v40 = vld [vmem:[%s999_s0 + $0x20] sm:$0xf] }
   0xc   :  { %v585_v39 = vor.u32 %v692_v34, %v582_v35  ;;  %v687_v41 = vld [vmem:[%s999_s0 + $0x24] sm:$0xf0]  ;;  %v686_v42 = vld [vmem:[%s999_s0 + $0x24] sm:$0xf]  ;;  %v558_v43 = vld [vmem:[%s999_s0 + $0x28] sm:$0xf0] }
   0xd   :  { %v588_v44 = vld [vmem:[%s999_s0 + $0x60] sm:$0xf]  ;;  %v695_v45 = vld [vmem:[%s999_s0 + $0x64] sm:$0xf0]  ;;  %v694_v46 = vld [vmem:[%s999_s0 + $0x64] sm:$0xf]  ;;  %v557_v48 = vor.u32 %v687_v41, %v556_v40  ;;  %v561_v49 = vor.u32 %v686_v42, %v558_v43 }
   0xe   :  { %284 = vmatpush.bf16.msra.mxu0 %v670_v6  ;;  %748 = vmatpush.bf16.msra.mxu2 %v670_v6  ;;  %v590_v47 = vld [vmem:[%s999_s0 + $0x68] sm:$0xf0]  ;;  %v589_v50 = vor.u32 %v695_v45, %v588_v44  ;;  %v564_v52 = vld [vmem:[%s999_s0 + $0x30] sm:$0xf]  ;;  %v689_v53 = vld [vmem:[%s999_s0 + $0x34] sm:$0xf0] }
   0xf   :  { %333 = vmatpush.bf16.msra.mxu1 %v678_v7  ;;  %756 = vmatpush.bf16.msra.mxu3 %v678_v7  ;;  %v593_v51 = vor.u32 %v694_v46, %v590_v47  ;;  %v688_v54 = vld [vmem:[%s999_s0 + $0x34] sm:$0xf]  ;;  %v566_v55 = vld [vmem:[%s999_s0 + $0x38] sm:$0xf0]  ;;  %v596_v56 = vld [vmem:[%s999_s0 + $0x70] sm:$0xf]  ;;  %v565_v60 = vor.u32 %v689_v53, %v564_v52 }
  0x10   :  { %v697_v57 = vld [vmem:[%s999_s0 + $0x74] sm:$0xf0]  ;;  %v696_v58 = vld [vmem:[%s999_s0 + $0x74] sm:$0xf]  ;;  %v598_v59 = vld [vmem:[%s999_s0 + $0x78] sm:$0xf0]  ;;  %v569_v61 = vor.u32 %v688_v54, %v566_v55 }
  0x11   :  { %v597_v62 = vor.u32 %v697_v57, %v596_v56  ;;  %v601_v63 = vor.u32 %v696_v58, %v598_v59 }
  0x12   :  { %285 = vmatpush.bf16.msra.mxu0 %v669_v8  ;;  %749 = vmatpush.bf16.msra.mxu2 %v669_v8 }
  0x13   :  { %334 = vmatpush.bf16.msra.mxu1 %v677_v9  ;;  %757 = vmatpush.bf16.msra.mxu3 %v677_v9 }
  0x16   :  { %286 = vmatpush.bf16.msra.mxu0 %v668_v10  ;;  %750 = vmatpush.bf16.msra.mxu2 %v668_v10 }
  0x17   :  { %335 = vmatpush.bf16.msra.mxu1 %v676_v11  ;;  %758 = vmatpush.bf16.msra.mxu3 %v676_v11 }
  0x1a   :  { %287 = vmatpush.bf16.msra.mxu0 %v667_v12  ;;  %751 = vmatpush.bf16.msra.mxu2 %v667_v12 }
  0x1b   :  { %336 = vmatpush.bf16.msra.mxu1 %v675_v13  ;;  %759 = vmatpush.bf16.msra.mxu3 %v675_v13 }
  0x1e   :  { %288 = vmatpush.bf16.msra.mxu0 %v666_v14  ;;  %752 = vmatpush.bf16.msra.mxu2 %v666_v14 }
  0x1f   :  { %337 = vmatpush.bf16.msra.mxu1 %v674_v15  ;;  %760 = vmatpush.bf16.msra.mxu3 %v674_v15 }
  0x21   :  { %289 = vmatmul.bf16.vlgmr.msra.gmra.mxu0 %v541_v24  ;;  %309 = vmatmul.bf16.vlgmr.msra.gmra.mxu2 %v573_v26 }
  0x22   :  { %338 = vmatmul.bf16.vlgmr.msra.gmra.mxu1 %v545_v25  ;;  %358 = vmatmul.bf16.vlgmr.msra.gmra.mxu3 %v577_v27 }
  0x31   :  { %294 = vmatmul.bf16.gmra.mxu0 %v549_v36  ;;  %314 = vmatmul.bf16.gmra.mxu2 %v581_v38 }
  0x32   :  { %343 = vmatmul.bf16.gmra.mxu1 %v553_v37  ;;  %363 = vmatmul.bf16.gmra.mxu3 %v585_v39  ;;  %v762_v37 = vmov 0.0  }
  0x33   :  { %39 = vst [vmem:[%s1001_s3] sm:$0x1] %v762_v37 }
  0x34   :  { %40 = vst [vmem:[%s1002_s4] sm:$0x1] %v762_v37 }
  0x41   :  { %299 = vmatmul.bf16.gmra.mxu0 %v557_v48  ;;  %319 = vmatmul.bf16.gmra.mxu2 %v589_v50 }
  0x42   :  { %348 = vmatmul.bf16.gmra.mxu1 %v561_v49  ;;  %368 = vmatmul.bf16.gmra.mxu3 %v593_v51 }
  0x51   :  { %304 = vmatmul.bf16.gmra.mxu0 %v565_v60  ;;  %324 = vmatmul.bf16.gmra.mxu2 %v597_v62 }
  0x52   :  { %353 = vmatmul.bf16.gmra.mxu1 %v569_v61  ;;  %373 = vmatmul.bf16.gmra.mxu3 %v601_v63 }
  0x9e   :  { %v290_v0 = vpop.f32.mrf.mxu0 }
  0x9f   :  { %v339_v1 = vpop.f32.mrf.mxu1 }
  0xa0   :  { %v340_v6 = vadd.f32 %v339_v1, %v290_v0 }
  0xa2   :  { %v455_v40 = vmul.f32 %v340_v6, %v340_v6 }
  0xa4   :  { %v310_v2 = vpop.f32.mrf.mxu2 }
  0xa5   :  { %v359_v3 = vpop.f32.mrf.mxu3 }
  0xa6   :  { %v292_v4 = vpop.f32.mrf.mxu0  ;;  %v935_v9 = vadd.f32 %v359_v3, %v310_v2 }
  0xa7   :  { %v341_v5 = vpop.f32.mrf.mxu1 }
  0xa8   :  { %v342_v7 = vadd.f32 %v341_v5, %v292_v4 }
  0xaa   :  { %v701_v8 = vpack.c.bf16 %v342_v7, %v340_v6  ;;  %v456_v38 = vmul.f32 %v342_v7, %v342_v7  ;;  %v431_v41 = vadd.f32 %v342_v7, %v340_v6 }
  0xac   :  { %702 = vst [vmem:[%s1000_s2] sm:$0xff] %v701_v8   ;;  %v312_v10 = vpop.f32.mrf.mxu2  ;;  %v471_v48 = vadd.f32 %v456_v38, %v455_v40 }
  0xad   :  { %v361_v11 = vpop.f32.mrf.mxu3 }
  0xae   :  { %v295_v12 = vpop.f32.mrf.mxu0  ;;  %v937_v14 = vadd.f32 %v361_v11, %v312_v10  ;;  %v463_v10 = vmul.f32 %v935_v9, %v935_v9 }
  0xaf   :  { %v344_v13 = vpop.f32.mrf.mxu1 }
  0xb0   :  { %v721_v15 = vpack.c.bf16 %v937_v14, %v935_v9  ;;  %v345_v20 = vadd.f32 %v344_v13, %v295_v12 }
  0xb2   :  { %741 = vst [vmem:[%s1000_s2 + $0x20] sm:$0xff] %v721_v15   ;;  %v457_v42 = vmul.f32 %v345_v20, %v345_v20  ;;  %v432_v49 = vadd.f32 %v431_v41, %v345_v20  ;;  %v464_v15 = vmul.f32 %v937_v14, %v937_v14 }
  0xb4   :  { %v315_v16 = vpop.f32.mrf.mxu2  ;;  %v472_v52 = vadd.f32 %v471_v48, %v457_v42 }
  0xb5   :  { %v364_v17 = vpop.f32.mrf.mxu3 }
  0xb6   :  { %v297_v18 = vpop.f32.mrf.mxu0  ;;  %v947_v23 = vadd.f32 %v364_v17, %v315_v16 }
  0xb7   :  { %v346_v19 = vpop.f32.mrf.mxu1 }
  0xb8   :  { %v347_v21 = vadd.f32 %v346_v19, %v297_v18 }
  0xba   :  { %v706_v22 = vpack.c.bf16 %v347_v21, %v345_v20  ;;  %v458_v50 = vmul.f32 %v347_v21, %v347_v21  ;;  %v433_v53 = vadd.f32 %v432_v49, %v347_v21  ;;  %v465_v21 = vmul.f32 %v947_v23, %v947_v23 }
  0xbc   :  { %738 = vst [vmem:[%s1000_s2 + $0x8] sm:$0xff] %v706_v22   ;;  %v317_v24 = vpop.f32.mrf.mxu2  ;;  %v473_v56 = vadd.f32 %v472_v52, %v458_v50 }
  0xbd   :  { %v366_v25 = vpop.f32.mrf.mxu3 }
  0xbe   :  { %v300_v26 = vpop.f32.mrf.mxu0  ;;  %v949_v28 = vadd.f32 %v366_v25, %v317_v24 }
  0xbf   :  { %v349_v27 = vpop.f32.mrf.mxu1 }
  0xc0   :  { %v726_v29 = vpack.c.bf16 %v949_v28, %v947_v23  ;;  %v350_v34 = vadd.f32 %v349_v27, %v300_v26  ;;  %v466_v25 = vmul.f32 %v949_v28, %v949_v28 }
  0xc2   :  { %742 = vst [vmem:[%s1000_s2 + $0x28] sm:$0xff] %v726_v29   ;;  %v459_v54 = vmul.f32 %v350_v34, %v350_v34  ;;  %v434_v57 = vadd.f32 %v433_v53, %v350_v34 }
  0xc4   :  { %v320_v30 = vpop.f32.mrf.mxu2  ;;  %v474_v59 = vadd.f32 %v473_v56, %v459_v54 }
  0xc5   :  { %v369_v31 = vpop.f32.mrf.mxu3 }
  0xc6   :  { %v302_v32 = vpop.f32.mrf.mxu0  ;;  %v370_v39 = vadd.f32 %v369_v31, %v320_v30 }
  0xc7   :  { %v351_v33 = vpop.f32.mrf.mxu1 }
  0xc8   :  { %v352_v35 = vadd.f32 %v351_v33, %v302_v32 }
  0xca   :  { %v711_v36 = vpack.c.bf16 %v352_v35, %v350_v34  ;;  %v460_v58 = vmul.f32 %v352_v35, %v352_v35  ;;  %v435_v60 = vadd.f32 %v434_v57, %v352_v35 }
  0xcc   :  { %739 = vst [vmem:[%s1000_s2 + $0x10] sm:$0xff] %v711_v36   ;;  %v322_v43 = vpop.f32.mrf.mxu2  ;;  %v475_v2 = vadd.f32 %v474_v59, %v460_v58 }
  0xcd   :  { %v371_v44 = vpop.f32.mrf.mxu3 }
  0xce   :  { %v305_v45 = vpop.f32.mrf.mxu0  ;;  %v372_v47 = vadd.f32 %v371_v44, %v322_v43 }
  0xcf   :  { %v354_v46 = vpop.f32.mrf.mxu1 }
  0xd0   :  { %v731_v51 = vpack.c.bf16 %v372_v47, %v370_v39  ;;  %v355_v55 = vadd.f32 %v354_v46, %v305_v45  ;;  %v468_v31 = vmul.f32 %v372_v47, %v372_v47 }
  0xd2   :  { %743 = vst [vmem:[%s1000_s2 + $0x30] sm:$0xff] %v731_v51   ;;  %v461_v61 = vmul.f32 %v355_v55, %v355_v55  ;;  %v436_v3 = vadd.f32 %v435_v60, %v355_v55  ;;  %v454_v51 = vld [vmem:[%s1002_s4] sm:$0x1] }
  0xd4   :  { %v325_v62 = vpop.f32.mrf.mxu2  ;;  %v476_v5 = vadd.f32 %v475_v2, %v461_v61 }
  0xd5   :  { %v374_v63 = vpop.f32.mrf.mxu3 }
  0xd6   :  { %v307_v0 = vpop.f32.mrf.mxu0  ;;  %v375_v13 = vadd.f32 %v374_v63, %v325_v62 }
  0xd7   :  { %v356_v1 = vpop.f32.mrf.mxu1 }
  0xd8   :  { %v357_v4 = vadd.f32 %v356_v1, %v307_v0 }
  0xda   :  { %v437_v6 = vadd.f32 %v436_v3, %v357_v4  ;;  %v462_v7 = vmul.f32 %v357_v4, %v357_v4  ;;  %v716_v8 = vpack.c.bf16 %v357_v4, %v355_v55 }
  0xdc   :  { %v438_v11 = vadd.f32 %v437_v6, %v935_v9  ;;  %v477_v12 = vadd.f32 %v476_v5, %v462_v7  ;;  %740 = vst [vmem:[%s1000_s2 + $0x18] sm:$0xff] %v716_v8   ;;  %v327_v18 = vpop.f32.mrf.mxu2 }
  0xdd   :  { %v376_v19 = vpop.f32.mrf.mxu3 }
  0xde   :  { %v439_v16 = vadd.f32 %v438_v11, %v937_v14  ;;  %v478_v17 = vadd.f32 %v477_v12, %v463_v10  ;;  %v377_v20 = vadd.f32 %v376_v19, %v327_v18  ;;  %v467_v14 = vmul.f32 %v370_v39, %v370_v39 }
  0xe0   :  { %v440_v9 = vadd.f32 %v439_v16, %v947_v23  ;;  %v479_v22 = vadd.f32 %v478_v17, %v464_v15  ;;  %v736_v24 = vpack.c.bf16 %v377_v20, %v375_v13  ;;  %v469_v23 = vmul.f32 %v375_v13, %v375_v13 }
  0xe1   :  { %v470_v38 = vmul.f32 %v377_v20, %v377_v20 }
  0xe2   :  { %v480_v26 = vadd.f32 %v479_v22, %v465_v21  ;;  %v441_v27 = vadd.f32 %v440_v9, %v949_v28  ;;  %744 = vst [vmem:[%s1000_s2 + $0x38] sm:$0xff] %v736_v24  }
  0xe4   :  { %v442_v29 = vadd.f32 %v441_v27, %v370_v39  ;;  %v481_v30 = vadd.f32 %v480_v26, %v466_v25 }
  0xe6   :  { %v443_v32 = vadd.f32 %v442_v29, %v372_v47  ;;  %v482_v33 = vadd.f32 %v481_v30, %v467_v14  ;;  %v430_v47 = vld [vmem:[%s1001_s3] sm:$0x1] }
  0xe8   :  { %v444_v34 = vadd.f32 %v443_v32, %v375_v13  ;;  %v483_v35 = vadd.f32 %v482_v33, %v468_v31 }
  0xea   :  { %v484_v36 = vadd.f32 %v483_v35, %v469_v23  ;;  %v445_v37 = vadd.f32 %v444_v34, %v377_v20 }
  0xec   :  { %v446_v40 = vrot.slane %v445_v37, 4  ;;  %v485_v41 = vadd.f32 %v484_v36, %v470_v38 }
  0xee   :  { %v447_v42 = vadd.f32 %v446_v40, %v445_v37  ;;  %v486_v28 = vrot.slane %v485_v41, 4 }
  0xf0   :  { %v448_v43 = vrot.slane %v447_v42, 2  ;;  %v487_v44 = vadd.f32 %v486_v28, %v485_v41 }
  0xf2   :  { %v449_v45 = vadd.f32 %v448_v43, %v447_v42  ;;  %v488_v46 = vrot.slane %v487_v44, 2 }
  0xf4   :  { %v450_v48 = vrot.slane %v449_v45, 1  ;;  %v489_v39 = vadd.f32 %v488_v46, %v487_v44 }
  0xf6   :  { %v451_v49 = vadd.f32 %v450_v48, %v449_v45  ;;  %v490_v50 = vrot.slane %v489_v39, 1 }
  0xf8   :  { %v452_v52 = vadd.f32 %v451_v49, %v430_v47  ;;  %v491_v53 = vadd.f32 %v490_v50, %v489_v39 }
  0xfa   :  { %453 = vst [vmem:[%s1001_s3] sm:$0x1] %v452_v52  ;;  %v492_v54 = vadd.f32 %v491_v53, %v454_v51 }
  0xfc   :  { %493 = vst [vmem:[%s1002_s4] sm:$0x1] %v492_v54 }

// kernel: _lambda_.27
= control target key start
LH: loop header
LB: loop body
LE: loop exit
PB: predicated region body
PF: predicated region fallthrough
CT: control target
= control target key end

     0   :  { %s1031_s1 = inlined_call_operand.vmem [shape: bf16[256,128], index: 1, kind: input, shape index: {}]   ;;  %s1032_s0 = inlined_call_operand.vmem [shape: bf16[128,256], index: 0, kind: input, shape index: {}]   ;;  %s1033_s2 = inlined_call_operand.vmem [shape: f32[1,128], index: 2, kind: input, shape index: {}]   ;;  %s1034_s3 = inlined_call_operand.vmem [shape: bf16[128,128], index: 3, kind: input, shape index: {}]   ;;  %s1035_s4 = inlined_call_operand.vmem [shape: bf16[128,128], index: 4, kind: output, shape index: {}]  }
   0x1   :  { %v665_v0 = vld [vmem:[%s1031_s1 + $0x38] sm:$0xff]  ;;  %v664_v2 = vld [vmem:[%s1031_s1 + $0x30] sm:$0xff]  ;;  %v663_v4 = vld [vmem:[%s1031_s1 + $0x28] sm:$0xff] }
   0x2   :  { %v673_v1 = vld [vmem:[%s1031_s1 + $0x78] sm:$0xff]  ;;  %277 = vmatpush.bf16.msra.mxu0 %v665_v0  ;;  %776 = vmatpush.bf16.msra.mxu2 %v665_v0  ;;  %v672_v3 = vld [vmem:[%s1031_s1 + $0x70] sm:$0xff]  ;;  %v671_v5 = vld [vmem:[%s1031_s1 + $0x68] sm:$0xff] }
   0x3   :  { %326 = vmatpush.bf16.msra.mxu1 %v673_v1  ;;  %784 = vmatpush.bf16.msra.mxu3 %v673_v1  ;;  %v662_v6 = vld [vmem:[%s1031_s1 + $0x20] sm:$0xff]  ;;  %v661_v8 = vld [vmem:[%s1031_s1 + $0x18] sm:$0xff]  ;;  %v660_v10 = vld [vmem:[%s1031_s1 + $0x10] sm:$0xff] }
   0x4   :  { %v670_v7 = vld [vmem:[%s1031_s1 + $0x60] sm:$0xff]  ;;  %v669_v9 = vld [vmem:[%s1031_s1 + $0x58] sm:$0xff]  ;;  %v668_v11 = vld [vmem:[%s1031_s1 + $0x50] sm:$0xff] }
   0x5   :  { %v659_v12 = vld [vmem:[%s1031_s1 + $0x8] sm:$0xff]  ;;  %v658_v14 = vld [vmem:[%s1031_s1] sm:$0xff]  ;;  %v540_v28 = vld [vmem:[%s1032_s0 + $0x10] sm:$0xf] }
   0x6   :  { %278 = vmatpush.bf16.msra.mxu0 %v664_v2  ;;  %777 = vmatpush.bf16.msra.mxu2 %v664_v2  ;;  %v667_v13 = vld [vmem:[%s1031_s1 + $0x48] sm:$0xff]  ;;  %v666_v15 = vld [vmem:[%s1031_s1 + $0x40] sm:$0xff]  ;;  %v677_v29 = vld [vmem:[%s1032_s0 + $0x14] sm:$0xf0] }
   0x7   :  { %327 = vmatpush.bf16.msra.mxu1 %v672_v3  ;;  %785 = vmatpush.bf16.msra.mxu3 %v672_v3  ;;  %v532_v16 = vld [vmem:[%s1032_s0] sm:$0xf]  ;;  %v675_v17 = vld [vmem:[%s1032_s0 + $0x4] sm:$0xf0]  ;;  %v674_v20 = vld [vmem:[%s1032_s0 + $0x4] sm:$0xf]  ;;  %v541_v36 = vor.u32 %v677_v29, %v540_v28 }
   0x8   :  { %v564_v18 = vld [vmem:[%s1032_s0 + $0x40] sm:$0xf]  ;;  %v683_v19 = vld [vmem:[%s1032_s0 + $0x44] sm:$0xf0]  ;;  %v534_v21 = vld [vmem:[%s1032_s0 + $0x8] sm:$0xf0]  ;;  %v533_v24 = vor.u32 %v675_v17, %v532_v16 }
   0x9   :  { %v682_v22 = vld [vmem:[%s1032_s0 + $0x44] sm:$0xf]  ;;  %v566_v23 = vld [vmem:[%s1032_s0 + $0x48] sm:$0xf0]  ;;  %v565_v25 = vor.u32 %v683_v19, %v564_v18  ;;  %v537_v26 = vor.u32 %v674_v20, %v534_v21  ;;  %v572_v30 = vld [vmem:[%s1032_s0 + $0x50] sm:$0xf] }
   0xa   :  { %279 = vmatpush.bf16.msra.mxu0 %v663_v4  ;;  %778 = vmatpush.bf16.msra.mxu2 %v663_v4  ;;  %v569_v27 = vor.u32 %v682_v22, %v566_v23  ;;  %v685_v31 = vld [vmem:[%s1032_s0 + $0x54] sm:$0xf0]  ;;  %v676_v32 = vld [vmem:[%s1032_s0 + $0x14] sm:$0xf]  ;;  %v542_v33 = vld [vmem:[%s1032_s0 + $0x18] sm:$0xf0] }
   0xb   :  { %328 = vmatpush.bf16.msra.mxu1 %v671_v5  ;;  %786 = vmatpush.bf16.msra.mxu3 %v671_v5  ;;  %v684_v34 = vld [vmem:[%s1032_s0 + $0x54] sm:$0xf]  ;;  %v574_v35 = vld [vmem:[%s1032_s0 + $0x58] sm:$0xf0]  ;;  %v573_v37 = vor.u32 %v685_v31, %v572_v30  ;;  %v545_v38 = vor.u32 %v676_v32, %v542_v33  ;;  %v548_v40 = vld [vmem:[%s1032_s0 + $0x20] sm:$0xf] }
   0xc   :  { %v577_v39 = vor.u32 %v684_v34, %v574_v35  ;;  %v679_v41 = vld [vmem:[%s1032_s0 + $0x24] sm:$0xf0]  ;;  %v580_v42 = vld [vmem:[%s1032_s0 + $0x60] sm:$0xf]  ;;  %v678_v44 = vld [vmem:[%s1032_s0 + $0x24] sm:$0xf] }
   0xd   :  { %v687_v43 = vld [vmem:[%s1032_s0 + $0x64] sm:$0xf0]  ;;  %v550_v45 = vld [vmem:[%s1032_s0 + $0x28] sm:$0xf0]  ;;  %v686_v46 = vld [vmem:[%s1032_s0 + $0x64] sm:$0xf]  ;;  %v549_v48 = vor.u32 %v679_v41, %v548_v40 }
   0xe   :  { %280 = vmatpush.bf16.msra.mxu0 %v662_v6  ;;  %779 = vmatpush.bf16.msra.mxu2 %v662_v6  ;;  %v582_v47 = vld [vmem:[%s1032_s0 + $0x68] sm:$0xf0]  ;;  %v581_v49 = vor.u32 %v687_v43, %v580_v42  ;;  %v553_v50 = vor.u32 %v678_v44, %v550_v45  ;;  %v556_v52 = vld [vmem:[%s1032_s0 + $0x30] sm:$0xf]  ;;  %v681_v53 = vld [vmem:[%s1032_s0 + $0x34] sm:$0xf0] }
   0xf   :  { %329 = vmatpush.bf16.msra.mxu1 %v670_v7  ;;  %787 = vmatpush.bf16.msra.mxu3 %v670_v7  ;;  %v585_v51 = vor.u32 %v686_v46, %v582_v47  ;;  %v588_v54 = vld [vmem:[%s1032_s0 + $0x70] sm:$0xf]  ;;  %v689_v55 = vld [vmem:[%s1032_s0 + $0x74] sm:$0xf0]  ;;  %v680_v56 = vld [vmem:[%s1032_s0 + $0x34] sm:$0xf]  ;;  %v557_v60 = vor.u32 %v681_v53, %v556_v52 }
  0x10   :  { %v558_v57 = vld [vmem:[%s1032_s0 + $0x38] sm:$0xf0]  ;;  %v688_v58 = vld [vmem:[%s1032_s0 + $0x74] sm:$0xf]  ;;  %v589_v61 = vor.u32 %v689_v55, %v588_v54  ;;  %v965_v3 = vld [vmem:[%s1033_s2] ss:$0 sm:$0xff] }
  0x11   :  { %v590_v59 = vld [vmem:[%s1032_s0 + $0x78] sm:$0xf0]  ;;  %v561_v62 = vor.u32 %v680_v56, %v558_v57  ;;  %v691_v5 = vld [vmem:[%s1034_s3] sm:$0xff]   ;;  %v762_v33 = vld [vmem:[%s1034_s3 + $0x8] sm:$0xff]  }
  0x12   :  { %281 = vmatpush.bf16.msra.mxu0 %v661_v8  ;;  %780 = vmatpush.bf16.msra.mxu2 %v661_v8  ;;  %v593_v63 = vor.u32 %v688_v58, %v590_v59  ;;  %v697_v40 = vunpack.c.h.bf16 %v762_v33  ;;  %v766_v42 = vld [vmem:[%s1034_s3 + $0x28] sm:$0xff]  }
  0x13   :  { %330 = vmatpush.bf16.msra.mxu1 %v669_v9  ;;  %788 = vmatpush.bf16.msra.mxu3 %v669_v9  ;;  %v712_v47 = vunpack.c.l.bf16 %v766_v42  ;;  %v713_v52 = vunpack.c.h.bf16 %v766_v42 }
  0x16   :  { %282 = vmatpush.bf16.msra.mxu0 %v660_v10  ;;  %781 = vmatpush.bf16.msra.mxu2 %v660_v10  ;;  %v692_v10 = vunpack.c.l.bf16 %v691_v5 }
  0x17   :  { %331 = vmatpush.bf16.msra.mxu1 %v668_v11  ;;  %789 = vmatpush.bf16.msra.mxu3 %v668_v11 }
  0x1a   :  { %283 = vmatpush.bf16.msra.mxu0 %v659_v12  ;;  %782 = vmatpush.bf16.msra.mxu2 %v659_v12  ;;  %v693_v12 = vunpack.c.h.bf16 %v691_v5 }
  0x1b   :  { %332 = vmatpush.bf16.msra.mxu1 %v667_v13  ;;  %790 = vmatpush.bf16.msra.mxu3 %v667_v13 }
  0x1e   :  { %284 = vmatpush.bf16.msra.mxu0 %v658_v14  ;;  %783 = vmatpush.bf16.msra.mxu2 %v658_v14  ;;  %v765_v14 = vld [vmem:[%s1034_s3 + $0x20] sm:$0xff]  }
  0x1f   :  { %333 = vmatpush.bf16.msra.mxu1 %v666_v15  ;;  %791 = vmatpush.bf16.msra.mxu3 %v666_v15  ;;  %v708_v19 = vunpack.c.l.bf16 %v765_v14 }
  0x21   :  { %285 = vmatmul.bf16.vlgmr.msra.gmra.mxu0 %v533_v24  ;;  %305 = vmatmul.bf16.vlgmr.msra.gmra.mxu2 %v565_v25  ;;  %v709_v24 = vunpack.c.h.bf16 %v765_v14 }
  0x22   :  { %334 = vmatmul.bf16.vlgmr.msra.gmra.mxu1 %v537_v26  ;;  %354 = vmatmul.bf16.vlgmr.msra.gmra.mxu3 %v569_v27 }
  0x31   :  { %290 = vmatmul.bf16.gmra.mxu0 %v541_v36  ;;  %310 = vmatmul.bf16.gmra.mxu2 %v573_v37 }
  0x32   :  { %339 = vmatmul.bf16.gmra.mxu1 %v545_v38  ;;  %359 = vmatmul.bf16.gmra.mxu3 %v577_v39  ;;  %v696_v38 = vunpack.c.l.bf16 %v762_v33 }
  0x41   :  { %295 = vmatmul.bf16.gmra.mxu0 %v549_v48  ;;  %315 = vmatmul.bf16.gmra.mxu2 %v581_v49 }
  0x42   :  { %344 = vmatmul.bf16.gmra.mxu1 %v553_v50  ;;  %364 = vmatmul.bf16.gmra.mxu3 %v585_v51 }
  0x51   :  { %300 = vmatmul.bf16.gmra.mxu0 %v557_v60  ;;  %320 = vmatmul.bf16.gmra.mxu2 %v589_v61  ;;  %v763_v61 = vld [vmem:[%s1034_s3 + $0x10] sm:$0xff]  }
  0x52   :  { %349 = vmatmul.bf16.gmra.mxu1 %v561_v62  ;;  %369 = vmatmul.bf16.gmra.mxu3 %v593_v63  ;;  %v701_v5 = vunpack.c.h.bf16 %v763_v61 }
  0x9e   :  { %v286_v0 = vpop.f32.mrf.mxu0 }
  0x9f   :  { %v335_v1 = vpop.f32.mrf.mxu1 }
  0xa0   :  { %v336_v2 = vadd.f32 %v335_v1, %v286_v0 }
  0xa2   :  { %v430_v9 = vadd.f32 %v965_v3, %v336_v2  ;;  %v700_v2 = vunpack.c.l.bf16 %v763_v61 }
  0xa4   :  { %v306_v4 = vpop.f32.mrf.mxu2  ;;  %v478_v16 = vadd.f32 %v692_v10, %v430_v9 }
  0xa5   :  { %v355_v6 = vpop.f32.mrf.mxu3 }
  0xa6   :  { %v288_v7 = vpop.f32.mrf.mxu0  ;;  %v356_v13 = vadd.f32 %v355_v6, %v306_v4 }
  0xa7   :  { %v337_v8 = vpop.f32.mrf.mxu1 }
  0xa8   :  { %v338_v11 = vadd.f32 %v337_v8, %v288_v7  ;;  %v438_v21 = vadd.f32 %v965_v3, %v356_v13  ;;  %v767_v7 = vld [vmem:[%s1034_s3 + $0x30] sm:$0xff]  }
  0xaa   :  { %v431_v15 = vadd.f32 %v965_v3, %v338_v11  ;;  %v486_v28 = vadd.f32 %v708_v19, %v438_v21 }
  0xac   :  { %v479_v17 = vadd.f32 %v693_v12, %v431_v15  ;;  %v308_v18 = vpop.f32.mrf.mxu2  ;;  %v716_v12 = vunpack.c.l.bf16 %v767_v7 }
  0xad   :  { %v357_v20 = vpop.f32.mrf.mxu3 }
  0xae   :  { %v725_v22 = vpack.c.bf16 %v479_v17, %v478_v16  ;;  %v358_v23 = vadd.f32 %v357_v20, %v308_v18  ;;  %v291_v25 = vpop.f32.mrf.mxu0  ;;  %v717_v17 = vunpack.c.h.bf16 %v767_v7 }
  0xaf   :  { %v340_v26 = vpop.f32.mrf.mxu1 }
  0xb0   :  { %726 = vst [vmem:[%s1035_s4] sm:$0xff] %v725_v22   ;;  %v439_v27 = vadd.f32 %v965_v3, %v358_v23  ;;  %v341_v31 = vadd.f32 %v340_v26, %v291_v25  ;;  %v764_v26 = vld [vmem:[%s1034_s3 + $0x18] sm:$0xff]  }
  0xb1   :  { %v705_v33 = vunpack.c.h.bf16 %v764_v26 }
  0xb2   :  { %v487_v29 = vadd.f32 %v709_v24, %v439_v27  ;;  %v432_v37 = vadd.f32 %v965_v3, %v341_v31  ;;  %v704_v31 = vunpack.c.l.bf16 %v764_v26 }
  0xb4   :  { %v745_v30 = vpack.c.bf16 %v487_v29, %v486_v28  ;;  %v311_v32 = vpop.f32.mrf.mxu2  ;;  %v480_v44 = vadd.f32 %v696_v38, %v432_v37 }
  0xb5   :  { %v360_v34 = vpop.f32.mrf.mxu3 }
  0xb6   :  { %772 = vst [vmem:[%s1035_s4 + $0x20] sm:$0xff] %v745_v30   ;;  %v293_v35 = vpop.f32.mrf.mxu0  ;;  %v361_v41 = vadd.f32 %v360_v34, %v311_v32 }
  0xb7   :  { %v342_v36 = vpop.f32.mrf.mxu1 }
  0xb8   :  { %v343_v39 = vadd.f32 %v342_v36, %v293_v35  ;;  %v440_v49 = vadd.f32 %v965_v3, %v361_v41  ;;  %v768_v35 = vld [vmem:[%s1034_s3 + $0x38] sm:$0xff]  }
  0xba   :  { %v433_v43 = vadd.f32 %v965_v3, %v343_v39  ;;  %v488_v56 = vadd.f32 %v712_v47, %v440_v49 }
  0xbc   :  { %v481_v45 = vadd.f32 %v697_v40, %v433_v43  ;;  %v313_v46 = vpop.f32.mrf.mxu2  ;;  %v720_v40 = vunpack.c.l.bf16 %v768_v35 }
  0xbd   :  { %v362_v48 = vpop.f32.mrf.mxu3 }
  0xbe   :  { %v730_v50 = vpack.c.bf16 %v481_v45, %v480_v44  ;;  %v363_v51 = vadd.f32 %v362_v48, %v313_v46  ;;  %v296_v53 = vpop.f32.mrf.mxu0  ;;  %v721_v45 = vunpack.c.h.bf16 %v768_v35 }
  0xbf   :  { %v345_v54 = vpop.f32.mrf.mxu1 }
  0xc0   :  { %769 = vst [vmem:[%s1035_s4 + $0x8] sm:$0xff] %v730_v50   ;;  %v441_v55 = vadd.f32 %v965_v3, %v363_v51  ;;  %v346_v59 = vadd.f32 %v345_v54, %v296_v53 }
  0xc2   :  { %v489_v57 = vadd.f32 %v713_v52, %v441_v55  ;;  %v434_v1 = vadd.f32 %v965_v3, %v346_v59 }
  0xc4   :  { %v750_v58 = vpack.c.bf16 %v489_v57, %v488_v56  ;;  %v316_v60 = vpop.f32.mrf.mxu2  ;;  %v482_v9 = vadd.f32 %v700_v2, %v434_v1 }
  0xc5   :  { %v365_v62 = vpop.f32.mrf.mxu3 }
  0xc6   :  { %773 = vst [vmem:[%s1035_s4 + $0x28] sm:$0xff] %v750_v58   ;;  %v298_v63 = vpop.f32.mrf.mxu0  ;;  %v366_v6 = vadd.f32 %v365_v62, %v316_v60 }
  0xc7   :  { %v347_v0 = vpop.f32.mrf.mxu1 }
  0xc8   :  { %v348_v4 = vadd.f32 %v347_v0, %v298_v63  ;;  %v442_v14 = vadd.f32 %v965_v3, %v366_v6 }
  0xca   :  { %v435_v8 = vadd.f32 %v965_v3, %v348_v4  ;;  %v490_v21 = vadd.f32 %v716_v12, %v442_v14 }
  0xcc   :  { %v483_v10 = vadd.f32 %v701_v5, %v435_v8  ;;  %v318_v11 = vpop.f32.mrf.mxu2 }
  0xcd   :  { %v367_v13 = vpop.f32.mrf.mxu3 }
  0xce   :  { %v735_v15 = vpack.c.bf16 %v483_v10, %v482_v9  ;;  %v368_v16 = vadd.f32 %v367_v13, %v318_v11  ;;  %v301_v18 = vpop.f32.mrf.mxu0 }
  0xcf   :  { %v350_v19 = vpop.f32.mrf.mxu1 }
  0xd0   :  { %770 = vst [vmem:[%s1035_s4 + $0x10] sm:$0xff] %v735_v15   ;;  %v443_v20 = vadd.f32 %v965_v3, %v368_v16  ;;  %v351_v24 = vadd.f32 %v350_v19, %v301_v18 }
  0xd2   :  { %v491_v22 = vadd.f32 %v717_v17, %v443_v20  ;;  %v436_v30 = vadd.f32 %v965_v3, %v351_v24 }
  0xd4   :  { %v755_v23 = vpack.c.bf16 %v491_v22, %v490_v21  ;;  %v321_v25 = vpop.f32.mrf.mxu2  ;;  %v484_v37 = vadd.f32 %v704_v31, %v436_v30 }
  0xd5   :  { %v370_v27 = vpop.f32.mrf.mxu3 }
  0xd6   :  { %774 = vst [vmem:[%s1035_s4 + $0x30] sm:$0xff] %v755_v23   ;;  %v303_v28 = vpop.f32.mrf.mxu0  ;;  %v371_v34 = vadd.f32 %v370_v27, %v321_v25 }
  0xd7   :  { %v352_v29 = vpop.f32.mrf.mxu1 }
  0xd8   :  { %v353_v32 = vadd.f32 %v352_v29, %v303_v28  ;;  %v444_v42 = vadd.f32 %v965_v3, %v371_v34 }
  0xda   :  { %v437_v36 = vadd.f32 %v965_v3, %v353_v32  ;;  %v492_v47 = vadd.f32 %v720_v40, %v444_v42 }
  0xdc   :  { %v485_v38 = vadd.f32 %v705_v33, %v437_v36  ;;  %v323_v39 = vpop.f32.mrf.mxu2 }
  0xdd   :  { %v372_v41 = vpop.f32.mrf.mxu3 }
  0xde   :  { %v740_v43 = vpack.c.bf16 %v485_v38, %v484_v37  ;;  %v373_v44 = vadd.f32 %v372_v41, %v323_v39 }
  0xe0   :  { %771 = vst [vmem:[%s1035_s4 + $0x18] sm:$0xff] %v740_v43   ;;  %v445_v46 = vadd.f32 %v965_v3, %v373_v44 }
  0xe2   :  { %v493_v48 = vadd.f32 %v721_v45, %v445_v46 }
  0xe4   :  { %v760_v49 = vpack.c.bf16 %v493_v48, %v492_v47 }
  0xe6   :  { %775 = vst [vmem:[%s1035_s4 + $0x38] sm:$0xff] %v760_v49  }

// kernel: _lambda_.35
= control target key start
LH: loop header
LB: loop body
LE: loop exit
PB: predicated region body
PF: predicated region fallthrough
CT: control target
= control target key end

     0   :  { %s1462_s4 = inlined_call_operand.vmem [shape: f32[1,128], index: 4, kind: input, shape index: {}]   ;;  %s1463_s5 = inlined_call_operand.vmem [shape: f32[1,128], index: 5, kind: input, shape index: {}]   ;;  %s1464_s0 = inlined_call_operand.vmem [shape: bf16[128,128], index: 0, kind: input, shape index: {}]   ;;  %s1465_s1 = inlined_call_operand.vmem [shape: bf16[128,128], index: 1, kind: input, shape index: {}]   ;;  %s1466_s2 = inlined_call_operand.vmem [shape: bf16[128,128], index: 2, kind: input, shape index: {}]   ;;  %s1467_s6 = inlined_call_operand.vmem [shape: f32[1,128], index: 6, kind: input, shape index: {}]   ;;  %s1468_s3 = inlined_call_operand.vmem [shape: bf16[128,128], index: 3, kind: input, shape index: {}]   ;;  %s1469_s7 = inlined_call_operand.vmem [shape: f32[1,128], index: 7, kind: input, shape index: {}]   ;;  %s1470_s8 = inlined_call_operand.vmem [shape: bf16[128,128], index: 8, kind: output, shape index: {0}]   ;;  %s1471_s9 = inlined_call_operand.vmem [shape: bf16[128,128], index: 9, kind: output, shape index: {1}]   ;;  %s1472_s10 = inlined_call_operand.vmem [shape: bf16[128,128], index: 10, kind: output, shape index: {2}]   ;;  %s1473_s11 = inlined_call_operand.vmem [shape: bf16[128,128], index: 11, kind: output, shape index: {3}]  }
   0x1   :  { %v33_v0 = vld [vmem:[%s1462_s4] sm:$0x1]  ;;  %v888_v8 = vld [vmem:[%s1464_s0 + $0x8] sm:$0xff]   ;;  %v893_v9 = vld [vmem:[%s1464_s0 + $0x10] sm:$0xff]  }
   0x2   :  { %v35_v1 = vld [vmem:[%s1463_s5] sm:$0x1]  ;;  %v873_v2 = vmul.f32 0.0078125, %v33_v0  ;;  %v898_v10 = vld [vmem:[%s1464_s0 + $0x18] sm:$0xff]   ;;  %v909_v13 = vld [vmem:[%s1464_s0 + $0x28] sm:$0xff]   ;;  %v467_v15 = vunpack.c.l.bf16 %v888_v8  ;;  %v468_v16 = vunpack.c.h.bf16 %v888_v8  ;;  %v471_v17 = vunpack.c.l.bf16 %v893_v9 }
   0x3   :  { %v36_v3 = vmul.f32 0.0078125, %v35_v1  ;;  %v883_v7 = vld [vmem:[%s1464_s0] sm:$0xff]   ;;  %v918_v18 = vld [vmem:[%s1464_s0 + $0x30] sm:$0xff]   ;;  %v923_v19 = vld [vmem:[%s1464_s0 + $0x38] sm:$0xff]   ;;  %v472_v21 = vunpack.c.h.bf16 %v893_v9  ;;  %v475_v22 = vunpack.c.l.bf16 %v898_v10  ;;  %v476_v23 = vunpack.c.h.bf16 %v898_v10 }
   0x4   :  { %v37_v4 = vmul.f32 %v873_v2, %v873_v2  ;;  %v903_v11 = vld [vmem:[%s1464_s0 + $0x20] sm:$0xff]   ;;  %v463_v12 = vunpack.c.l.bf16 %v883_v7  ;;  %v464_v14 = vunpack.c.h.bf16 %v883_v7  ;;  %v939_v26 = vld [vmem:[%s1465_s1 + $0x8] sm:$0xff]   ;;  %v483_v29 = vunpack.c.l.bf16 %v909_v13  ;;  %v949_v31 = vld [vmem:[%s1465_s1 + $0x10] sm:$0xff]  }
   0x5   :  { %v479_v24 = vunpack.c.l.bf16 %v903_v11  ;;  %v934_v25 = vld [vmem:[%s1465_s1] sm:$0xff]   ;;  %v480_v28 = vunpack.c.h.bf16 %v903_v11  ;;  %v484_v30 = vunpack.c.h.bf16 %v909_v13  ;;  %v487_v32 = vunpack.c.l.bf16 %v918_v18  ;;  %v958_v36 = vld [vmem:[%s1465_s1 + $0x18] sm:$0xff]   ;;  %v972_v42 = vld [vmem:[%s1465_s1 + $0x28] sm:$0xff]  }
   0x6   :  { %v38_v5 = vsub.f32 %v36_v3, %v37_v4  ;;  %v488_v33 = vunpack.c.h.bf16 %v918_v18  ;;  %v491_v34 = vunpack.c.l.bf16 %v923_v19  ;;  %v492_v35 = vunpack.c.h.bf16 %v923_v19  ;;  %v967_v41 = vld [vmem:[%s1465_s1 + $0x20] sm:$0xff]   ;;  %v981_v46 = vld [vmem:[%s1465_s1 + $0x30] sm:$0xff]   ;;  %v986_v47 = vld [vmem:[%s1465_s1 + $0x38] sm:$0xff]  }
   0x7   :  { %v535_v38 = vunpack.c.l.bf16 %v934_v25  ;;  %v536_v39 = vunpack.c.h.bf16 %v934_v25  ;;  %v539_v40 = vunpack.c.l.bf16 %v939_v26  ;;  %v540_v43 = vunpack.c.h.bf16 %v939_v26  ;;  %v994_v51 = vld [vmem:[%s1466_s2] sm:$0xff]   ;;  %v999_v52 = vld [vmem:[%s1466_s2 + $0x8] sm:$0xff]   ;;  %v1008_v57 = vld [vmem:[%s1466_s2 + $0x10] sm:$0xff]  }
   0x8   :  { %v877_v6 = vadd.f32 1e-05, %v38_v5  ;;  %v543_v44 = vunpack.c.l.bf16 %v949_v31  ;;  %v544_v45 = vunpack.c.h.bf16 %v949_v31  ;;  %v547_v49 = vunpack.c.l.bf16 %v958_v36  ;;  %v1016_v62 = vld [vmem:[%s1466_s2 + $0x18] sm:$0xff]   ;;  %v1021_v63 = vld [vmem:[%s1466_s2 + $0x20] sm:$0xff]   ;;  %v1069_v3 = vld [vmem:[%s1468_s3 + $0x8] sm:$0xff]  }
   0x9   :  { %v548_v50 = vunpack.c.h.bf16 %v958_v36  ;;  %v1055_v1 = vld [vmem:[%s1466_s2 + $0x38] sm:$0xff]   ;;  %v1080_v5 = vld [vmem:[%s1468_s3 + $0x10] sm:$0xff]  }
   0xa   :  { %805 = vrsqrt.f32 %v877_v6  ;;  %vm47_vm0 = vweird.f32 %v877_v6 }
  0x10   :  { %v925_v20 = vpop.eup %805 }
  0x11   :  { %v42_v27 = vmul.f32 %v925_v20, %v877_v6  ;;  %vm48_vm1 = vweird.f32 %v925_v20  ;;  %v1043_v6 = vld [vmem:[%s1466_s2 + $0x30] sm:$0xff]  }
  0x12   :  { %vm1027_vm2 = vmor %vm47_vm0, %vm48_vm1 }
  0x13   :  { %v43_v37 = vmul.f32 %v925_v20, %v42_v27  ;;  %v1038_v27 = vld [vmem:[%s1466_s2 + $0x28] sm:$0xff]  }
  0x15   :  { %v44_v48 = vmul.f32 0.5, %v43_v37  ;;  %v39_v37 = vld [vmem:[%s1467_s6] sm:$0x1] }
  0x17   :  { %v45_v58 = vsub.f32 1.5, %v44_v48 }
  0x19   :  { %v46_v48 = vmul.f32 %v925_v20, %v45_v58  ;;  %v1064_v58 = vld [vmem:[%s1468_s3] sm:$0xff]  }
  0x1b   :  { %v50_v61 = vsel %vm1027_vm2, %v925_v20, %v46_v48  ;;  %v52_v20 = vld [vmem:[%s1469_s7] sm:$0x1] }
  0x1c   :  { %v51_v4 = vmul.f32 %v50_v61, %v39_v37  ;;  %v1095_v61 = vld [vmem:[%s1468_s3 + $0x18] sm:$0xff]   ;;  %v1105_v48 = vld [vmem:[%s1468_s3 + $0x20] sm:$0xff]  }
  0x1d   :  { %v691_v59 = vunpack.c.l.bf16 %v1095_v61  ;;  %v695_v0 = vunpack.c.l.bf16 %v1105_v48  ;;  %v696_v60 = vunpack.c.h.bf16 %v1105_v48 }
  0x1e   :  { %v53_v37 = vmul.f32 %v51_v4, %v873_v2  ;;  %v1098_v53 = vperm.slane %v51_v4, 0 }
  0x20   :  { %v54_v2 = vsub.f32 %v52_v20, %v53_v37  ;;  %v90_v4 = vmul.f32 %v463_v12, %v1098_v53  ;;  %v91_v55 = vmul.f32 %v464_v14, %v1098_v53  ;;  %v92_v54 = vmul.f32 %v467_v15, %v1098_v53 }
  0x21   :  { %v93_v56 = vmul.f32 %v468_v16, %v1098_v53  ;;  %v94_v20 = vmul.f32 %v471_v17, %v1098_v53  ;;  %v95_v12 = vmul.f32 %v472_v21, %v1098_v53  ;;  %v96_v7 = vmul.f32 %v475_v22, %v1098_v53 }
  0x22   :  { %v1132_v14 = vperm.slane %v54_v2, 0  ;;  %v97_v15 = vmul.f32 %v476_v23, %v1098_v53  ;;  %v98_v8 = vmul.f32 %v479_v24, %v1098_v53  ;;  %v99_v16 = vmul.f32 %v480_v28, %v1098_v53 }
  0x23   :  { %v100_v9 = vmul.f32 %v483_v29, %v1098_v53  ;;  %v101_v17 = vmul.f32 %v484_v30, %v1098_v53  ;;  %v102_v10 = vmul.f32 %v487_v32, %v1098_v53  ;;  %v103_v21 = vmul.f32 %v488_v33, %v1098_v53 }
  0x24   :  { %v109_v22 = vadd.f32 %v1132_v14, %v90_v4  ;;  %v110_v11 = vadd.f32 %v1132_v14, %v91_v55  ;;  %v111_v23 = vadd.f32 %v1132_v14, %v92_v54  ;;  %v112_v24 = vadd.f32 %v1132_v14, %v93_v56 }
  0x25   :  { %v113_v28 = vadd.f32 %v1132_v14, %v94_v20  ;;  %v114_v13 = vadd.f32 %v1132_v14, %v95_v12  ;;  %v115_v29 = vadd.f32 %v1132_v14, %v96_v7  ;;  %v116_v30 = vadd.f32 %v1132_v14, %v97_v15 }
  0x26   :  { %v496_v32 = vpack.c.bf16 %v110_v11, %v109_v22  ;;  %v501_v37 = vpack.c.bf16 %v112_v24, %v111_v23  ;;  %v117_v18 = vadd.f32 %v1132_v14, %v98_v8  ;;  %v118_v33 = vadd.f32 %v1132_v14, %v99_v16 }
  0x27   :  { %v506_v2 = vpack.c.bf16 %v114_v13, %v113_v28  ;;  %v511_v55 = vpack.c.bf16 %v116_v30, %v115_v29  ;;  %v119_v54 = vadd.f32 %v1132_v14, %v100_v9  ;;  %v120_v56 = vadd.f32 %v1132_v14, %v101_v17 }
  0x28   :  { %497 = vst [vmem:[%s1470_s8] sm:$0xff] %v496_v32   ;;  %v516_v4 = vpack.c.bf16 %v118_v33, %v117_v18  ;;  %v121_v20 = vadd.f32 %v1132_v14, %v102_v10  ;;  %v122_v12 = vadd.f32 %v1132_v14, %v103_v21  ;;  %v104_v7 = vmul.f32 %v491_v34, %v1098_v53 }
  0x29   :  { %756 = vst [vmem:[%s1470_s8 + $0x8] sm:$0xff] %v501_v37   ;;  %v521_v15 = vpack.c.bf16 %v120_v56, %v119_v54  ;;  %v105_v8 = vmul.f32 %v492_v35, %v1098_v53  ;;  %v189_v16 = vmul.f32 %v535_v38, %v1098_v53  ;;  %v190_v9 = vmul.f32 %v536_v39, %v1098_v53 }
  0x2a   :  { %757 = vst [vmem:[%s1470_s8 + $0x10] sm:$0xff] %v506_v2   ;;  %v526_v34 = vpack.c.bf16 %v122_v12, %v121_v20  ;;  %v123_v17 = vadd.f32 %v1132_v14, %v104_v7  ;;  %v191_v19 = vmul.f32 %v539_v40, %v1098_v53  ;;  %v192_v35 = vmul.f32 %v540_v43, %v1098_v53 }
  0x2b   :  { %758 = vst [vmem:[%s1470_s8 + $0x18] sm:$0xff] %v511_v55   ;;  %v124_v25 = vadd.f32 %v1132_v14, %v105_v8  ;;  %v205_v38 = vadd.f32 %v189_v16, %v1132_v14  ;;  %v206_v39 = vadd.f32 %v190_v9, %v1132_v14  ;;  %v193_v10 = vmul.f32 %v543_v44, %v1098_v53 }
  0x2c   :  { %759 = vst [vmem:[%s1470_s8 + $0x20] sm:$0xff] %v516_v4   ;;  %v207_v26 = vadd.f32 %v191_v19, %v1132_v14  ;;  %v208_v40 = vadd.f32 %v192_v35, %v1132_v14  ;;  %v194_v43 = vmul.f32 %v544_v45, %v1098_v53  ;;  %v195_v21 = vmul.f32 %v547_v49, %v1098_v53 }
  0x2d   :  { %760 = vst [vmem:[%s1470_s8 + $0x28] sm:$0xff] %v521_v15   ;;  %v531_v44 = vpack.c.bf16 %v124_v25, %v123_v17  ;;  %v568_v22 = vpack.c.bf16 %v206_v39, %v205_v38  ;;  %v209_v11 = vadd.f32 %v193_v10, %v1132_v14  ;;  %v196_v23 = vmul.f32 %v548_v50, %v1098_v53 }
  0x2e   :  { %761 = vst [vmem:[%s1470_s8 + $0x30] sm:$0xff] %v526_v34   ;;  %v573_v31 = vpack.c.bf16 %v208_v40, %v207_v26  ;;  %v210_v45 = vadd.f32 %v194_v43, %v1132_v14  ;;  %v211_v49 = vadd.f32 %v195_v21, %v1132_v14  ;;  %v1476_v24 = vunpack.c.l.bf16 %v967_v41 }
  0x2f   :  { %762 = vst [vmem:[%s1470_s8 + $0x38] sm:$0xff] %v531_v44   ;;  %v212_v36 = vadd.f32 %v196_v23, %v1132_v14  ;;  %v1477_v50 = vunpack.c.h.bf16 %v967_v41  ;;  %v1478_v29 = vunpack.c.l.bf16 %v972_v42  ;;  %v1479_v32 = vunpack.c.h.bf16 %v972_v42 }
  0x30   :  { %v197_v28 = vmul.f32 %v1476_v24, %v1098_v53  ;;  %569 = vst [vmem:[%s1471_s9] sm:$0xff] %v568_v22   ;;  %v578_v18 = vpack.c.bf16 %v210_v45, %v209_v11  ;;  %v1480_v2 = vunpack.c.l.bf16 %v981_v46  ;;  %v1481_v55 = vunpack.c.h.bf16 %v981_v46 }
  0x31   :  { %v198_v13 = vmul.f32 %v1477_v50, %v1098_v53  ;;  %v199_v30 = vmul.f32 %v1478_v29, %v1098_v53  ;;  %v200_v37 = vmul.f32 %v1479_v32, %v1098_v53  ;;  %770 = vst [vmem:[%s1471_s9 + $0x8] sm:$0xff] %v573_v31   ;;  %v583_v42 = vpack.c.bf16 %v212_v36, %v211_v49 }
  0x32   :  { %v213_v33 = vadd.f32 %v197_v28, %v1132_v14  ;;  %v201_v41 = vmul.f32 %v1480_v2, %v1098_v53  ;;  %v202_v54 = vmul.f32 %v1481_v55, %v1098_v53  ;;  %771 = vst [vmem:[%s1471_s9 + $0x10] sm:$0xff] %v578_v18   ;;  %v1482_v7 = vunpack.c.l.bf16 %v986_v47 }
  0x33   :  { %v214_v56 = vadd.f32 %v198_v13, %v1132_v14  ;;  %v215_v4 = vadd.f32 %v199_v30, %v1132_v14  ;;  %v216_v20 = vadd.f32 %v200_v37, %v1132_v14  ;;  %v1483_v8 = vunpack.c.h.bf16 %v986_v47  ;;  %772 = vst [vmem:[%s1471_s9 + $0x18] sm:$0xff] %v583_v42  }
  0x34   :  { %v217_v12 = vadd.f32 %v201_v41, %v1132_v14  ;;  %v218_v46 = vadd.f32 %v202_v54, %v1132_v14  ;;  %v203_v15 = vmul.f32 %v1482_v7, %v1098_v53  ;;  %v1484_v17 = vunpack.c.l.bf16 %v994_v51 }
  0x35   :  { %v204_v16 = vmul.f32 %v1483_v8, %v1098_v53  ;;  %v588_v9 = vpack.c.bf16 %v214_v56, %v213_v33  ;;  %v593_v34 = vpack.c.bf16 %v216_v20, %v215_v4  ;;  %v1485_v35 = vunpack.c.h.bf16 %v994_v51 }
  0x36   :  { %v285_v19 = vmul.f32 %v1484_v17, %v1098_v53  ;;  %v598_v38 = vpack.c.bf16 %v218_v46, %v217_v12  ;;  %v219_v39 = vadd.f32 %v203_v15, %v1132_v14  ;;  %v1486_v10 = vunpack.c.l.bf16 %v999_v52 }
  0x37   :  { %v286_v25 = vmul.f32 %v1485_v35, %v1098_v53  ;;  %v220_v47 = vadd.f32 %v204_v16, %v1132_v14  ;;  %773 = vst [vmem:[%s1471_s9 + $0x20] sm:$0xff] %v588_v9   ;;  %v1487_v51 = vunpack.c.h.bf16 %v999_v52  ;;  %v1488_v44 = vunpack.c.l.bf16 %v1008_v57 }
  0x38   :  { %v287_v26 = vmul.f32 %v1486_v10, %v1098_v53  ;;  %v301_v40 = vadd.f32 %v285_v19, %v1132_v14  ;;  %774 = vst [vmem:[%s1471_s9 + $0x28] sm:$0xff] %v593_v34   ;;  %v1489_v31 = vunpack.c.h.bf16 %v1008_v57  ;;  %v1490_v49 = vunpack.c.l.bf16 %v1016_v62 }
  0x39   :  { %v302_v43 = vadd.f32 %v286_v25, %v1132_v14  ;;  %v288_v21 = vmul.f32 %v1487_v51, %v1098_v53  ;;  %v289_v22 = vmul.f32 %v1488_v44, %v1098_v53  ;;  %v603_v11 = vpack.c.bf16 %v220_v47, %v219_v39  ;;  %775 = vst [vmem:[%s1471_s9 + $0x30] sm:$0xff] %v598_v38  }
  0x3a   :  { %v303_v23 = vadd.f32 %v287_v26, %v1132_v14  ;;  %v290_v45 = vmul.f32 %v1489_v31, %v1098_v53  ;;  %v291_v52 = vmul.f32 %v1490_v49, %v1098_v53  ;;  %v1491_v50 = vunpack.c.h.bf16 %v1016_v62 }
  0x3b   :  { %v640_v24 = vpack.c.bf16 %v302_v43, %v301_v40  ;;  %v304_v28 = vadd.f32 %v288_v21, %v1132_v14  ;;  %v305_v36 = vadd.f32 %v289_v22, %v1132_v14  ;;  %776 = vst [vmem:[%s1471_s9 + $0x38] sm:$0xff] %v603_v11   ;;  %v1492_v30 = vunpack.c.l.bf16 %v1021_v63 }
  0x3c   :  { %v292_v13 = vmul.f32 %v1491_v50, %v1098_v53  ;;  %v306_v57 = vadd.f32 %v290_v45, %v1132_v14  ;;  %v307_v29 = vadd.f32 %v291_v52, %v1132_v14  ;;  %v1493_v37 = vunpack.c.h.bf16 %v1021_v63  ;;  %v795_v52 = vld [vmem:[%s1468_s3 + $0x28] sm:$0xff]  }
  0x3d   :  { %v293_v32 = vmul.f32 %v1492_v30, %v1098_v53  ;;  %641 = vst [vmem:[%s1472_s10] sm:$0xff] %v640_v24   ;;  %v645_v62 = vpack.c.bf16 %v304_v28, %v303_v23  ;;  %v1494_v2 = vunpack.c.l.bf16 %v1038_v27  ;;  %v1495_v55 = vunpack.c.h.bf16 %v1038_v27 }
  0x3e   :  { %v294_v18 = vmul.f32 %v1493_v37, %v1098_v53  ;;  %v308_v33 = vadd.f32 %v292_v13, %v1132_v14  ;;  %v650_v42 = vpack.c.bf16 %v306_v57, %v305_v36  ;;  %v1496_v4 = vunpack.c.l.bf16 %v1043_v6  ;;  %v796_v13 = vld [vmem:[%s1468_s3 + $0x30] sm:$0xff]  }
  0x3f   :  { %v295_v41 = vmul.f32 %v1494_v2, %v1098_v53  ;;  %v296_v54 = vmul.f32 %v1495_v55, %v1098_v53  ;;  %v309_v56 = vadd.f32 %v293_v32, %v1132_v14  ;;  %784 = vst [vmem:[%s1472_s10 + $0x8] sm:$0xff] %v645_v62   ;;  %v1497_v27 = vunpack.c.h.bf16 %v1043_v6  ;;  %v797_v62 = vld [vmem:[%s1468_s3 + $0x38] sm:$0xff]  }
  0x40   :  { %v310_v63 = vadd.f32 %v294_v18, %v1132_v14  ;;  %v297_v20 = vmul.f32 %v1496_v4, %v1098_v53  ;;  %v655_v12 = vpack.c.bf16 %v308_v33, %v307_v29  ;;  %785 = vst [vmem:[%s1472_s10 + $0x10] sm:$0xff] %v650_v42   ;;  %v1498_v9 = vunpack.c.l.bf16 %v1055_v1 }
  0x41   :  { %v311_v46 = vadd.f32 %v295_v41, %v1132_v14  ;;  %v312_v7 = vadd.f32 %v296_v54, %v1132_v14  ;;  %v298_v15 = vmul.f32 %v1497_v27, %v1098_v53  ;;  %v1499_v17 = vunpack.c.h.bf16 %v1055_v1 }
  0x42   :  { %v660_v8 = vpack.c.bf16 %v310_v63, %v309_v56  ;;  %v313_v16 = vadd.f32 %v297_v20, %v1132_v14  ;;  %v299_v34 = vmul.f32 %v1498_v9, %v1098_v53  ;;  %786 = vst [vmem:[%s1472_s10 + $0x18] sm:$0xff] %v655_v12   ;;  %v1500_v25 = vunpack.c.l.bf16 %v1064_v58 }
  0x43   :  { %v300_v19 = vmul.f32 %v1499_v17, %v1098_v53  ;;  %v665_v6 = vpack.c.bf16 %v312_v7, %v311_v46  ;;  %v314_v35 = vadd.f32 %v298_v15, %v1132_v14  ;;  %v1501_v39 = vunpack.c.h.bf16 %v1064_v58 }
  0x44   :  { %v381_v38 = vmul.f32 %v1500_v25, %v1098_v53  ;;  %787 = vst [vmem:[%s1472_s10 + $0x20] sm:$0xff] %v660_v8   ;;  %v315_v1 = vadd.f32 %v299_v34, %v1132_v14  ;;  %v1502_v26 = vunpack.c.l.bf16 %v1069_v3  ;;  %v1503_v43 = vunpack.c.h.bf16 %v1069_v3 }
  0x45   :  { %v382_v47 = vmul.f32 %v1501_v39, %v1098_v53  ;;  %v316_v10 = vadd.f32 %v300_v19, %v1132_v14  ;;  %788 = vst [vmem:[%s1472_s10 + $0x28] sm:$0xff] %v665_v6   ;;  %v670_v58 = vpack.c.bf16 %v314_v35, %v313_v16  ;;  %v1504_v22 = vunpack.c.l.bf16 %v1080_v5 }
  0x46   :  { %v383_v40 = vmul.f32 %v1502_v26, %v1098_v53  ;;  %v384_v51 = vmul.f32 %v1503_v43, %v1098_v53  ;;  %v397_v21 = vadd.f32 %v381_v38, %v1132_v14  ;;  %v1505_v3 = vunpack.c.h.bf16 %v1080_v5 }
  0x47   :  { %v398_v44 = vadd.f32 %v382_v47, %v1132_v14  ;;  %v385_v11 = vmul.f32 %v1504_v22, %v1098_v53  ;;  %v675_v23 = vpack.c.bf16 %v316_v10, %v315_v1  ;;  %789 = vst [vmem:[%s1472_s10 + $0x30] sm:$0xff] %v670_v58   ;;  %v387_v36 = vmul.f32 %v691_v59, %v1098_v53 }
  0x48   :  { %v399_v31 = vadd.f32 %v383_v40, %v1132_v14  ;;  %v400_v45 = vadd.f32 %v384_v51, %v1132_v14  ;;  %v386_v49 = vmul.f32 %v1505_v3, %v1098_v53  ;;  %v1506_v50 = vunpack.c.h.bf16 %v1095_v61 }
  0x49   :  { %v712_v24 = vpack.c.bf16 %v398_v44, %v397_v21  ;;  %v401_v28 = vadd.f32 %v385_v11, %v1132_v14  ;;  %790 = vst [vmem:[%s1472_s10 + $0x38] sm:$0xff] %v675_v23   ;;  %v389_v30 = vmul.f32 %v695_v0, %v1098_v53  ;;  %v390_v59 = vmul.f32 %v696_v60, %v1098_v53 }
  0x4a   :  { %v388_v5 = vmul.f32 %v1506_v50, %v1098_v53  ;;  %v717_v57 = vpack.c.bf16 %v400_v45, %v399_v31  ;;  %v402_v29 = vadd.f32 %v386_v49, %v1132_v14  ;;  %v403_v61 = vadd.f32 %v387_v36, %v1132_v14 }
  0x4b   :  { %713 = vst [vmem:[%s1473_s11] sm:$0xff] %v712_v24   ;;  %v699_v37 = vunpack.c.l.bf16 %v795_v52  ;;  %v700_v18 = vunpack.c.h.bf16 %v795_v52  ;;  %v405_v60 = vadd.f32 %v389_v30, %v1132_v14  ;;  %v406_v48 = vadd.f32 %v390_v59, %v1132_v14 }
  0x4c   :  { %v404_v32 = vadd.f32 %v388_v5, %v1132_v14  ;;  %798 = vst [vmem:[%s1473_s11 + $0x8] sm:$0xff] %v717_v57   ;;  %v722_v0 = vpack.c.bf16 %v402_v29, %v401_v28  ;;  %v703_v33 = vunpack.c.l.bf16 %v796_v13  ;;  %v704_v54 = vunpack.c.h.bf16 %v796_v13 }
  0x4d   :  { %v391_v41 = vmul.f32 %v699_v37, %v1098_v53  ;;  %v392_v55 = vmul.f32 %v700_v18, %v1098_v53  ;;  %v732_v42 = vpack.c.bf16 %v406_v48, %v405_v60  ;;  %v707_v63 = vunpack.c.l.bf16 %v797_v62 }
  0x4e   :  { %v727_v2 = vpack.c.bf16 %v404_v32, %v403_v61  ;;  %799 = vst [vmem:[%s1473_s11 + $0x10] sm:$0xff] %v722_v0   ;;  %v393_v56 = vmul.f32 %v703_v33, %v1098_v53  ;;  %v708_v4 = vunpack.c.h.bf16 %v797_v62  ;;  %v394_v46 = vmul.f32 %v704_v54, %v1098_v53 }
  0x4f   :  { %v407_v20 = vadd.f32 %v391_v41, %v1132_v14  ;;  %v408_v12 = vadd.f32 %v392_v55, %v1132_v14  ;;  %801 = vst [vmem:[%s1473_s11 + $0x20] sm:$0xff] %v732_v42   ;;  %v395_v27 = vmul.f32 %v707_v63, %v1098_v53 }
  0x50   :  { %800 = vst [vmem:[%s1473_s11 + $0x18] sm:$0xff] %v727_v2   ;;  %v409_v7 = vadd.f32 %v393_v56, %v1132_v14  ;;  %v396_v15 = vmul.f32 %v708_v4, %v1098_v53  ;;  %v410_v16 = vadd.f32 %v394_v46, %v1132_v14 }
  0x51   :  { %v737_v8 = vpack.c.bf16 %v408_v12, %v407_v20  ;;  %v411_v9 = vadd.f32 %v395_v27, %v1132_v14 }
  0x52   :  { %v412_v34 = vadd.f32 %v396_v15, %v1132_v14  ;;  %v742_v17 = vpack.c.bf16 %v410_v16, %v409_v7 }
  0x53   :  { %802 = vst [vmem:[%s1473_s11 + $0x28] sm:$0xff] %v737_v8  }
  0x54   :  { %v747_v19 = vpack.c.bf16 %v412_v34, %v411_v9  ;;  %803 = vst [vmem:[%s1473_s11 + $0x30] sm:$0xff] %v742_v17  }
  0x56   :  { %804 = vst [vmem:[%s1473_s11 + $0x38] sm:$0xff] %v747_v19  }

// kernel: _lambda_.40
= control target key start
LH: loop header
LB: loop body
LE: loop exit
PB: predicated region body
PF: predicated region fallthrough
CT: control target
= control target key end

     0   :  { %s1462_s4 = inlined_call_operand.vmem [shape: f32[1,128], index: 4, kind: input, shape index: {}]   ;;  %s1463_s5 = inlined_call_operand.vmem [shape: f32[1,128], index: 5, kind: input, shape index: {}]   ;;  %s1464_s0 = inlined_call_operand.vmem [shape: bf16[128,128], index: 0, kind: input, shape index: {}]   ;;  %s1465_s1 = inlined_call_operand.vmem [shape: bf16[128,128], index: 1, kind: input, shape index: {}]   ;;  %s1466_s2 = inlined_call_operand.vmem [shape: bf16[128,128], index: 2, kind: input, shape index: {}]   ;;  %s1467_s6 = inlined_call_operand.vmem [shape: f32[1,128], index: 6, kind: input, shape index: {}]   ;;  %s1468_s3 = inlined_call_operand.vmem [shape: bf16[128,128], index: 3, kind: input, shape index: {}]   ;;  %s1469_s7 = inlined_call_operand.vmem [shape: f32[1,128], index: 7, kind: input, shape index: {}]   ;;  %s1470_s8 = inlined_call_operand.vmem [shape: bf16[128,128], index: 8, kind: output, shape index: {0}]   ;;  %s1471_s9 = inlined_call_operand.vmem [shape: bf16[128,128], index: 9, kind: output, shape index: {1}]   ;;  %s1472_s10 = inlined_call_operand.vmem [shape: bf16[128,128], index: 10, kind: output, shape index: {2}]   ;;  %s1473_s11 = inlined_call_operand.vmem [shape: bf16[128,128], index: 11, kind: output, shape index: {3}]  }
   0x1   :  { %v33_v0 = vld [vmem:[%s1462_s4] sm:$0x1]  ;;  %v888_v8 = vld [vmem:[%s1464_s0 + $0x8] sm:$0xff]   ;;  %v893_v9 = vld [vmem:[%s1464_s0 + $0x10] sm:$0xff]  }
   0x2   :  { %v35_v1 = vld [vmem:[%s1463_s5] sm:$0x1]  ;;  %v873_v2 = vmul.f32 0.001953125, %v33_v0  ;;  %v898_v10 = vld [vmem:[%s1464_s0 + $0x18] sm:$0xff]   ;;  %v909_v13 = vld [vmem:[%s1464_s0 + $0x28] sm:$0xff]   ;;  %v467_v15 = vunpack.c.l.bf16 %v888_v8  ;;  %v468_v16 = vunpack.c.h.bf16 %v888_v8  ;;  %v471_v17 = vunpack.c.l.bf16 %v893_v9 }
   0x3   :  { %v36_v3 = vmul.f32 0.001953125, %v35_v1  ;;  %v883_v7 = vld [vmem:[%s1464_s0] sm:$0xff]   ;;  %v918_v18 = vld [vmem:[%s1464_s0 + $0x30] sm:$0xff]   ;;  %v923_v19 = vld [vmem:[%s1464_s0 + $0x38] sm:$0xff]   ;;  %v472_v21 = vunpack.c.h.bf16 %v893_v9  ;;  %v475_v22 = vunpack.c.l.bf16 %v898_v10  ;;  %v476_v23 = vunpack.c.h.bf16 %v898_v10 }
   0x4   :  { %v37_v4 = vmul.f32 %v873_v2, %v873_v2  ;;  %v903_v11 = vld [vmem:[%s1464_s0 + $0x20] sm:$0xff]   ;;  %v463_v12 = vunpack.c.l.bf16 %v883_v7  ;;  %v464_v14 = vunpack.c.h.bf16 %v883_v7  ;;  %v939_v26 = vld [vmem:[%s1465_s1 + $0x8] sm:$0xff]   ;;  %v483_v29 = vunpack.c.l.bf16 %v909_v13  ;;  %v949_v31 = vld [vmem:[%s1465_s1 + $0x10] sm:$0xff]  }
   0x5   :  { %v479_v24 = vunpack.c.l.bf16 %v903_v11  ;;  %v934_v25 = vld [vmem:[%s1465_s1] sm:$0xff]   ;;  %v480_v28 = vunpack.c.h.bf16 %v903_v11  ;;  %v484_v30 = vunpack.c.h.bf16 %v909_v13  ;;  %v487_v32 = vunpack.c.l.bf16 %v918_v18  ;;  %v958_v36 = vld [vmem:[%s1465_s1 + $0x18] sm:$0xff]   ;;  %v972_v42 = vld [vmem:[%s1465_s1 + $0x28] sm:$0xff]  }
   0x6   :  { %v38_v5 = vsub.f32 %v36_v3, %v37_v4  ;;  %v488_v33 = vunpack.c.h.bf16 %v918_v18  ;;  %v491_v34 = vunpack.c.l.bf16 %v923_v19  ;;  %v492_v35 = vunpack.c.h.bf16 %v923_v19  ;;  %v967_v41 = vld [vmem:[%s1465_s1 + $0x20] sm:$0xff]   ;;  %v981_v46 = vld [vmem:[%s1465_s1 + $0x30] sm:$0xff]   ;;  %v986_v47 = vld [vmem:[%s1465_s1 + $0x38] sm:$0xff]  }
   0x7   :  { %v535_v38 = vunpack.c.l.bf16 %v934_v25  ;;  %v536_v39 = vunpack.c.h.bf16 %v934_v25  ;;  %v539_v40 = vunpack.c.l.bf16 %v939_v26  ;;  %v540_v43 = vunpack.c.h.bf16 %v939_v26  ;;  %v994_v51 = vld [vmem:[%s1466_s2] sm:$0xff]   ;;  %v999_v52 = vld [vmem:[%s1466_s2 + $0x8] sm:$0xff]   ;;  %v1008_v57 = vld [vmem:[%s1466_s2 + $0x10] sm:$0xff]  }
   0x8   :  { %v877_v6 = vadd.f32 1e-05, %v38_v5  ;;  %v543_v44 = vunpack.c.l.bf16 %v949_v31  ;;  %v544_v45 = vunpack.c.h.bf16 %v949_v31  ;;  %v547_v49 = vunpack.c.l.bf16 %v958_v36  ;;  %v1016_v62 = vld [vmem:[%s1466_s2 + $0x18] sm:$0xff]   ;;  %v1021_v63 = vld [vmem:[%s1466_s2 + $0x20] sm:$0xff]   ;;  %v1069_v3 = vld [vmem:[%s1468_s3 + $0x8] sm:$0xff]  }
   0x9   :  { %v548_v50 = vunpack.c.h.bf16 %v958_v36  ;;  %v1055_v1 = vld [vmem:[%s1466_s2 + $0x38] sm:$0xff]   ;;  %v1080_v5 = vld [vmem:[%s1468_s3 + $0x10] sm:$0xff]  }
   0xa   :  { %805 = vrsqrt.f32 %v877_v6  ;;  %vm47_vm0 = vweird.f32 %v877_v6 }
  0x10   :  { %v925_v20 = vpop.eup %805 }
  0x11   :  { %v42_v27 = vmul.f32 %v925_v20, %v877_v6  ;;  %vm48_vm1 = vweird.f32 %v925_v20  ;;  %v1043_v6 = vld [vmem:[%s1466_s2 + $0x30] sm:$0xff]  }
  0x12   :  { %vm1027_vm2 = vmor %vm47_vm0, %vm48_vm1 }
  0x13   :  { %v43_v37 = vmul.f32 %v925_v20, %v42_v27  ;;  %v1038_v27 = vld [vmem:[%s1466_s2 + $0x28] sm:$0xff]  }
  0x15   :  { %v44_v48 = vmul.f32 0.5, %v43_v37  ;;  %v39_v37 = vld [vmem:[%s1467_s6] sm:$0x1] }
  0x17   :  { %v45_v58 = vsub.f32 1.5, %v44_v48 }
  0x19   :  { %v46_v48 = vmul.f32 %v925_v20, %v45_v58  ;;  %v1064_v58 = vld [vmem:[%s1468_s3] sm:$0xff]  }
  0x1b   :  { %v50_v61 = vsel %vm1027_vm2, %v925_v20, %v46_v48  ;;  %v52_v20 = vld [vmem:[%s1469_s7] sm:$0x1] }
  0x1c   :  { %v51_v4 = vmul.f32 %v50_v61, %v39_v37  ;;  %v1095_v61 = vld [vmem:[%s1468_s3 + $0x18] sm:$0xff]   ;;  %v1105_v48 = vld [vmem:[%s1468_s3 + $0x20] sm:$0xff]  }
  0x1d   :  { %v691_v59 = vunpack.c.l.bf16 %v1095_v61  ;;  %v695_v0 = vunpack.c.l.bf16 %v1105_v48  ;;  %v696_v60 = vunpack.c.h.bf16 %v1105_v48 }
  0x1e   :  { %v53_v37 = vmul.f32 %v51_v4, %v873_v2  ;;  %v1098_v53 = vperm.slane %v51_v4, 0 }
  0x20   :  { %v54_v2 = vsub.f32 %v52_v20, %v53_v37  ;;  %v90_v4 = vmul.f32 %v463_v12, %v1098_v53  ;;  %v91_v55 = vmul.f32 %v464_v14, %v1098_v53  ;;  %v92_v54 = vmul.f32 %v467_v15, %v1098_v53 }
  0x21   :  { %v93_v56 = vmul.f32 %v468_v16, %v1098_v53  ;;  %v94_v20 = vmul.f32 %v471_v17, %v1098_v53  ;;  %v95_v12 = vmul.f32 %v472_v21, %v1098_v53  ;;  %v96_v7 = vmul.f32 %v475_v22, %v1098_v53 }
  0x22   :  { %v1132_v14 = vperm.slane %v54_v2, 0  ;;  %v97_v15 = vmul.f32 %v476_v23, %v1098_v53  ;;  %v98_v8 = vmul.f32 %v479_v24, %v1098_v53  ;;  %v99_v16 = vmul.f32 %v480_v28, %v1098_v53 }
  0x23   :  { %v100_v9 = vmul.f32 %v483_v29, %v1098_v53  ;;  %v101_v17 = vmul.f32 %v484_v30, %v1098_v53  ;;  %v102_v10 = vmul.f32 %v487_v32, %v1098_v53  ;;  %v103_v21 = vmul.f32 %v488_v33, %v1098_v53 }
  0x24   :  { %v109_v22 = vadd.f32 %v1132_v14, %v90_v4  ;;  %v110_v11 = vadd.f32 %v1132_v14, %v91_v55  ;;  %v111_v23 = vadd.f32 %v1132_v14, %v92_v54  ;;  %v112_v24 = vadd.f32 %v1132_v14, %v93_v56 }
  0x25   :  { %v113_v28 = vadd.f32 %v1132_v14, %v94_v20  ;;  %v114_v13 = vadd.f32 %v1132_v14, %v95_v12  ;;  %v115_v29 = vadd.f32 %v1132_v14, %v96_v7  ;;  %v116_v30 = vadd.f32 %v1132_v14, %v97_v15 }
  0x26   :  { %v496_v32 = vpack.c.bf16 %v110_v11, %v109_v22  ;;  %v501_v37 = vpack.c.bf16 %v112_v24, %v111_v23  ;;  %v117_v18 = vadd.f32 %v1132_v14, %v98_v8  ;;  %v118_v33 = vadd.f32 %v1132_v14, %v99_v16 }
  0x27   :  { %v506_v2 = vpack.c.bf16 %v114_v13, %v113_v28  ;;  %v511_v55 = vpack.c.bf16 %v116_v30, %v115_v29  ;;  %v119_v54 = vadd.f32 %v1132_v14, %v100_v9  ;;  %v120_v56 = vadd.f32 %v1132_v14, %v101_v17 }
  0x28   :  { %497 = vst [vmem:[%s1470_s8] sm:$0xff] %v496_v32   ;;  %v516_v4 = vpack.c.bf16 %v118_v33, %v117_v18  ;;  %v121_v20 = vadd.f32 %v1132_v14, %v102_v10  ;;  %v122_v12 = vadd.f32 %v1132_v14, %v103_v21  ;;  %v104_v7 = vmul.f32 %v491_v34, %v1098_v53 }
  0x29   :  { %756 = vst [vmem:[%s1470_s8 + $0x8] sm:$0xff] %v501_v37   ;;  %v521_v15 = vpack.c.bf16 %v120_v56, %v119_v54  ;;  %v105_v8 = vmul.f32 %v492_v35, %v1098_v53  ;;  %v189_v16 = vmul.f32 %v535_v38, %v1098_v53  ;;  %v190_v9 = vmul.f32 %v536_v39, %v1098_v53 }
  0x2a   :  { %757 = vst [vmem:[%s1470_s8 + $0x10] sm:$0xff] %v506_v2   ;;  %v526_v34 = vpack.c.bf16 %v122_v12, %v121_v20  ;;  %v123_v17 = vadd.f32 %v1132_v14, %v104_v7  ;;  %v191_v19 = vmul.f32 %v539_v40, %v1098_v53  ;;  %v192_v35 = vmul.f32 %v540_v43, %v1098_v53 }
  0x2b   :  { %758 = vst [vmem:[%s1470_s8 + $0x18] sm:$0xff] %v511_v55   ;;  %v124_v25 = vadd.f32 %v1132_v14, %v105_v8  ;;  %v205_v38 = vadd.f32 %v189_v16, %v1132_v14  ;;  %v206_v39 = vadd.f32 %v190_v9, %v1132_v14  ;;  %v193_v10 = vmul.f32 %v543_v44, %v1098_v53 }
  0x2c   :  { %759 = vst [vmem:[%s1470_s8 + $0x20] sm:$0xff] %v516_v4   ;;  %v207_v26 = vadd.f32 %v191_v19, %v1132_v14  ;;  %v208_v40 = vadd.f32 %v192_v35, %v1132_v14  ;;  %v194_v43 = vmul.f32 %v544_v45, %v1098_v53  ;;  %v195_v21 = vmul.f32 %v547_v49, %v1098_v53 }
  0x2d   :  { %760 = vst [vmem:[%s1470_s8 + $0x28] sm:$0xff] %v521_v15   ;;  %v531_v44 = vpack.c.bf16 %v124_v25, %v123_v17  ;;  %v568_v22 = vpack.c.bf16 %v206_v39, %v205_v38  ;;  %v209_v11 = vadd.f32 %v193_v10, %v1132_v14  ;;  %v196_v23 = vmul.f32 %v548_v50, %v1098_v53 }
  0x2e   :  { %761 = vst [vmem:[%s1470_s8 + $0x30] sm:$0xff] %v526_v34   ;;  %v573_v31 = vpack.c.bf16 %v208_v40, %v207_v26  ;;  %v210_v45 = vadd.f32 %v194_v43, %v1132_v14  ;;  %v211_v49 = vadd.f32 %v195_v21, %v1132_v14  ;;  %v1476_v24 = vunpack.c.l.bf16 %v967_v41 }
  0x2f   :  { %762 = vst [vmem:[%s1470_s8 + $0x38] sm:$0xff] %v531_v44   ;;  %v212_v36 = vadd.f32 %v196_v23, %v1132_v14  ;;  %v1477_v50 = vunpack.c.h.bf16 %v967_v41  ;;  %v1478_v29 = vunpack.c.l.bf16 %v972_v42  ;;  %v1479_v32 = vunpack.c.h.bf16 %v972_v42 }
  0x30   :  { %v197_v28 = vmul.f32 %v1476_v24, %v1098_v53  ;;  %569 = vst [vmem:[%s1471_s9] sm:$0xff] %v568_v22   ;;  %v578_v18 = vpack.c.bf16 %v210_v45, %v209_v11  ;;  %v1480_v2 = vunpack.c.l.bf16 %v981_v46  ;;  %v1481_v55 = vunpack.c.h.bf16 %v981_v46 }
  0x31   :  { %v198_v13 = vmul.f32 %v1477_v50, %v1098_v53  ;;  %v199_v30 = vmul.f32 %v1478_v29, %v1098_v53  ;;  %v200_v37 = vmul.f32 %v1479_v32, %v1098_v53  ;;  %770 = vst [vmem:[%s1471_s9 + $0x8] sm:$0xff] %v573_v31   ;;  %v583_v42 = vpack.c.bf16 %v212_v36, %v211_v49 }
  0x32   :  { %v213_v33 = vadd.f32 %v197_v28, %v1132_v14  ;;  %v201_v41 = vmul.f32 %v1480_v2, %v1098_v53  ;;  %v202_v54 = vmul.f32 %v1481_v55, %v1098_v53  ;;  %771 = vst [vmem:[%s1471_s9 + $0x10] sm:$0xff] %v578_v18   ;;  %v1482_v7 = vunpack.c.l.bf16 %v986_v47 }
  0x33   :  { %v214_v56 = vadd.f32 %v198_v13, %v1132_v14  ;;  %v215_v4 = vadd.f32 %v199_v30, %v1132_v14  ;;  %v216_v20 = vadd.f32 %v200_v37, %v1132_v14  ;;  %v1483_v8 = vunpack.c.h.bf16 %v986_v47  ;;  %772 = vst [vmem:[%s1471_s9 + $0x18] sm:$0xff] %v583_v42  }
  0x34   :  { %v217_v12 = vadd.f32 %v201_v41, %v1132_v14  ;;  %v218_v46 = vadd.f32 %v202_v54, %v1132_v14  ;;  %v203_v15 = vmul.f32 %v1482_v7, %v1098_v53  ;;  %v1484_v17 = vunpack.c.l.bf16 %v994_v51 }
  0x35   :  { %v204_v16 = vmul.f32 %v1483_v8, %v1098_v53  ;;  %v588_v9 = vpack.c.bf16 %v214_v56, %v213_v33  ;;  %v593_v34 = vpack.c.bf16 %v216_v20, %v215_v4  ;;  %v1485_v35 = vunpack.c.h.bf16 %v994_v51 }
  0x36   :  { %v285_v19 = vmul.f32 %v1484_v17, %v1098_v53  ;;  %v598_v38 = vpack.c.bf16 %v218_v46, %v217_v12  ;;  %v219_v39 = vadd.f32 %v203_v15, %v1132_v14  ;;  %v1486_v10 = vunpack.c.l.bf16 %v999_v52 }
  0x37   :  { %v286_v25 = vmul.f32 %v1485_v35, %v1098_v53  ;;  %v220_v47 = vadd.f32 %v204_v16, %v1132_v14  ;;  %773 = vst [vmem:[%s1471_s9 + $0x20] sm:$0xff] %v588_v9   ;;  %v1487_v51 = vunpack.c.h.bf16 %v999_v52  ;;  %v1488_v44 = vunpack.c.l.bf16 %v1008_v57 }
  0x38   :  { %v287_v26 = vmul.f32 %v1486_v10, %v1098_v53  ;;  %v301_v40 = vadd.f32 %v285_v19, %v1132_v14  ;;  %774 = vst [vmem:[%s1471_s9 + $0x28] sm:$0xff] %v593_v34   ;;  %v1489_v31 = vunpack.c.h.bf16 %v1008_v57  ;;  %v1490_v49 = vunpack.c.l.bf16 %v1016_v62 }
  0x39   :  { %v302_v43 = vadd.f32 %v286_v25, %v1132_v14  ;;  %v288_v21 = vmul.f32 %v1487_v51, %v1098_v53  ;;  %v289_v22 = vmul.f32 %v1488_v44, %v1098_v53  ;;  %v603_v11 = vpack.c.bf16 %v220_v47, %v219_v39  ;;  %775 = vst [vmem:[%s1471_s9 + $0x30] sm:$0xff] %v598_v38  }
  0x3a   :  { %v303_v23 = vadd.f32 %v287_v26, %v1132_v14  ;;  %v290_v45 = vmul.f32 %v1489_v31, %v1098_v53  ;;  %v291_v52 = vmul.f32 %v1490_v49, %v1098_v53  ;;  %v1491_v50 = vunpack.c.h.bf16 %v1016_v62 }
  0x3b   :  { %v640_v24 = vpack.c.bf16 %v302_v43, %v301_v40  ;;  %v304_v28 = vadd.f32 %v288_v21, %v1132_v14  ;;  %v305_v36 = vadd.f32 %v289_v22, %v1132_v14  ;;  %776 = vst [vmem:[%s1471_s9 + $0x38] sm:$0xff] %v603_v11   ;;  %v1492_v30 = vunpack.c.l.bf16 %v1021_v63 }
  0x3c   :  { %v292_v13 = vmul.f32 %v1491_v50, %v1098_v53  ;;  %v306_v57 = vadd.f32 %v290_v45, %v1132_v14  ;;  %v307_v29 = vadd.f32 %v291_v52, %v1132_v14  ;;  %v1493_v37 = vunpack.c.h.bf16 %v1021_v63  ;;  %v795_v52 = vld [vmem:[%s1468_s3 + $0x28] sm:$0xff]  }
  0x3d   :  { %v293_v32 = vmul.f32 %v1492_v30, %v1098_v53  ;;  %641 = vst [vmem:[%s1472_s10] sm:$0xff] %v640_v24   ;;  %v645_v62 = vpack.c.bf16 %v304_v28, %v303_v23  ;;  %v1494_v2 = vunpack.c.l.bf16 %v1038_v27  ;;  %v1495_v55 = vunpack.c.h.bf16 %v1038_v27 }
  0x3e   :  { %v294_v18 = vmul.f32 %v1493_v37, %v1098_v53  ;;  %v308_v33 = vadd.f32 %v292_v13, %v1132_v14  ;;  %v650_v42 = vpack.c.bf16 %v306_v57, %v305_v36  ;;  %v1496_v4 = vunpack.c.l.bf16 %v1043_v6  ;;  %v796_v13 = vld [vmem:[%s1468_s3 + $0x30] sm:$0xff]  }
  0x3f   :  { %v295_v41 = vmul.f32 %v1494_v2, %v1098_v53  ;;  %v296_v54 = vmul.f32 %v1495_v55, %v1098_v53  ;;  %v309_v56 = vadd.f32 %v293_v32, %v1132_v14  ;;  %784 = vst [vmem:[%s1472_s10 + $0x8] sm:$0xff] %v645_v62   ;;  %v1497_v27 = vunpack.c.h.bf16 %v1043_v6  ;;  %v797_v62 = vld [vmem:[%s1468_s3 + $0x38] sm:$0xff]  }
  0x40   :  { %v310_v63 = vadd.f32 %v294_v18, %v1132_v14  ;;  %v297_v20 = vmul.f32 %v1496_v4, %v1098_v53  ;;  %v655_v12 = vpack.c.bf16 %v308_v33, %v307_v29  ;;  %785 = vst [vmem:[%s1472_s10 + $0x10] sm:$0xff] %v650_v42   ;;  %v1498_v9 = vunpack.c.l.bf16 %v1055_v1 }
  0x41   :  { %v311_v46 = vadd.f32 %v295_v41, %v1132_v14  ;;  %v312_v7 = vadd.f32 %v296_v54, %v1132_v14  ;;  %v298_v15 = vmul.f32 %v1497_v27, %v1098_v53  ;;  %v1499_v17 = vunpack.c.h.bf16 %v1055_v1 }
  0x42   :  { %v660_v8 = vpack.c.bf16 %v310_v63, %v309_v56  ;;  %v313_v16 = vadd.f32 %v297_v20, %v1132_v14  ;;  %v299_v34 = vmul.f32 %v1498_v9, %v1098_v53  ;;  %786 = vst [vmem:[%s1472_s10 + $0x18] sm:$0xff] %v655_v12   ;;  %v1500_v25 = vunpack.c.l.bf16 %v1064_v58 }
  0x43   :  { %v300_v19 = vmul.f32 %v1499_v17, %v1098_v53  ;;  %v665_v6 = vpack.c.bf16 %v312_v7, %v311_v46  ;;  %v314_v35 = vadd.f32 %v298_v15, %v1132_v14  ;;  %v1501_v39 = vunpack.c.h.bf16 %v1064_v58 }
  0x44   :  { %v381_v38 = vmul.f32 %v1500_v25, %v1098_v53  ;;  %787 = vst [vmem:[%s1472_s10 + $0x20] sm:$0xff] %v660_v8   ;;  %v315_v1 = vadd.f32 %v299_v34, %v1132_v14  ;;  %v1502_v26 = vunpack.c.l.bf16 %v1069_v3  ;;  %v1503_v43 = vunpack.c.h.bf16 %v1069_v3 }
  0x45   :  { %v382_v47 = vmul.f32 %v1501_v39, %v1098_v53  ;;  %v316_v10 = vadd.f32 %v300_v19, %v1132_v14  ;;  %788 = vst [vmem:[%s1472_s10 + $0x28] sm:$0xff] %v665_v6   ;;  %v670_v58 = vpack.c.bf16 %v314_v35, %v313_v16  ;;  %v1504_v22 = vunpack.c.l.bf16 %v1080_v5 }
  0x46   :  { %v383_v40 = vmul.f32 %v1502_v26, %v1098_v53  ;;  %v384_v51 = vmul.f32 %v1503_v43, %v1098_v53  ;;  %v397_v21 = vadd.f32 %v381_v38, %v1132_v14  ;;  %v1505_v3 = vunpack.c.h.bf16 %v1080_v5 }
  0x47   :  { %v398_v44 = vadd.f32 %v382_v47, %v1132_v14  ;;  %v385_v11 = vmul.f32 %v1504_v22, %v1098_v53  ;;  %v675_v23 = vpack.c.bf16 %v316_v10, %v315_v1  ;;  %789 = vst [vmem:[%s1472_s10 + $0x30] sm:$0xff] %v670_v58   ;;  %v387_v36 = vmul.f32 %v691_v59, %v1098_v53 }
  0x48   :  { %v399_v31 = vadd.f32 %v383_v40, %v1132_v14  ;;  %v400_v45 = vadd.f32 %v384_v51, %v1132_v14  ;;  %v386_v49 = vmul.f32 %v1505_v3, %v1098_v53  ;;  %v1506_v50 = vunpack.c.h.bf16 %v1095_v61 }
  0x49   :  { %v712_v24 = vpack.c.bf16 %v398_v44, %v397_v21  ;;  %v401_v28 = vadd.f32 %v385_v11, %v1132_v14  ;;  %790 = vst [vmem:[%s1472_s10 + $0x38] sm:$0xff] %v675_v23   ;;  %v389_v30 = vmul.f32 %v695_v0, %v1098_v53  ;;  %v390_v59 = vmul.f32 %v696_v60, %v1098_v53 }
  0x4a   :  { %v388_v5 = vmul.f32 %v1506_v50, %v1098_v53  ;;  %v717_v57 = vpack.c.bf16 %v400_v45, %v399_v31  ;;  %v402_v29 = vadd.f32 %v386_v49, %v1132_v14  ;;  %v403_v61 = vadd.f32 %v387_v36, %v1132_v14 }
  0x4b   :  { %713 = vst [vmem:[%s1473_s11] sm:$0xff] %v712_v24   ;;  %v699_v37 = vunpack.c.l.bf16 %v795_v52  ;;  %v700_v18 = vunpack.c.h.bf16 %v795_v52  ;;  %v405_v60 = vadd.f32 %v389_v30, %v1132_v14  ;;  %v406_v48 = vadd.f32 %v390_v59, %v1132_v14 }
  0x4c   :  { %v404_v32 = vadd.f32 %v388_v5, %v1132_v14  ;;  %798 = vst [vmem:[%s1473_s11 + $0x8] sm:$0xff] %v717_v57   ;;  %v722_v0 = vpack.c.bf16 %v402_v29, %v401_v28  ;;  %v703_v33 = vunpack.c.l.bf16 %v796_v13  ;;  %v704_v54 = vunpack.c.h.bf16 %v796_v13 }
  0x4d   :  { %v391_v41 = vmul.f32 %v699_v37, %v1098_v53  ;;  %v392_v55 = vmul.f32 %v700_v18, %v1098_v53  ;;  %v732_v42 = vpack.c.bf16 %v406_v48, %v405_v60  ;;  %v707_v63 = vunpack.c.l.bf16 %v797_v62 }
  0x4e   :  { %v727_v2 = vpack.c.bf16 %v404_v32, %v403_v61  ;;  %799 = vst [vmem:[%s1473_s11 + $0x10] sm:$0xff] %v722_v0   ;;  %v393_v56 = vmul.f32 %v703_v33, %v1098_v53  ;;  %v708_v4 = vunpack.c.h.bf16 %v797_v62  ;;  %v394_v46 = vmul.f32 %v704_v54, %v1098_v53 }
  0x4f   :  { %v407_v20 = vadd.f32 %v391_v41, %v1132_v14  ;;  %v408_v12 = vadd.f32 %v392_v55, %v1132_v14  ;;  %801 = vst [vmem:[%s1473_s11 + $0x20] sm:$0xff] %v732_v42   ;;  %v395_v27 = vmul.f32 %v707_v63, %v1098_v53 }
  0x50   :  { %800 = vst [vmem:[%s1473_s11 + $0x18] sm:$0xff] %v727_v2   ;;  %v409_v7 = vadd.f32 %v393_v56, %v1132_v14  ;;  %v396_v15 = vmul.f32 %v708_v4, %v1098_v53  ;;  %v410_v16 = vadd.f32 %v394_v46, %v1132_v14 }
  0x51   :  { %v737_v8 = vpack.c.bf16 %v408_v12, %v407_v20  ;;  %v411_v9 = vadd.f32 %v395_v27, %v1132_v14 }
  0x52   :  { %v412_v34 = vadd.f32 %v396_v15, %v1132_v14  ;;  %v742_v17 = vpack.c.bf16 %v410_v16, %v409_v7 }
  0x53   :  { %802 = vst [vmem:[%s1473_s11 + $0x28] sm:$0xff] %v737_v8  }
  0x54   :  { %v747_v19 = vpack.c.bf16 %v412_v34, %v411_v9  ;;  %803 = vst [vmem:[%s1473_s11 + $0x30] sm:$0xff] %v742_v17  }
  0x56   :  { %804 = vst [vmem:[%s1473_s11 + $0x38] sm:$0xff] %v747_v19  }

// kernel: _lambda_.41
= control target key start
LH: loop header
LB: loop body
LE: loop exit
PB: predicated region body
PF: predicated region fallthrough
CT: control target
= control target key end

     0   :  { %s34_s0 = inlined_call_operand.vmem [shape: bf16[8,128], index: 0, kind: input, shape index: {}]   ;;  %s35_s1 = inlined_call_operand.vmem [shape: f32[8,128], index: 1, kind: output, shape index: {}]  }
   0x1   :  { %v8_v0 = vld [vmem:[%s34_s0] sm:$0xf] }
   0x2   :  { %v9_v1 = vunpack.c.l.bf16 %v8_v0 }
   0x4   :  { %16 = vtanh.f32 %v9_v1 }
   0xa   :  { %v17_v2 = vpop.eup %16 }
   0xb   :  { %11 = vst [vmem:[%s35_s1] sm:$0xff] %v17_v2 }

</bundles_post_ra>
